<compile_context>
chip_gen: v5e
topology: v5e:2x2
jax: 0.10.0
libtpu: 0.0.40
codegen_flags: <defaults>
</compile_context>

<pallas_src>
import functools

import jax
import jax.numpy as jnp
from jax.experimental import pallas as pl
from jax.experimental.pallas import tpu as pltpu


# ----------------------------------------------------------------------------
# Small helpers
# ----------------------------------------------------------------------------
def _ceil128(c):
    return ((c + 127) // 128) * 128


def _channel_tile(c, pref=256):
    """Largest lane-dense Cout tile (multiple of 128 dividing c, capped at pref)."""
    t = min(pref, c)
    t -= t % 128
    if t <= 0:
        return c
    while c % t:
        t -= 128
    return t


def _pad_layout(H, W, KH, KW, ph, pw, dh, dw):
    """Flat padded layout for a stride-1 'same' conv: rows = Hp*Wp + overread."""
    Hp, Wp = H + 2 * ph, W + 2 * pw
    ov = (KW - 1) * dw                      # last-tap overread past Hp*Wp
    return Hp, Wp, ov, Hp * Wp + ov


def _pad_conv_params(prm, cin_p, cout_p):
    """Zero-pad HWIO weight + folded-BN affine to lane-dense channel counts."""
    w = prm['w']
    cin, cout = w.shape[2], w.shape[3]
    w = jnp.pad(w, ((0, 0), (0, 0), (0, cin_p - cin), (0, cout_p - cout)))
    s = jnp.pad(prm['scale'], (0, cout_p - cout)).reshape(1, cout_p).astype(jnp.float32)
    b = jnp.pad(prm['shift'], (0, cout_p - cout)).reshape(1, cout_p).astype(jnp.float32)
    return w, s, b


# ----------------------------------------------------------------------------
# Kernels
# ----------------------------------------------------------------------------
def _conv_kernel(*refs, H, W, KH, KW, dh, dw, ph, pw, Wp, rows_in,
                 pho, pwo, Wpo, rows_out, relu, fused):
    """One (n, co-tile) grid step of [optional fused 1x1+BN+ReLU] -> spatial conv
    (stride 1, dilation) + BN (+ReLU), output scattered into the consumer's
    zero-padded flat layout.

    fused=True refs : x(H*W,Cin0), w1(Cin0,Cmid), s1,b1(1,Cmid),
                      w(KH*KW,Cmid,tCo), s,b(1,tCo), o(rows_out,tCo), xpad(rows_in,Cmid)
    fused=False refs: x(rows_in,Cin), w(KH*KW,Cin,tCo), s,b(1,tCo), o(rows_out,tCo)
    """
    if fused:
        x_ref, w1_ref, s1_ref, b1_ref, w_ref, s_ref, b_ref, o_ref, xpad_ref = refs
    else:
        x_ref, w_ref, s_ref, b_ref, o_ref = refs

    # ---- optional fused leading 1x1 conv, staged into the padded flat scratch ----
    if fused:
        cmid = xpad_ref.shape[1]
        dt = xpad_ref.dtype
        mid = jnp.dot(x_ref[...], w1_ref[...], preferred_element_type=jnp.float32)
        mid = jnp.maximum(mid * s1_ref[...] + b1_ref[...], 0.0).astype(dt)

        # zero only the border (top run / bottom run / inter-row gaps), not the tile
        top = ph * Wp + pw
        if top > 0:
            xpad_ref[0:top, :] = jnp.zeros((top, cmid), dt)
        bot = (H - 1 + ph) * Wp + pw + W
        if rows_in - bot > 0:
            xpad_ref[bot:rows_in, :] = jnp.zeros((rows_in - bot, cmid), dt)
        if pw == 0:
            # interior is one contiguous run
            xpad_ref[ph * Wp:ph * Wp + H * W, :] = mid
        else:
            gap = jnp.zeros((2 * pw, cmid), dt)
            for h in range(H):
                base = (h + ph) * Wp + pw
                xpad_ref[base:base + W, :] = mid[h * W:(h + 1) * W, :]
                if h < H - 1:
                    xpad_ref[base + W:base + W + 2 * pw, :] = gap
        src = xpad_ref
    else:
        src = x_ref                      # already in this conv's padded flat layout

    # ---- spatial conv: each tap is a contiguous row-range view (no relayout) ----
    M = H * Wp                           # full-width rows; junk cols sliced at store
    acc = None
    for kh in range(KH):
        for kw in range(KW):
            off = kh * dh * Wp + kw * dw
            tap = kh * KW + kw
            d = jnp.dot(src[off:off + M, :], w_ref[tap],
                        preferred_element_type=jnp.float32)
            acc = d if acc is None else acc + d

    y = acc * s_ref[...] + b_ref[...]
    if relu:
        y = jnp.maximum(y, 0.0)
    y = y.astype(o_ref.dtype)

    # ---- write output into the consumer's zero-padded flat layout ----
    co = o_ref.shape[1]
    odt = o_ref.dtype
    if pho == 0 and pwo == 0 and rows_out == H * W and Wp == W:
        o_ref[...] = y                   # flat output, no junk columns
    else:
        topo = pho * Wpo + pwo
        if topo > 0:
            o_ref[0:topo, :] = jnp.zeros((topo, co), odt)
        boto = (H - 1 + pho) * Wpo + pwo + W
        if rows_out - boto > 0:
            o_ref[boto:rows_out, :] = jnp.zeros((rows_out - boto, co), odt)
        if pwo == 0 and Wp == W:
            o_ref[pho * Wpo:pho * Wpo + H * W, :] = y
        else:
            gap_o = jnp.zeros((2 * pwo, co), odt) if pwo > 0 else None
            for h in range(H):
                base = (h + pho) * Wpo + pwo
                o_ref[base:base + W, :] = y[h * Wp:h * Wp + W, :]
                if pwo > 0 and h < H - 1:
                    o_ref[base + W:base + W + 2 * pwo, :] = gap_o


def _rfb_combine_kernel(x0_ref, x1_ref, x2_ref, x3_ref, xs_ref,
                        w0_ref, w1_ref, w2_ref, w3_ref,
                        lsc_ref, lsh_ref, ws_ref, ssc_ref, ssh_ref,
                        o_ref, *, alpha):
    """Fused tail: ConvLinear(cat(x0..x3)) as 4 K-partial 1x1 matmuls, shortcut 1x1,
    BN affines, residual (*alpha) and final ReLU.  Everything stays flat (M, C)."""
    def mm(a_ref, w_ref):
        return jnp.dot(a_ref[...], w_ref[...], preferred_element_type=jnp.float32)

    lin = (mm(x0_ref, w0_ref) + mm(x1_ref, w1_ref) +
           mm(x2_ref, w2_ref) + mm(x3_ref, w3_ref))
    lin = lin * lsc_ref[...] + lsh_ref[...]
    short = mm(xs_ref, ws_ref) * ssc_ref[...] + ssh_ref[...]
    o_ref[...] = jnp.maximum(lin * alpha + short, 0.0).astype(o_ref.dtype)


# ----------------------------------------------------------------------------
# pallas_call wrappers
# ----------------------------------------------------------------------------
_VMEM_LIMIT = 32 * 1024 * 1024   # explicit: safe on v5e/v6e (128 MiB) and v7x (64 MiB)


def conv_block(x, spat, *, H, W, k, pad, dil, relu, pre=None, out_pad=None,
               compute_dtype=jnp.bfloat16, c_tile=256):
    """[optional fused 1x1 (pre)] + spatial conv (stride 1) + BN (+ReLU).

    x: if pre is None -> (N, rows_in, Cin_p) already in THIS conv's padded flat layout
       else           -> (N, H*W, Cin0_p) plain flat input.
    out_pad: None -> flat (N, H*W, Cout_p) output;
             (k2, pad2, dil2) -> output written in the CONSUMER conv's padded layout.
    """
    KH, KW = k
    ph, pw = pad
    dh, dw = dil
    assert 2 * ph == dh * (KH - 1) and 2 * pw == dw * (KW - 1), "stride-1 'same' only"
    Hp, Wp, ov, rows_in = _pad_layout(H, W, KH, KW, ph, pw, dh, dw)

    cin, cout = spat['w'].shape[2], spat['w'].shape[3]
    cin_p, cout_p = _ceil128(cin), _ceil128(cout)
    w, s, b = _pad_conv_params(spat, cin_p, cout_p)
    w = w.reshape(KH * KW, cin_p, cout_p).astype(compute_dtype)

    N = x.shape[0]
    fused = pre is not None
    if fused:
        c0_p = _ceil128(pre['w'].shape[2])
        w1, s1, b1 = _pad_conv_params(pre, c0_p, cin_p)
        w1 = w1.reshape(c0_p, cin_p).astype(compute_dtype)
        assert x.shape == (N, H * W, c0_p)
    else:
        assert x.shape == (N, rows_in, cin_p)

    if out_pad is None:
        pho = pwo = 0
        Wpo, rows_out = W, H * W
    else:
        k2, pad2, dil2 = out_pad
        _, Wpo, _, rows_out = _pad_layout(H, W, k2[0], k2[1],
                                          pad2[0], pad2[1], dil2[0], dil2[1])
        pho, pwo = pad2

    t_co = _channel_tile(cout_p, c_tile)
    n_co = cout_p // t_co

    kern = functools.partial(
        _conv_kernel, H=H, W=W, KH=KH, KW=KW, dh=dh, dw=dw, ph=ph, pw=pw,
        Wp=Wp, rows_in=rows_in, pho=pho, pwo=pwo, Wpo=Wpo, rows_out=rows_out,
        relu=relu, fused=fused)

    if fused:
        in_specs = [pl.BlockSpec((None, H * W, c0_p), lambda n, co: (n, 0, 0)),
                    pl.BlockSpec((c0_p, cin_p), lambda n, co: (0, 0)),
                    pl.BlockSpec((1, cin_p), lambda n, co: (0, 0)),
                    pl.BlockSpec((1, cin_p), lambda n, co: (0, 0))]
        args = [x, w1, s1, b1]
        scratch = [pltpu.VMEM((rows_in, cin_p), compute_dtype)]
    else:
        in_specs = [pl.BlockSpec((None, rows_in, cin_p), lambda n, co: (n, 0, 0))]
        args = [x]
        scratch = []

    in_specs += [pl.BlockSpec((KH * KW, cin_p, t_co), lambda n, co: (0, 0, co)),
                 pl.BlockSpec((1, t_co), lambda n, co: (0, co)),
                 pl.BlockSpec((1, t_co), lambda n, co: (0, co))]
    args += [w, s, b]

    return pl.pallas_call(
        kern,
        out_shape=jax.ShapeDtypeStruct((N, rows_out, cout_p), compute_dtype),
        grid=(N, n_co),
        in_specs=in_specs,
        out_specs=pl.BlockSpec((None, rows_out, t_co), lambda n, co: (n, 0, co)),
        scratch_shapes=scratch,
        compiler_params=pltpu.CompilerParams(
            dimension_semantics=("parallel", "parallel"),
            vmem_limit_bytes=_VMEM_LIMIT),
    )(*args)


def rfb_combine(x_branches, x_flat, inter, lin_p, short_p, alpha, *,
                compute_dtype=jnp.bfloat16, out_dtype=jnp.float32, c_tile=256):
    """relu(ConvLinear(concat(x0..x3)) * alpha + shortcut(x)), fully fused, flat."""
    N, HW, cin0_p = x_flat.shape
    cout = lin_p['w'].shape[3]
    cout_p = _ceil128(cout)
    w_lin = lin_p['w'].reshape(lin_p['w'].shape[2], cout)     # (4*inter, cout)

    cbp = [xb.shape[-1] for xb in x_branches]                 # padded branch channels
    w_chunks = []
    for i in range(4):
        wc = w_lin[i * inter:(i + 1) * inter, :]
        wc = jnp.pad(wc, ((0, cbp[i] - inter), (0, cout_p - cout))).astype(compute_dtype)
        w_chunks.append(wc)

    cin0 = short_p['w'].shape[2]
    w_short = short_p['w'].reshape(cin0, cout)
    w_short = jnp.pad(w_short, ((0, cin0_p - cin0), (0, cout_p - cout))).astype(compute_dtype)

    def padvec(v):
        return jnp.pad(v, (0, cout_p - cout)).reshape(1, cout_p).astype(jnp.float32)

    lsc, lsh = padvec(lin_p['scale']), padvec(lin_p['shift'])
    ssc, ssh = padvec(short_p['scale']), padvec(short_p['shift'])

    t_co = _channel_tile(cout_p, c_tile)
    n_co = cout_p // t_co

    act_specs = [pl.BlockSpec((None, HW, c), lambda n, co: (n, 0, 0)) for c in cbp]
    act_specs.append(pl.BlockSpec((None, HW, cin0_p), lambda n, co: (n, 0, 0)))
    w_specs = [pl.BlockSpec((c, t_co), lambda n, co: (0, co)) for c in cbp]
    vec = pl.BlockSpec((1, t_co), lambda n, co: (0, co))
    ws_spec = pl.BlockSpec((cin0_p, t_co), lambda n, co: (0, co))

    return pl.pallas_call(
        functools.partial(_rfb_combine_kernel, alpha=float(alpha)),
        out_shape=jax.ShapeDtypeStruct((N, HW, cout_p), out_dtype),
        grid=(N, n_co),
        in_specs=act_specs + w_specs + [vec, vec, ws_spec, vec, vec],
        out_specs=pl.BlockSpec((None, HW, t_co), lambda n, co: (n, 0, co)),
        compiler_params=pltpu.CompilerParams(
            dimension_semantics=("parallel", "parallel"),
            vmem_limit_bytes=_VMEM_LIMIT),
    )(*x_branches, x_flat, *w_chunks, lsc, lsh, w_short, ssc, ssh)


# ----------------------------------------------------------------------------
# Module forward (Pallas) and plain-JAX reference
# ----------------------------------------------------------------------------
def basic_rfb_a_forward(x_nchw, p, scale=0.1, compute_dtype=jnp.bfloat16,
                        out_dtype=jnp.float32):
    """BasicRFB_a.forward (stride=1).  Input/output NCHW like PyTorch."""
    N, C, H, W = x_nchw.shape
    Cp = _ceil128(C)
    x = jnp.transpose(x_nchw, (0, 2, 3, 1)).astype(compute_dtype)     # NCHW -> NHWC
    if Cp != C:
        x = jnp.pad(x, ((0, 0), (0, 0), (0, 0), (0, Cp - C)))
    xf = x.reshape(N, H * W, Cp)                                       # flat rows

    cb = functools.partial(conv_block, H=H, W=W, compute_dtype=compute_dtype)

    # branch 0: fused [1x1 -> 3x3 pad1], flat out
    x0 = cb(xf, p['b0_1'], pre=p['b0_0'], k=(3, 3), pad=(1, 1), dil=(1, 1), relu=False)

    # branch 1: fused [1x1 -> (3,1) pad(1,0)] -> [3x3 pad3 dil3]
    t = cb(xf, p['b1_1'], pre=p['b1_0'], k=(3, 1), pad=(1, 0), dil=(1, 1), relu=True,
           out_pad=((3, 3), (3, 3), (3, 3)))
    x1 = cb(t, p['b1_2'], k=(3, 3), pad=(3, 3), dil=(3, 3), relu=False)

    # branch 2: fused [1x1 -> (1,3) pad(0,1)] -> [3x3 pad3 dil3]
    t = cb(xf, p['b2_1'], pre=p['b2_0'], k=(1, 3), pad=(0, 1), dil=(1, 1), relu=True,
           out_pad=((3, 3), (3, 3), (3, 3)))
    x2 = cb(t, p['b2_2'], k=(3, 3), pad=(3, 3), dil=(3, 3), relu=False)

    # branch 3: fused [1x1 -> (1,3) pad(0,1)] -> [(3,1) pad(1,0)] -> [3x3 pad5 dil5]
    t = cb(xf, p['b3_1'], pre=p['b3_0'], k=(1, 3), pad=(0, 1), dil=(1, 1), relu=True,
           out_pad=((3, 1), (1, 0), (1, 1)))
    t = cb(t, p['b3_2'], k=(3, 1), pad=(1, 0), dil=(1, 1), relu=True,
           out_pad=((3, 3), (5, 5), (5, 5)))
    x3 = cb(t, p['b3_3'], k=(3, 3), pad=(5, 5), dil=(5, 5), relu=False)

    inter = p['b0_0']['w'].shape[3]
    out_planes = p['lin']['w'].shape[3]
    out_flat = rfb_combine((x0, x1, x2, x3), xf, inter, p['lin'], p['short'], scale,
                           compute_dtype=compute_dtype, out_dtype=out_dtype)
    out = out_flat[:, :, :out_planes].reshape(N, H, W, out_planes)
    return jnp.transpose(out, (0, 3, 1, 2))                           # NHWC -> NCHW


def ref_conv_bn(x, w, scale, shift, *, padding=(0, 0), dilation=(1, 1), relu=True):
    y = jax.lax.conv_general_dilated(
        x, w, window_strides=(1, 1),
        padding=((padding[0], padding[0]), (padding[1], padding[1])),
        rhs_dilation=dilation,
        dimension_numbers=('NHWC', 'HWIO', 'NHWC'))
    y = y * scale.reshape(1, 1, 1, -1) + shift.reshape(1, 1, 1, -1)
    if relu:
        y = jnp.maximum(y, 0.0)
    return y


def ref_basic_rfb_a_forward(x_nchw, p, scale=0.1):
    x = jnp.transpose(x_nchw, (0, 2, 3, 1))
    x0 = ref_conv_bn(x, **p['b0_0'])
    x0 = ref_conv_bn(x0, **p['b0_1'], padding=(1, 1), relu=False)
    x1 = ref_conv_bn(x, **p['b1_0'])
    x1 = ref_conv_bn(x1, **p['b1_1'], padding=(1, 0))
    x1 = ref_conv_bn(x1, **p['b1_2'], padding=(3, 3), dilation=(3, 3), relu=False)
    x2 = ref_conv_bn(x, **p['b2_0'])
    x2 = ref_conv_bn(x2, **p['b2_1'], padding=(0, 1))
    x2 = ref_conv_bn(x2, **p['b2_2'], padding=(3, 3), dilation=(3, 3), relu=False)
    x3 = ref_conv_bn(x, **p['b3_0'])
    x3 = ref_conv_bn(x3, **p['b3_1'], padding=(0, 1))
    x3 = ref_conv_bn(x3, **p['b3_2'], padding=(1, 0))
    x3 = ref_conv_bn(x3, **p['b3_3'], padding=(5, 5), dilation=(5, 5), relu=False)
    cat = jnp.concatenate([x0, x1, x2, x3], axis=-1)
    lin = ref_conv_bn(cat, **p['lin'], relu=False)
    short = ref_conv_bn(x, **p['short'], relu=False)
    out = jnp.maximum(lin * scale + short, 0.0)
    return jnp.transpose(out, (0, 3, 1, 2))


# ----------------------------------------------------------------------------
# Parameter init (deterministic, synthetic; BN folded to affine)
# ----------------------------------------------------------------------------
def make_conv_params(key, cin, cout, kh, kw):
    kw_, kg, kb, km, kv = jax.random.split(key, 5)
    w = 0.1 * jax.random.normal(kw_, (kh, kw, cin, cout), jnp.float32)
    gamma = 1.0 + 0.1 * jax.random.normal(kg, (cout,), jnp.float32)
    beta = 0.1 * jax.random.normal(kb, (cout,), jnp.float32)
    rmean = 0.1 * jax.random.normal(km, (cout,), jnp.float32)
    rvar = 1.0 + 0.1 * jax.random.uniform(kv, (cout,), jnp.float32)
    eps = 1e-5
    scale = gamma / jnp.sqrt(rvar + eps)
    shift = beta - rmean * scale
    return dict(w=w, scale=scale, shift=shift)


def init_basic_rfb_a(key, in_planes, out_planes):
    inter = in_planes // 4
    keys = iter(jax.random.split(key, 14))
    p = {}
    p['b0_0'] = make_conv_params(next(keys), in_planes, inter, 1, 1)
    p['b0_1'] = make_conv_params(next(keys), inter, inter, 3, 3)
    p['b1_0'] = make_conv_params(next(keys), in_planes, inter, 1, 1)
    p['b1_1'] = make_conv_params(next(keys), inter, inter, 3, 1)
    p['b1_2'] = make_conv_params(next(keys), inter, inter, 3, 3)
    p['b2_0'] = make_conv_params(next(keys), in_planes, inter, 1, 1)
    p['b2_1'] = make_conv_params(next(keys), inter, inter, 1, 3)
    p['b2_2'] = make_conv_params(next(keys), inter, inter, 3, 3)
    p['b3_0'] = make_conv_params(next(keys), in_planes, inter // 2, 1, 1)
    p['b3_1'] = make_conv_params(next(keys), inter // 2, (inter // 4) * 3, 1, 3)
    p['b3_2'] = make_conv_params(next(keys), (inter // 4) * 3, inter, 3, 1)
    p['b3_3'] = make_conv_params(next(keys), inter, inter, 3, 3)
    p['lin'] = make_conv_params(next(keys), 4 * inter, out_planes, 1, 1)
    p['short'] = make_conv_params(next(keys), in_planes, out_planes, 1, 1)
    return p


# ----------------------------------------------------------------------------
if __name__ == "__main__":
    key = jax.random.PRNGKey(0)
    kx, kp = jax.random.split(key)

    N, C_IN, H, W = 2, 16, 12, 12     # small, but every branch / pad / dilation live
    C_OUT = 16

    x = jax.random.normal(kx, (N, C_IN, H, W), jnp.float32)   # NCHW like PyTorch
    params = init_basic_rfb_a(kp, C_IN, C_OUT)

    ref = jax.block_until_ready(ref_basic_rfb_a_forward(x, params, scale=0.1))

    # exact-math check: f32 MXU path vs plain-JAX reference
    out_f32 = jax.block_until_ready(
        basic_rfb_a_forward(x, params, scale=0.1, compute_dtype=jnp.float32))
    assert out_f32.shape == (N, C_OUT, H, W)
    err32 = float(jnp.max(jnp.abs(out_f32 - ref)))
    assert err32 < 2e-3, f"f32 max abs error {err32}"

    # fast path: bf16 MXU inputs, f32 accumulation / epilogue
    out_bf16 = jax.block_until_ready(
        basic_rfb_a_forward(x, params, scale=0.1, compute_dtype=jnp.bfloat16))
    assert out_bf16.shape == (N, C_OUT, H, W)
    errbf = float(jnp.max(jnp.abs(out_bf16 - ref)))
    assert errbf < 8e-2, f"bf16 max abs error {errbf}"

    print("KERNEL_OK")
</pallas_src>

<mosaic_0001>
module attributes {stable_mosaic.version = 11 : i64} {
  func.func @_conv_kernel(%arg0: i32, %arg1: i32, %arg2: memref<1x144x128xf32, #tpu.memory_space<vmem>>, %arg3: memref<128x128xf32, #tpu.memory_space<vmem>>, %arg4: memref<1x128xf32, #tpu.memory_space<vmem>>, %arg5: memref<1x128xf32, #tpu.memory_space<vmem>>, %arg6: memref<9x128x128xf32, #tpu.memory_space<vmem>>, %arg7: memref<1x128xf32, #tpu.memory_space<vmem>>, %arg8: memref<1x128xf32, #tpu.memory_space<vmem>>, %arg9: memref<1x144x128xf32, #tpu.memory_space<vmem>>, %arg10: memref<198x128xf32, #tpu.memory_space<vmem>>) attributes {dimension_semantics = [#tpu.dimension_semantics<parallel>, #tpu.dimension_semantics<parallel>], iteration_bounds = array<i64: 2, 1>, scalar_prefetch = 0 : i64, scratch_operands = 1 : i64, tpu.core_type = #tpu.core_type<tc>, window_params = [{transform_indices = @transform_0, window_bounds = array<i64: 1, 144, 128>}, {pipeline_mode = #tpu.pipeline_mode<synchronous>, transform_indices = @transform_1, window_bounds = array<i64: 128, 128>}, {pipeline_mode = #tpu.pipeline_mode<synchronous>, transform_indices = @transform_2, window_bounds = array<i64: 1, 128>}, {pipeline_mode = #tpu.pipeline_mode<synchronous>, transform_indices = @transform_3, window_bounds = array<i64: 1, 128>}, {transform_indices = @transform_4, window_bounds = array<i64: 9, 128, 128>}, {transform_indices = @transform_5, window_bounds = array<i64: 1, 128>}, {transform_indices = @transform_6, window_bounds = array<i64: 1, 128>}, {transform_indices = @transform_7, window_bounds = array<i64: 1, 144, 128>}]} {
    %c0 = arith.constant 0 : index
    %c0_0 = arith.constant 0 : index
    %c0_1 = arith.constant 0 : index
    %0 = vector.load %arg2[%c0, %c0_0, %c0_1] : memref<1x144x128xf32, #tpu.memory_space<vmem>>, vector<1x144x128xf32>
    %1 = vector.shape_cast %0 : vector<1x144x128xf32> to vector<144x128xf32>
    %c0_2 = arith.constant 0 : index
    %c0_3 = arith.constant 0 : index
    %2 = vector.load %arg3[%c0_2, %c0_3] : memref<128x128xf32, #tpu.memory_space<vmem>>, vector<128x128xf32>
    %cst = arith.constant dense<0.000000e+00> : vector<144x128xf32>
    %3 = tpu.matmul %1, %2, %cst {dimension_numbers = #tpu.dot_dimension_numbers<[1], [0], [0], [1], [0, 0, 1, 1], [], []>} : vector<144x128xf32>, vector<128x128xf32>, vector<144x128xf32> -> vector<144x128xf32>
    %c0_4 = arith.constant 0 : index
    %c0_5 = arith.constant 0 : index
    %4 = vector.load %arg4[%c0_4, %c0_5] : memref<1x128xf32, #tpu.memory_space<vmem>>, vector<1x128xf32>
    %5 = vector.broadcast %4 : vector<1x128xf32> to vector<144x128xf32>
    %6 = arith.mulf %3, %5 : vector<144x128xf32>
    %c0_6 = arith.constant 0 : index
    %c0_7 = arith.constant 0 : index
    %7 = vector.load %arg5[%c0_6, %c0_7] : memref<1x128xf32, #tpu.memory_space<vmem>>, vector<1x128xf32>
    %8 = vector.broadcast %7 : vector<1x128xf32> to vector<144x128xf32>
    %9 = arith.addf %6, %8 : vector<144x128xf32>
    %cst_8 = arith.constant 0.000000e+00 : f32
    %10 = vector.broadcast %cst_8 : f32 to vector<144x128xf32>
    %11 = arith.maximumf %9, %10 : vector<144x128xf32>
    %cst_9 = arith.constant 0.000000e+00 : f32
    %12 = vector.broadcast %cst_9 : f32 to vector<15x128xf32>
    %c0_10 = arith.constant 0 : index
    %c0_11 = arith.constant 0 : index
    %13 = vector.load %arg10[%c0_10, %c0_11] : memref<198x128xf32, #tpu.memory_space<vmem>>, vector<15x128xf32>
    tpu.vector_store %arg10[%c0_10, %c0_11], %12 {strides = array<i32>} : memref<198x128xf32, #tpu.memory_space<vmem>>, vector<15x128xf32>,
    %cst_12 = arith.constant 0.000000e+00 : f32
    %14 = vector.broadcast %cst_12 : f32 to vector<17x128xf32>
    %c181 = arith.constant 181 : index
    %c0_13 = arith.constant 0 : index
    %15 = vector.load %arg10[%c181, %c0_13] : memref<198x128xf32, #tpu.memory_space<vmem>>, vector<17x128xf32>
    tpu.vector_store %arg10[%c181, %c0_13], %14 {strides = array<i32>} : memref<198x128xf32, #tpu.memory_space<vmem>>, vector<17x128xf32>,
    %cst_14 = arith.constant 0.000000e+00 : f32
    %16 = vector.broadcast %cst_14 : f32 to vector<2x128xf32>
    %17 = vector.extract_strided_slice %11 {offsets = [0, 0], sizes = [12, 128], strides = [1, 1]} : vector<144x128xf32> to vector<12x128xf32>
    %c15 = arith.constant 15 : index
    %c0_15 = arith.constant 0 : index
    %18 = vector.load %arg10[%c15, %c0_15] : memref<198x128xf32, #tpu.memory_space<vmem>>, vector<12x128xf32>
    tpu.vector_store %arg10[%c15, %c0_15], %17 {strides = array<i32>} : memref<198x128xf32, #tpu.memory_space<vmem>>, vector<12x128xf32>,
    %c27 = arith.constant 27 : index
    %c0_16 = arith.constant 0 : index
    %19 = vector.load %arg10[%c27, %c0_16] : memref<198x128xf32, #tpu.memory_space<vmem>>, vector<2x128xf32>
    tpu.vector_store %arg10[%c27, %c0_16], %16 {strides = array<i32>} : memref<198x128xf32, #tpu.memory_space<vmem>>, vector<2x128xf32>,
    %20 = vector.extract_strided_slice %11 {offsets = [12, 0], sizes = [12, 128], strides = [1, 1]} : vector<144x128xf32> to vector<12x128xf32>
    %c29 = arith.constant 29 : index
    %c0_17 = arith.constant 0 : index
    %21 = vector.load %arg10[%c29, %c0_17] : memref<198x128xf32, #tpu.memory_space<vmem>>, vector<12x128xf32>
    tpu.vector_store %arg10[%c29, %c0_17], %20 {strides = array<i32>} : memref<198x128xf32, #tpu.memory_space<vmem>>, vector<12x128xf32>,
    %c41 = arith.constant 41 : index
    %c0_18 = arith.constant 0 : index
    %22 = vector.load %arg10[%c41, %c0_18] : memref<198x128xf32, #tpu.memory_space<vmem>>, vector<2x128xf32>
    tpu.vector_store %arg10[%c41, %c0_18], %16 {strides = array<i32>} : memref<198x128xf32, #tpu.memory_space<vmem>>, vector<2x128xf32>,
    %23 = vector.extract_strided_slice %11 {offsets = [24, 0], sizes = [12, 128], strides = [1, 1]} : vector<144x128xf32> to vector<12x128xf32>
    %c43 = arith.constant 43 : index
    %c0_19 = arith.constant 0 : index
    %24 = vector.load %arg10[%c43, %c0_19] : memref<198x128xf32, #tpu.memory_space<vmem>>, vector<12x128xf32>
    tpu.vector_store %arg10[%c43, %c0_19], %23 {strides = array<i32>} : memref<198x128xf32, #tpu.memory_space<vmem>>, vector<12x128xf32>,
    %c55 = arith.constant 55 : index
    %c0_20 = arith.constant 0 : index
    %25 = vector.load %arg10[%c55, %c0_20] : memref<198x128xf32, #tpu.memory_space<vmem>>, vector<2x128xf32>
    tpu.vector_store %arg10[%c55, %c0_20], %16 {strides = array<i32>} : memref<198x128xf32, #tpu.memory_space<vmem>>, vector<2x128xf32>,
    %26 = vector.extract_strided_slice %11 {offsets = [36, 0], sizes = [12, 128], strides = [1, 1]} : vector<144x128xf32> to vector<12x128xf32>
    %c57 = arith.constant 57 : index
    %c0_21 = arith.constant 0 : index
    %27 = vector.load %arg10[%c57, %c0_21] : memref<198x128xf32, #tpu.memory_space<vmem>>, vector<12x128xf32>
    tpu.vector_store %arg10[%c57, %c0_21], %26 {strides = array<i32>} : memref<198x128xf32, #tpu.memory_space<vmem>>, vector<12x128xf32>,
    %c69 = arith.constant 69 : index
    %c0_22 = arith.constant 0 : index
    %28 = vector.load %arg10[%c69, %c0_22] : memref<198x128xf32, #tpu.memory_space<vmem>>, vector<2x128xf32>
    tpu.vector_store %arg10[%c69, %c0_22], %16 {strides = array<i32>} : memref<198x128xf32, #tpu.memory_space<vmem>>, vector<2x128xf32>,
    %29 = vector.extract_strided_slice %11 {offsets = [48, 0], sizes = [12, 128], strides = [1, 1]} : vector<144x128xf32> to vector<12x128xf32>
    %c71 = arith.constant 71 : index
    %c0_23 = arith.constant 0 : index
    %30 = vector.load %arg10[%c71, %c0_23] : memref<198x128xf32, #tpu.memory_space<vmem>>, vector<12x128xf32>
    tpu.vector_store %arg10[%c71, %c0_23], %29 {strides = array<i32>} : memref<198x128xf32, #tpu.memory_space<vmem>>, vector<12x128xf32>,
    %c83 = arith.constant 83 : index
    %c0_24 = arith.constant 0 : index
    %31 = vector.load %arg10[%c83, %c0_24] : memref<198x128xf32, #tpu.memory_space<vmem>>, vector<2x128xf32>
    tpu.vector_store %arg10[%c83, %c0_24], %16 {strides = array<i32>} : memref<198x128xf32, #tpu.memory_space<vmem>>, vector<2x128xf32>,
    %32 = vector.extract_strided_slice %11 {offsets = [60, 0], sizes = [12, 128], strides = [1, 1]} : vector<144x128xf32> to vector<12x128xf32>
    %c85 = arith.constant 85 : index
    %c0_25 = arith.constant 0 : index
    %33 = vector.load %arg10[%c85, %c0_25] : memref<198x128xf32, #tpu.memory_space<vmem>>, vector<12x128xf32>
    tpu.vector_store %arg10[%c85, %c0_25], %32 {strides = array<i32>} : memref<198x128xf32, #tpu.memory_space<vmem>>, vector<12x128xf32>,
    %c97 = arith.constant 97 : index
    %c0_26 = arith.constant 0 : index
    %34 = vector.load %arg10[%c97, %c0_26] : memref<198x128xf32, #tpu.memory_space<vmem>>, vector<2x128xf32>
    tpu.vector_store %arg10[%c97, %c0_26], %16 {strides = array<i32>} : memref<198x128xf32, #tpu.memory_space<vmem>>, vector<2x128xf32>,
    %35 = vector.extract_strided_slice %11 {offsets = [72, 0], sizes = [12, 128], strides = [1, 1]} : vector<144x128xf32> to vector<12x128xf32>
    %c99 = arith.constant 99 : index
    %c0_27 = arith.constant 0 : index
    %36 = vector.load %arg10[%c99, %c0_27] : memref<198x128xf32, #tpu.memory_space<vmem>>, vector<12x128xf32>
    tpu.vector_store %arg10[%c99, %c0_27], %35 {strides = array<i32>} : memref<198x128xf32, #tpu.memory_space<vmem>>, vector<12x128xf32>,
    %c111 = arith.constant 111 : index
    %c0_28 = arith.constant 0 : index
    %37 = vector.load %arg10[%c111, %c0_28] : memref<198x128xf32, #tpu.memory_space<vmem>>, vector<2x128xf32>
    tpu.vector_store %arg10[%c111, %c0_28], %16 {strides = array<i32>} : memref<198x128xf32, #tpu.memory_space<vmem>>, vector<2x128xf32>,
    %38 = vector.extract_strided_slice %11 {offsets = [84, 0], sizes = [12, 128], strides = [1, 1]} : vector<144x128xf32> to vector<12x128xf32>
    %c113 = arith.constant 113 : index
    %c0_29 = arith.constant 0 : index
    %39 = vector.load %arg10[%c113, %c0_29] : memref<198x128xf32, #tpu.memory_space<vmem>>, vector<12x128xf32>
    tpu.vector_store %arg10[%c113, %c0_29], %38 {strides = array<i32>} : memref<198x128xf32, #tpu.memory_space<vmem>>, vector<12x128xf32>,
    %c125 = arith.constant 125 : index
    %c0_30 = arith.constant 0 : index
    %40 = vector.load %arg10[%c125, %c0_30] : memref<198x128xf32, #tpu.memory_space<vmem>>, vector<2x128xf32>
    tpu.vector_store %arg10[%c125, %c0_30], %16 {strides = array<i32>} : memref<198x128xf32, #tpu.memory_space<vmem>>, vector<2x128xf32>,
    %41 = vector.extract_strided_slice %11 {offsets = [96, 0], sizes = [12, 128], strides = [1, 1]} : vector<144x128xf32> to vector<12x128xf32>
    %c127 = arith.constant 127 : index
    %c0_31 = arith.constant 0 : index
    %42 = vector.load %arg10[%c127, %c0_31] : memref<198x128xf32, #tpu.memory_space<vmem>>, vector<12x128xf32>
    tpu.vector_store %arg10[%c127, %c0_31], %41 {strides = array<i32>} : memref<198x128xf32, #tpu.memory_space<vmem>>, vector<12x128xf32>,
    %c139 = arith.constant 139 : index
    %c0_32 = arith.constant 0 : index
    %43 = vector.load %arg10[%c139, %c0_32] : memref<198x128xf32, #tpu.memory_space<vmem>>, vector<2x128xf32>
    tpu.vector_store %arg10[%c139, %c0_32], %16 {strides = array<i32>} : memref<198x128xf32, #tpu.memory_space<vmem>>, vector<2x128xf32>,
    %44 = vector.extract_strided_slice %11 {offsets = [108, 0], sizes = [12, 128], strides = [1, 1]} : vector<144x128xf32> to vector<12x128xf32>
    %c141 = arith.constant 141 : index
    %c0_33 = arith.constant 0 : index
    %45 = vector.load %arg10[%c141, %c0_33] : memref<198x128xf32, #tpu.memory_space<vmem>>, vector<12x128xf32>
    tpu.vector_store %arg10[%c141, %c0_33], %44 {strides = array<i32>} : memref<198x128xf32, #tpu.memory_space<vmem>>, vector<12x128xf32>,
    %c153 = arith.constant 153 : index
    %c0_34 = arith.constant 0 : index
    %46 = vector.load %arg10[%c153, %c0_34] : memref<198x128xf32, #tpu.memory_space<vmem>>, vector<2x128xf32>
    tpu.vector_store %arg10[%c153, %c0_34], %16 {strides = array<i32>} : memref<198x128xf32, #tpu.memory_space<vmem>>, vector<2x128xf32>,
    %47 = vector.extract_strided_slice %11 {offsets = [120, 0], sizes = [12, 128], strides = [1, 1]} : vector<144x128xf32> to vector<12x128xf32>
    %c155 = arith.constant 155 : index
    %c0_35 = arith.constant 0 : index
    %48 = vector.load %arg10[%c155, %c0_35] : memref<198x128xf32, #tpu.memory_space<vmem>>, vector<12x128xf32>
    tpu.vector_store %arg10[%c155, %c0_35], %47 {strides = array<i32>} : memref<198x128xf32, #tpu.memory_space<vmem>>, vector<12x128xf32>,
    %c167 = arith.constant 167 : index
    %c0_36 = arith.constant 0 : index
    %49 = vector.load %arg10[%c167, %c0_36] : memref<198x128xf32, #tpu.memory_space<vmem>>, vector<2x128xf32>
    tpu.vector_store %arg10[%c167, %c0_36], %16 {strides = array<i32>} : memref<198x128xf32, #tpu.memory_space<vmem>>, vector<2x128xf32>,
    %50 = vector.extract_strided_slice %11 {offsets = [132, 0], sizes = [12, 128], strides = [1, 1]} : vector<144x128xf32> to vector<12x128xf32>
    %c169 = arith.constant 169 : index
    %c0_37 = arith.constant 0 : index
    %51 = vector.load %arg10[%c169, %c0_37] : memref<198x128xf32, #tpu.memory_space<vmem>>, vector<12x128xf32>
    tpu.vector_store %arg10[%c169, %c0_37], %50 {strides = array<i32>} : memref<198x128xf32, #tpu.memory_space<vmem>>, vector<12x128xf32>,
    %c0_38 = arith.constant 0 : index
    %c0_39 = arith.constant 0 : index
    %52 = vector.load %arg10[%c0_38, %c0_39] : memref<198x128xf32, #tpu.memory_space<vmem>>, vector<168x128xf32>
    %c0_40 = arith.constant 0 : index
    %c0_41 = arith.constant 0 : index
    %c0_42 = arith.constant 0 : index
    %53 = vector.load %arg6[%c0_40, %c0_41, %c0_42] : memref<9x128x128xf32, #tpu.memory_space<vmem>>, vector<1x128x128xf32>
    %54 = vector.shape_cast %53 : vector<1x128x128xf32> to vector<128x128xf32>
    %cst_43 = arith.constant dense<0.000000e+00> : vector<168x128xf32>
    %55 = tpu.matmul %52, %54, %cst_43 {dimension_numbers = #tpu.dot_dimension_numbers<[1], [0], [0], [1], [0, 0, 1, 1], [], []>} : vector<168x128xf32>, vector<128x128xf32>, vector<168x128xf32> -> vector<168x128xf32>
    %c1 = arith.constant 1 : index
    %c0_44 = arith.constant 0 : index
    %56 = vector.load %arg10[%c1, %c0_44] : memref<198x128xf32, #tpu.memory_space<vmem>>, vector<168x128xf32>
    %c1_45 = arith.constant 1 : index
    %c0_46 = arith.constant 0 : index
    %c0_47 = arith.constant 0 : index
    %57 = vector.load %arg6[%c1_45, %c0_46, %c0_47] : memref<9x128x128xf32, #tpu.memory_space<vmem>>, vector<1x128x128xf32>
    %58 = vector.shape_cast %57 : vector<1x128x128xf32> to vector<128x128xf32>
    %cst_48 = arith.constant dense<0.000000e+00> : vector<168x128xf32>
    %59 = tpu.matmul %56, %58, %cst_48 {dimension_numbers = #tpu.dot_dimension_numbers<[1], [0], [0], [1], [0, 0, 1, 1], [], []>} : vector<168x128xf32>, vector<128x128xf32>, vector<168x128xf32> -> vector<168x128xf32>
    %60 = arith.addf %55, %59 : vector<168x128xf32>
    %c2 = arith.constant 2 : index
    %c0_49 = arith.constant 0 : index
    %61 = vector.load %arg10[%c2, %c0_49] : memref<198x128xf32, #tpu.memory_space<vmem>>, vector<168x128xf32>
    %c2_50 = arith.constant 2 : index
    %c0_51 = arith.constant 0 : index
    %c0_52 = arith.constant 0 : index
    %62 = vector.load %arg6[%c2_50, %c0_51, %c0_52] : memref<9x128x128xf32, #tpu.memory_space<vmem>>, vector<1x128x128xf32>
    %63 = vector.shape_cast %62 : vector<1x128x128xf32> to vector<128x128xf32>
    %cst_53 = arith.constant dense<0.000000e+00> : vector<168x128xf32>
    %64 = tpu.matmul %61, %63, %cst_53 {dimension_numbers = #tpu.dot_dimension_numbers<[1], [0], [0], [1], [0, 0, 1, 1], [], []>} : vector<168x128xf32>, vector<128x128xf32>, vector<168x128xf32> -> vector<168x128xf32>
    %65 = arith.addf %60, %64 : vector<168x128xf32>
    %c14 = arith.constant 14 : index
    %c0_54 = arith.constant 0 : index
    %66 = vector.load %arg10[%c14, %c0_54] : memref<198x128xf32, #tpu.memory_space<vmem>>, vector<168x128xf32>
    %c3 = arith.constant 3 : index
    %c0_55 = arith.constant 0 : index
    %c0_56 = arith.constant 0 : index
    %67 = vector.load %arg6[%c3, %c0_55, %c0_56] : memref<9x128x128xf32, #tpu.memory_space<vmem>>, vector<1x128x128xf32>
    %68 = vector.shape_cast %67 : vector<1x128x128xf32> to vector<128x128xf32>
    %cst_57 = arith.constant dense<0.000000e+00> : vector<168x128xf32>
    %69 = tpu.matmul %66, %68, %cst_57 {dimension_numbers = #tpu.dot_dimension_numbers<[1], [0], [0], [1], [0, 0, 1, 1], [], []>} : vector<168x128xf32>, vector<128x128xf32>, vector<168x128xf32> -> vector<168x128xf32>
    %70 = arith.addf %65, %69 : vector<168x128xf32>
    %c15_58 = arith.constant 15 : index
    %c0_59 = arith.constant 0 : index
    %71 = vector.load %arg10[%c15_58, %c0_59] : memref<198x128xf32, #tpu.memory_space<vmem>>, vector<168x128xf32>
    %c4 = arith.constant 4 : index
    %c0_60 = arith.constant 0 : index
    %c0_61 = arith.constant 0 : index
    %72 = vector.load %arg6[%c4, %c0_60, %c0_61] : memref<9x128x128xf32, #tpu.memory_space<vmem>>, vector<1x128x128xf32>
    %73 = vector.shape_cast %72 : vector<1x128x128xf32> to vector<128x128xf32>
    %cst_62 = arith.constant dense<0.000000e+00> : vector<168x128xf32>
    %74 = tpu.matmul %71, %73, %cst_62 {dimension_numbers = #tpu.dot_dimension_numbers<[1], [0], [0], [1], [0, 0, 1, 1], [], []>} : vector<168x128xf32>, vector<128x128xf32>, vector<168x128xf32> -> vector<168x128xf32>
    %75 = arith.addf %70, %74 : vector<168x128xf32>
    %c16 = arith.constant 16 : index
    %c0_63 = arith.constant 0 : index
    %76 = vector.load %arg10[%c16, %c0_63] : memref<198x128xf32, #tpu.memory_space<vmem>>, vector<168x128xf32>
    %c5 = arith.constant 5 : index
    %c0_64 = arith.constant 0 : index
    %c0_65 = arith.constant 0 : index
    %77 = vector.load %arg6[%c5, %c0_64, %c0_65] : memref<9x128x128xf32, #tpu.memory_space<vmem>>, vector<1x128x128xf32>
    %78 = vector.shape_cast %77 : vector<1x128x128xf32> to vector<128x128xf32>
    %cst_66 = arith.constant dense<0.000000e+00> : vector<168x128xf32>
    %79 = tpu.matmul %76, %78, %cst_66 {dimension_numbers = #tpu.dot_dimension_numbers<[1], [0], [0], [1], [0, 0, 1, 1], [], []>} : vector<168x128xf32>, vector<128x128xf32>, vector<168x128xf32> -> vector<168x128xf32>
    %80 = arith.addf %75, %79 : vector<168x128xf32>
    %c28 = arith.constant 28 : index
    %c0_67 = arith.constant 0 : index
    %81 = vector.load %arg10[%c28, %c0_67] : memref<198x128xf32, #tpu.memory_space<vmem>>, vector<168x128xf32>
    %c6 = arith.constant 6 : index
    %c0_68 = arith.constant 0 : index
    %c0_69 = arith.constant 0 : index
    %82 = vector.load %arg6[%c6, %c0_68, %c0_69] : memref<9x128x128xf32, #tpu.memory_space<vmem>>, vector<1x128x128xf32>
    %83 = vector.shape_cast %82 : vector<1x128x128xf32> to vector<128x128xf32>
    %cst_70 = arith.constant dense<0.000000e+00> : vector<168x128xf32>
    %84 = tpu.matmul %81, %83, %cst_70 {dimension_numbers = #tpu.dot_dimension_numbers<[1], [0], [0], [1], [0, 0, 1, 1], [], []>} : vector<168x128xf32>, vector<128x128xf32>, vector<168x128xf32> -> vector<168x128xf32>
    %85 = arith.addf %80, %84 : vector<168x128xf32>
    %c29_71 = arith.constant 29 : index
    %c0_72 = arith.constant 0 : index
    %86 = vector.load %arg10[%c29_71, %c0_72] : memref<198x128xf32, #tpu.memory_space<vmem>>, vector<168x128xf32>
    %c7 = arith.constant 7 : index
    %c0_73 = arith.constant 0 : index
    %c0_74 = arith.constant 0 : index
    %87 = vector.load %arg6[%c7, %c0_73, %c0_74] : memref<9x128x128xf32, #tpu.memory_space<vmem>>, vector<1x128x128xf32>
    %88 = vector.shape_cast %87 : vector<1x128x128xf32> to vector<128x128xf32>
    %cst_75 = arith.constant dense<0.000000e+00> : vector<168x128xf32>
    %89 = tpu.matmul %86, %88, %cst_75 {dimension_numbers = #tpu.dot_dimension_numbers<[1], [0], [0], [1], [0, 0, 1, 1], [], []>} : vector<168x128xf32>, vector<128x128xf32>, vector<168x128xf32> -> vector<168x128xf32>
    %90 = arith.addf %85, %89 : vector<168x128xf32>
    %c30 = arith.constant 30 : index
    %c0_76 = arith.constant 0 : index
    %91 = vector.load %arg10[%c30, %c0_76] : memref<198x128xf32, #tpu.memory_space<vmem>>, vector<168x128xf32>
    %c8 = arith.constant 8 : index
    %c0_77 = arith.constant 0 : index
    %c0_78 = arith.constant 0 : index
    %92 = vector.load %arg6[%c8, %c0_77, %c0_78] : memref<9x128x128xf32, #tpu.memory_space<vmem>>, vector<1x128x128xf32>
    %93 = vector.shape_cast %92 : vector<1x128x128xf32> to vector<128x128xf32>
    %cst_79 = arith.constant dense<0.000000e+00> : vector<168x128xf32>
    %94 = tpu.matmul %91, %93, %cst_79 {dimension_numbers = #tpu.dot_dimension_numbers<[1], [0], [0], [1], [0, 0, 1, 1], [], []>} : vector<168x128xf32>, vector<128x128xf32>, vector<168x128xf32> -> vector<168x128xf32>
    %95 = arith.addf %90, %94 : vector<168x128xf32>
    %c0_80 = arith.constant 0 : index
    %c0_81 = arith.constant 0 : index
    %96 = vector.load %arg7[%c0_80, %c0_81] : memref<1x128xf32, #tpu.memory_space<vmem>>, vector<1x128xf32>
    %97 = vector.broadcast %96 : vector<1x128xf32> to vector<168x128xf32>
    %98 = arith.mulf %95, %97 : vector<168x128xf32>
    %c0_82 = arith.constant 0 : index
    %c0_83 = arith.constant 0 : index
    %99 = vector.load %arg8[%c0_82, %c0_83] : memref<1x128xf32, #tpu.memory_space<vmem>>, vector<1x128xf32>
    %100 = vector.broadcast %99 : vector<1x128xf32> to vector<168x128xf32>
    %101 = arith.addf %98, %100 : vector<168x128xf32>
    %102 = vector.extract_strided_slice %101 {offsets = [0, 0], sizes = [12, 128], strides = [1, 1]} : vector<168x128xf32> to vector<12x128xf32>
    %c0_84 = arith.constant 0 : index
    %c0_85 = arith.constant 0 : index
    %c0_86 = arith.constant 0 : index
    %103 = vector.load %arg9[%c0_84, %c0_85, %c0_86] : memref<1x144x128xf32, #tpu.memory_space<vmem>>, vector<1x12x128xf32>
    %104 = vector.shape_cast %103 : vector<1x12x128xf32> to vector<12x128xf32>
    %105 = vector.shape_cast %102 : vector<12x128xf32> to vector<1x12x128xf32>
    tpu.vector_store %arg9[%c0_84, %c0_85, %c0_86], %105 {strides = array<i32>} : memref<1x144x128xf32, #tpu.memory_space<vmem>>, vector<1x12x128xf32>,
    %106 = vector.extract_strided_slice %101 {offsets = [14, 0], sizes = [12, 128], strides = [1, 1]} : vector<168x128xf32> to vector<12x128xf32>
    %c0_87 = arith.constant 0 : index
    %c12 = arith.constant 12 : index
    %c0_88 = arith.constant 0 : index
    %107 = vector.load %arg9[%c0_87, %c12, %c0_88] : memref<1x144x128xf32, #tpu.memory_space<vmem>>, vector<1x12x128xf32>
    %108 = vector.shape_cast %107 : vector<1x12x128xf32> to vector<12x128xf32>
    %109 = vector.shape_cast %106 : vector<12x128xf32> to vector<1x12x128xf32>
    tpu.vector_store %arg9[%c0_87, %c12, %c0_88], %109 {strides = array<i32>} : memref<1x144x128xf32, #tpu.memory_space<vmem>>, vector<1x12x128xf32>,
    %110 = vector.extract_strided_slice %101 {offsets = [28, 0], sizes = [12, 128], strides = [1, 1]} : vector<168x128xf32> to vector<12x128xf32>
    %c0_89 = arith.constant 0 : index
    %c24 = arith.constant 24 : index
    %c0_90 = arith.constant 0 : index
    %111 = vector.load %arg9[%c0_89, %c24, %c0_90] : memref<1x144x128xf32, #tpu.memory_space<vmem>>, vector<1x12x128xf32>
    %112 = vector.shape_cast %111 : vector<1x12x128xf32> to vector<12x128xf32>
    %113 = vector.shape_cast %110 : vector<12x128xf32> to vector<1x12x128xf32>
    tpu.vector_store %arg9[%c0_89, %c24, %c0_90], %113 {strides = array<i32>} : memref<1x144x128xf32, #tpu.memory_space<vmem>>, vector<1x12x128xf32>,
    %114 = vector.extract_strided_slice %101 {offsets = [42, 0], sizes = [12, 128], strides = [1, 1]} : vector<168x128xf32> to vector<12x128xf32>
    %c0_91 = arith.constant 0 : index
    %c36 = arith.constant 36 : index
    %c0_92 = arith.constant 0 : index
    %115 = vector.load %arg9[%c0_91, %c36, %c0_92] : memref<1x144x128xf32, #tpu.memory_space<vmem>>, vector<1x12x128xf32>
    %116 = vector.shape_cast %115 : vector<1x12x128xf32> to vector<12x128xf32>
    %117 = vector.shape_cast %114 : vector<12x128xf32> to vector<1x12x128xf32>
    tpu.vector_store %arg9[%c0_91, %c36, %c0_92], %117 {strides = array<i32>} : memref<1x144x128xf32, #tpu.memory_space<vmem>>, vector<1x12x128xf32>,
    %118 = vector.extract_strided_slice %101 {offsets = [56, 0], sizes = [12, 128], strides = [1, 1]} : vector<168x128xf32> to vector<12x128xf32>
    %c0_93 = arith.constant 0 : index
    %c48 = arith.constant 48 : index
    %c0_94 = arith.constant 0 : index
    %119 = vector.load %arg9[%c0_93, %c48, %c0_94] : memref<1x144x128xf32, #tpu.memory_space<vmem>>, vector<1x12x128xf32>
    %120 = vector.shape_cast %119 : vector<1x12x128xf32> to vector<12x128xf32>
    %121 = vector.shape_cast %118 : vector<12x128xf32> to vector<1x12x128xf32>
    tpu.vector_store %arg9[%c0_93, %c48, %c0_94], %121 {strides = array<i32>} : memref<1x144x128xf32, #tpu.memory_space<vmem>>, vector<1x12x128xf32>,
    %122 = vector.extract_strided_slice %101 {offsets = [70, 0], sizes = [12, 128], strides = [1, 1]} : vector<168x128xf32> to vector<12x128xf32>
    %c0_95 = arith.constant 0 : index
    %c60 = arith.constant 60 : index
    %c0_96 = arith.constant 0 : index
    %123 = vector.load %arg9[%c0_95, %c60, %c0_96] : memref<1x144x128xf32, #tpu.memory_space<vmem>>, vector<1x12x128xf32>
    %124 = vector.shape_cast %123 : vector<1x12x128xf32> to vector<12x128xf32>
    %125 = vector.shape_cast %122 : vector<12x128xf32> to vector<1x12x128xf32>
    tpu.vector_store %arg9[%c0_95, %c60, %c0_96], %125 {strides = array<i32>} : memref<1x144x128xf32, #tpu.memory_space<vmem>>, vector<1x12x128xf32>,
    %126 = vector.extract_strided_slice %101 {offsets = [84, 0], sizes = [12, 128], strides = [1, 1]} : vector<168x128xf32> to vector<12x128xf32>
    %c0_97 = arith.constant 0 : index
    %c72 = arith.constant 72 : index
    %c0_98 = arith.constant 0 : index
    %127 = vector.load %arg9[%c0_97, %c72, %c0_98] : memref<1x144x128xf32, #tpu.memory_space<vmem>>, vector<1x12x128xf32>
    %128 = vector.shape_cast %127 : vector<1x12x128xf32> to vector<12x128xf32>
    %129 = vector.shape_cast %126 : vector<12x128xf32> to vector<1x12x128xf32>
    tpu.vector_store %arg9[%c0_97, %c72, %c0_98], %129 {strides = array<i32>} : memref<1x144x128xf32, #tpu.memory_space<vmem>>, vector<1x12x128xf32>,
    %130 = vector.extract_strided_slice %101 {offsets = [98, 0], sizes = [12, 128], strides = [1, 1]} : vector<168x128xf32> to vector<12x128xf32>
    %c0_99 = arith.constant 0 : index
    %c84 = arith.constant 84 : index
    %c0_100 = arith.constant 0 : index
    %131 = vector.load %arg9[%c0_99, %c84, %c0_100] : memref<1x144x128xf32, #tpu.memory_space<vmem>>, vector<1x12x128xf32>
    %132 = vector.shape_cast %131 : vector<1x12x128xf32> to vector<12x128xf32>
    %133 = vector.shape_cast %130 : vector<12x128xf32> to vector<1x12x128xf32>
    tpu.vector_store %arg9[%c0_99, %c84, %c0_100], %133 {strides = array<i32>} : memref<1x144x128xf32, #tpu.memory_space<vmem>>, vector<1x12x128xf32>,
    %134 = vector.extract_strided_slice %101 {offsets = [112, 0], sizes = [12, 128], strides = [1, 1]} : vector<168x128xf32> to vector<12x128xf32>
    %c0_101 = arith.constant 0 : index
    %c96 = arith.constant 96 : index
    %c0_102 = arith.constant 0 : index
    %135 = vector.load %arg9[%c0_101, %c96, %c0_102] : memref<1x144x128xf32, #tpu.memory_space<vmem>>, vector<1x12x128xf32>
    %136 = vector.shape_cast %135 : vector<1x12x128xf32> to vector<12x128xf32>
    %137 = vector.shape_cast %134 : vector<12x128xf32> to vector<1x12x128xf32>
    tpu.vector_store %arg9[%c0_101, %c96, %c0_102], %137 {strides = array<i32>} : memref<1x144x128xf32, #tpu.memory_space<vmem>>, vector<1x12x128xf32>,
    %138 = vector.extract_strided_slice %101 {offsets = [126, 0], sizes = [12, 128], strides = [1, 1]} : vector<168x128xf32> to vector<12x128xf32>
    %c0_103 = arith.constant 0 : index
    %c108 = arith.constant 108 : index
    %c0_104 = arith.constant 0 : index
    %139 = vector.load %arg9[%c0_103, %c108, %c0_104] : memref<1x144x128xf32, #tpu.memory_space<vmem>>, vector<1x12x128xf32>
    %140 = vector.shape_cast %139 : vector<1x12x128xf32> to vector<12x128xf32>
    %141 = vector.shape_cast %138 : vector<12x128xf32> to vector<1x12x128xf32>
    tpu.vector_store %arg9[%c0_103, %c108, %c0_104], %141 {strides = array<i32>} : memref<1x144x128xf32, #tpu.memory_space<vmem>>, vector<1x12x128xf32>,
    %142 = vector.extract_strided_slice %101 {offsets = [140, 0], sizes = [12, 128], strides = [1, 1]} : vector<168x128xf32> to vector<12x128xf32>
    %c0_105 = arith.constant 0 : index
    %c120 = arith.constant 120 : index
    %c0_106 = arith.constant 0 : index
    %143 = vector.load %arg9[%c0_105, %c120, %c0_106] : memref<1x144x128xf32, #tpu.memory_space<vmem>>, vector<1x12x128xf32>
    %144 = vector.shape_cast %143 : vector<1x12x128xf32> to vector<12x128xf32>
    %145 = vector.shape_cast %142 : vector<12x128xf32> to vector<1x12x128xf32>
    tpu.vector_store %arg9[%c0_105, %c120, %c0_106], %145 {strides = array<i32>} : memref<1x144x128xf32, #tpu.memory_space<vmem>>, vector<1x12x128xf32>,
    %146 = vector.extract_strided_slice %101 {offsets = [154, 0], sizes = [12, 128], strides = [1, 1]} : vector<168x128xf32> to vector<12x128xf32>
    %c0_107 = arith.constant 0 : index
    %c132 = arith.constant 132 : index
    %c0_108 = arith.constant 0 : index
    %147 = vector.load %arg9[%c0_107, %c132, %c0_108] : memref<1x144x128xf32, #tpu.memory_space<vmem>>, vector<1x12x128xf32>
    %148 = vector.shape_cast %147 : vector<1x12x128xf32> to vector<12x128xf32>
    %149 = vector.shape_cast %146 : vector<12x128xf32> to vector<1x12x128xf32>
    tpu.vector_store %arg9[%c0_107, %c132, %c0_108], %149 {strides = array<i32>} : memref<1x144x128xf32, #tpu.memory_space<vmem>>, vector<1x12x128xf32>,
    return
  }
  func.func @transform_0(%arg0: i32, %arg1: i32) -> (i32, i32, i32) {
    %c0_i32 = arith.constant 0 : i32
    %c0_i32_0 = arith.constant 0 : i32
    %c0_i32_1 = arith.constant 0 : i32
    return %arg0, %c0_i32, %c0_i32_0 : i32, i32, i32
  }
  func.func @transform_1(%arg0: i32, %arg1: i32) -> (i32, i32) {
    %c0_i32 = arith.constant 0 : i32
    %c0_i32_0 = arith.constant 0 : i32
    %c0_i32_1 = arith.constant 0 : i32
    return %c0_i32, %c0_i32_0 : i32, i32
  }
  func.func @transform_2(%arg0: i32, %arg1: i32) -> (i32, i32) {
    %c0_i32 = arith.constant 0 : i32
    %c0_i32_0 = arith.constant 0 : i32
    %c0_i32_1 = arith.constant 0 : i32
    return %c0_i32, %c0_i32_0 : i32, i32
  }
  func.func @transform_3(%arg0: i32, %arg1: i32) -> (i32, i32) {
    %c0_i32 = arith.constant 0 : i32
    %c0_i32_0 = arith.constant 0 : i32
    %c0_i32_1 = arith.constant 0 : i32
    return %c0_i32, %c0_i32_0 : i32, i32
  }
  func.func @transform_4(%arg0: i32, %arg1: i32) -> (i32, i32, i32) {
    %c0_i32 = arith.constant 0 : i32
    %c0_i32_0 = arith.constant 0 : i32
    %c0_i32_1 = arith.constant 0 : i32
    return %c0_i32, %c0_i32_0, %arg1 : i32, i32, i32
  }
  func.func @transform_5(%arg0: i32, %arg1: i32) -> (i32, i32) {
    %c0_i32 = arith.constant 0 : i32
    %c0_i32_0 = arith.constant 0 : i32
    return %c0_i32, %arg1 : i32, i32
  }
  func.func @transform_6(%arg0: i32, %arg1: i32) -> (i32, i32) {
    %c0_i32 = arith.constant 0 : i32
    %c0_i32_0 = arith.constant 0 : i32
    return %c0_i32, %arg1 : i32, i32
  }
  func.func @transform_7(%arg0: i32, %arg1: i32) -> (i32, i32, i32) {
    %c0_i32 = arith.constant 0 : i32
    %c0_i32_0 = arith.constant 0 : i32
    return %arg0, %c0_i32, %arg1 : i32, i32, i32
  }
}

</mosaic_0001>

<bundles_post_ra>
// kernel: tpu_custom_call.1
= control target key start
LH: loop header
LB: loop body
LE: loop exit
PB: predicated region body
PF: predicated region fallthrough
CT: control target
= control target key end

     0   :  { %s3233_s0 = inlined_call_operand.hbm [shape: f32[2,144,128], index: 0, kind: input, shape index: {}]   ;;  %s3234_s1 = inlined_call_operand.hbm [shape: f32[128,128], index: 1, kind: input, shape index: {}]   ;;  %s3235_s2 = inlined_call_operand.vmem [shape: f32[1,128], index: 2, kind: input, shape index: {}]   ;;  %s3236_s3 = inlined_call_operand.vmem [shape: f32[1,128], index: 3, kind: input, shape index: {}]   ;;  %s3237_s4 = inlined_call_operand.hbm [shape: f32[9,128,128], index: 4, kind: input, shape index: {}]   ;;  %s3238_s5 = inlined_call_operand.vmem [shape: f32[1,128], index: 5, kind: input, shape index: {}]   ;;  %s3239_s6 = inlined_call_operand.vmem [shape: f32[1,128], index: 6, kind: input, shape index: {}]   ;;  %s3240_s7 = inlined_call_operand.hbm [shape: f32[2,144,128], index: 7, kind: output, shape index: {}]  }
   0x1   :  { %3248 = sst [smem:[#allocation78_spill]] %s3234_s1 }
   0x2   :  { %3249 = sst [smem:[#allocation79_spill]] %s3237_s4 }
   0x3   :  { %12 = vsyncpa [#allocation4], 0 }
   0x4   :  { %14 = vsyncpa [#allocation4 + $0x1], 0 }
   0x5   :  { %15 = vsyncpa [#allocation7], 0 }
   0x6   :  { %16 = vsyncpa [#allocation5], 0 }
   0x7   :  { %18 = vsyncpa [#allocation5 + $0x1], 0  ;;  %s2387_s24 = smov 0   ;;  %s2389_s25 = smov 0  }
   0x8   :  { %s2391_s26 = smov 0   ;;  %s2393_s27 = smov 0  }
   0x9   :  { %s2395_s28 = smov 0   ;;  %s2397_s29 = smov 0  }
   0xa LB: > { %3250 = sst [smem:[#allocation13_spill]] %s2338_s29  ;;  %s2018_s30 = sadd.s32 4294967295, %s2338_s29   ;;  %s2338_s29 = sphi %s2397_s29, %s24_s29   ;;  %s2334_s28 = sphi %s2395_s28, %s3396_s28   ;;  %s2330_s27 = sphi %s2393_s27, %s3395_s27   ;;  %s2326_s26 = sphi %s2391_s26, %s3394_s26   ;;  %s2322_s25 = sphi %s2389_s25, %s3393_s25   ;;  %s2318_s24 = sphi %s2387_s24, %s3392_s24  }
   0xb   : > { %s2019_s8 = sadd.s32 4294967294, %s2338_s29   ;;  %p56_p0 = scmp.ne.s32.totalorder %s2322_s25, %s2318_s24 }
   0xc   : > { %p2421_p1 = scmp.eq.s32.totalorder %s2018_s30, 0  ;;  %p2425_p2 = scmp.eq.s32.totalorder %s2018_s30, 1 }
   0xd   : > { %p229_p3 = scmp.eq.s32.totalorder %s2019_s8, 1  ;;  %p2020_p5 = scmp.ge.s32.totalorder %s2338_s29, 1 }
   0xe   : > { %p2431_p4 = por %p2421_p1, %p56_p0  ;;  %p236_p7 = scmp.lt.s32.totalorder %s2338_s29, 3 }
   0xf   : > { %p2436_p6 = por %p229_p3, %p56_p0  ;;  %s3256_s1 = sld [smem:[#allocation78_spill]] }
  0x10   : > { %p2444_p8 = pnand %p2020_p5, %p236_p7  ;;  %s2340_s17 = smov [#allocation6]  }
  0x11   : > { %s3254_s12 = scalar_select %p2436_p6, 1, 0 }
  0x12   : > { %p2081_p9 = pneg %p2444_p8  ;;  %s249_s18 = sshll.u32 %s2340_s17, 4  ;;  %s250_s18 = int_to_ptr.vmem [resolvable:$true] %s249_s18 }
  0x13   : > { %3255 = sst [smem:[#allocation14_spill]] %s3254_s12  ;;  %p2025_p11 = scmp.ge.s32.totalorder %s2338_s29, 2 }
  0x14   : > { %p2082_p10 = pnand %p2081_p9, %p2421_p1  ;;  %s3258_s4 = sld [smem:[#allocation79_spill]] }
  0x15   : > { %s247_s15 = sshll.u32 %s3256_s1, 4  ;;  %s3241_s22 = smov 128   ;;  %s248_s15 = int_to_ptr.hbm [resolvable:$true] %s247_s15 }
  0x16   : > { %s3242_s23 = smov 8   ;;  %s2343_s30 = smov [#allocation8]  }
  0x17   : > { %2084 = dma.hbm_to_vmem [thread:$0]  (!%p2082_p10), %s248_s15, 2048, %s250_s18, [#allocation7], %s3241_s22, %s3241_s22, %s3242_s23  }
  0x18   : > { %s271_s8 = sshll.u32 %s2343_s30, 4  ;;  %s36_s13 = sadd.s32 1, %s2334_s28  ;;  %s272_s8 = int_to_ptr.vmem [resolvable:$true] %s271_s8 }
  0x19   : > { %s43_s14 = sadd.s32 1, %s2326_s26  ;;  %p38_p12 = scmp.ge.s32.totalorder %s36_s13, 2 }
  0x1a   : > { %s269_s21 = sshll.u32 %s3258_s4, 4  ;;  %p50_p13 = scmp.ne.s32.totalorder %s2326_s26, %s2322_s25  ;;  %s270_s21 = int_to_ptr.hbm [resolvable:$true] %s269_s21 }
  0x1b   : > { %2087 = dma.hbm_to_vmem [thread:$0]  (!%p2082_p10), %s270_s21, 18432, %s272_s8, [#allocation7], %s3241_s22, %s3241_s22, %s3242_s23  }
  0x1c   : > { %p51_p0 = scmp.eq.s32.totalorder %s2338_s29, 0  ;;  %p2098_p3 = scmp.lt.s32.totalorder %s2338_s29, 2 }
  0x1d   : > { %s3398_s13 = smov (%p38_p12, %s36_s13), 0  ;;  %p2472_p7 = por %p2425_p2, %p50_p13 }
  0x1e   : > { %p52_p5 = por %p51_p0, %p50_p13  ;;  %s40_s17 = ssub.s32 %s2334_s28, %s3398_s13 }
  0x1f   : > { %s297_s18 = sand.u32 1, %s2326_s26   ;;  %p41_p9 = scmp.eq.s32.totalorder %s40_s17, 0 }
  0x20   : > { %s2065_s19 = smul.u32 144, %s297_s18  ;;  %p2089_p10 = pnand %p2098_p3, %p52_p5 }
  0x21   : > { %s2480_s20 = scalar_select %p41_p9, %s2326_s26, %s43_s14  }
  0x22   : > { %s2066_s21 = smul.u32 144, %s2334_s28  ;;  %s301_s30 = scalar_lea.vmem [#allocation3], %s2065_s19 }
  0x23   : > { %s309_s8 = sshll.u32 %s301_s30, 4  ;;  %s298_s4 = scalar_lea.sflag [#allocation4], %s297_s18  ;;  %s310_s8 = int_to_ptr.vmem [resolvable:$true] %s309_s8 }
  0x24   : > { %s306_s1 = scalar_lea.hbm %s3233_s0, %s2066_s21  ;;  %s3260_s29 = smov 8  }
  0x25   : > { %s307_s10 = sshll.u32 %s306_s1, 4  ;;  %s3261_s12 = smov 128   ;;  %s308_s10 = int_to_ptr.hbm [resolvable:$true] %s307_s10 }
  0x26   : > { %2091 = dma.hbm_to_vmem [thread:$0]  (!%p2089_p10), %s308_s10, 2304, %s310_s8, %s298_s4, %s3261_s12, %s3261_s12, %s3260_s29  }
  0x27   : > { %321 = sbr.rel (%p2444_p8) target bundleno = 844 (0x34c), region = 48 }
  0x2c   : > { %s2492_s14 = sand.u32 1, %s2322_s25  }
  0x2d   : > { %s2067_s22 = smul.u32 144, %s2492_s14  ;;  %s324_s23 = scalar_lea.sflag [#allocation4], %s2492_s14 }
  0x2f   : > { %s2498_s1 = scalar_lea.vmem [#allocation3], %s2067_s22 }
  0x30   : > { %2305 = dma.done.wait (%p2431_p4), %s324_s23, 2304  }
  0x31   : > { %2307 = vsyncadd (%p2431_p4), %s324_s23, 4294964992 }
  0x32   : > { %2309 = dma.done.wait (%p2421_p1), [#allocation7], 20480  }
  0x33   : > { %2311 = vsyncadd (%p2421_p1), [#allocation7], 4294946816  ;;  %v414_v0 = vld [vmem:[#allocation6 + $0x78] sm:$0xff]  ;;  %v413_v1 = vld [vmem:[#allocation6 + $0x70] sm:$0xff]  ;;  %s3023_s19 = scalar_lea.vmem [#allocation9], %s2067_s22  ;;  %s2068_s21 = smul.u32 144, %s2330_s27 }
  0x34   : > { %415 = vmatpush.msra.mxu0 %v414_v0  ;;  %2033 = vmatpush.msra.mxu3 %v414_v0  ;;  %v412_v2 = vld [vmem:[#allocation6 + $0x68] sm:$0xff]  ;;  %v411_v3 = vld [vmem:[#allocation6 + $0x60] sm:$0xff]  ;;  %v410_v4 = vld [vmem:[#allocation6 + $0x58] sm:$0xff]  ;;  %s1887_s22 = sshll.u32 %s3023_s19, 4  ;;  %s1874_s27 = scalar_lea.sflag [#allocation5], %s2492_s14  ;;  %s1888_s22 = int_to_ptr.vmem [resolvable:$true] %s1887_s22 }
  0x35   : > { %v409_v5 = vld [vmem:[#allocation6 + $0x50] sm:$0xff]  ;;  %v408_v6 = vld [vmem:[#allocation6 + $0x48] sm:$0xff]  ;;  %v407_v7 = vld [vmem:[#allocation6 + $0x40] sm:$0xff]  ;;  %s1886_s10 = scalar_lea.hbm %s3240_s7, %s2068_s21  ;;  %s2272_s11 = scalar_lea.hbm %s3240_s7, 288 }
  0x36   : > { %416 = vmatpush.msra.mxu0 %v413_v1  ;;  %2034 = vmatpush.msra.mxu3 %v413_v1  ;;  %v406_v8 = vld [vmem:[#allocation6 + $0x38] sm:$0xff]  ;;  %v405_v9 = vld [vmem:[#allocation6 + $0x30] sm:$0xff]  ;;  %v404_v10 = vld [vmem:[#allocation6 + $0x28] sm:$0xff]  ;;  %s1889_s23 = sshll.u32 %s1886_s10, 4  ;;  %s1890_s23 = int_to_ptr.hbm [resolvable:$true] %s1889_s23 }
  0x37   : > { %v403_v11 = vld [vmem:[#allocation6 + $0x20] sm:$0xff]  ;;  %v402_v12 = vld [vmem:[#allocation6 + $0x18] sm:$0xff]  ;;  %v401_v13 = vld [vmem:[#allocation6 + $0x10] sm:$0xff] }
  0x38   : > { %417 = vmatpush.msra.mxu0 %v412_v2  ;;  %2035 = vmatpush.msra.mxu3 %v412_v2  ;;  %v400_v14 = vld [vmem:[#allocation6 + $0x8] sm:$0xff]  ;;  %v399_v15 = vld [vmem:[#allocation6] sm:$0xff]  ;;  %v662_v24 = vld [vmem:[#allocation8 + $0xf8] sm:$0xff] }
  0x39   : > { %v381_v16 = vld [vmem:[%s2498_s1] sm:$0xff]  ;;  %v382_v17 = vld [vmem:[%s2498_s1 + $0x8] sm:$0xff]  ;;  %v383_v18 = vld [vmem:[%s2498_s1 + $0x10] sm:$0xff]  ;;  %663 = vmatpush.msra.mxu1 %v662_v24  ;;  %2049 = vmatpush.msra.mxu2 %v662_v24 }
  0x3a   : > { %418 = vmatpush.msra.mxu0 %v411_v3  ;;  %2036 = vmatpush.msra.mxu3 %v411_v3  ;;  %v384_v19 = vld [vmem:[%s2498_s1 + $0x18] sm:$0xff]  ;;  %v385_v20 = vld [vmem:[%s2498_s1 + $0x20] sm:$0xff]  ;;  %v391_v21 = vld [vmem:[%s2498_s1 + $0x50] sm:$0xff] }
  0x3b   : > { %v386_v22 = vld [vmem:[%s2498_s1 + $0x28] sm:$0xff]  ;;  %v392_v23 = vld [vmem:[%s2498_s1 + $0x58] sm:$0xff]  ;;  %v661_v26 = vld [vmem:[#allocation8 + $0xf0] sm:$0xff] }
  0x3c   : > { %419 = vmatpush.msra.mxu0 %v410_v4  ;;  %2037 = vmatpush.msra.mxu3 %v410_v4  ;;  %v860_v25 = vld [vmem:[#allocation8 + $0x178] sm:$0xff]  ;;  %v859_v27 = vld [vmem:[#allocation8 + $0x170] sm:$0xff]  ;;  %v660_v28 = vld [vmem:[#allocation8 + $0xe8] sm:$0xff]  ;;  %v2344_v4 = vmov 0.0  }
  0x3d   : > { %v858_v29 = vld [vmem:[#allocation8 + $0x168] sm:$0xff]  ;;  %664 = vmatpush.msra.mxu1 %v661_v26  ;;  %v387_v30 = vld [vmem:[%s2498_s1 + $0x30] sm:$0xff]  ;;  %v999_v32 = vld [vmem:[#allocation8 + $0x1f8] sm:$0xff]  ;;  %2050 = vmatpush.msra.mxu2 %v661_v26  ;;  %548 = vst [vmem:[#allocation2] sm:$0xff] %v2344_v4 }
  0x3e   : > { %420 = vmatpush.msra.mxu0 %v409_v5  ;;  %2038 = vmatpush.msra.mxu3 %v409_v5  ;;  %v659_v31 = vld [vmem:[#allocation8 + $0xe0] sm:$0xff]  ;;  %v998_v34 = vld [vmem:[#allocation8 + $0x1f0] sm:$0xff]  ;;  %v658_v36 = vld [vmem:[#allocation8 + $0xd8] sm:$0xff]  ;;  %549 = vst [vmem:[#allocation2 + $0x8] sm:$0x7f] %v2344_v4 }
  0x3f   : > { %v393_v33 = vld [vmem:[%s2498_s1 + $0x60] sm:$0xff]  ;;  %665 = vmatpush.msra.mxu1 %v660_v28  ;;  %2051 = vmatpush.msra.mxu2 %v660_v28  ;;  %v997_v37 = vld [vmem:[#allocation8 + $0x1e8] sm:$0xff]  ;;  %v856_v38 = vld [vmem:[#allocation8 + $0x158] sm:$0xff]  ;;  %550 = vst [vmem:[#allocation2 + $0xb5] sm:$0xff] %v2344_v4 }
  0x40   : > { %421 = vmatpush.msra.mxu0 %v408_v6  ;;  %2039 = vmatpush.msra.mxu3 %v408_v6  ;;  %v857_v35 = vld [vmem:[#allocation8 + $0x160] sm:$0xff]  ;;  %v657_v39 = vld [vmem:[#allocation8 + $0xd0] sm:$0xff]  ;;  %v656_v42 = vld [vmem:[#allocation8 + $0xc8] sm:$0xff]  ;;  %551 = vst [vmem:[#allocation2 + $0xbd] sm:$0xff] %v2344_v4 }
  0x41   : > { %666 = vmatpush.msra.mxu1 %v659_v31  ;;  %v996_v40 = vld [vmem:[#allocation8 + $0x1e0] sm:$0xff]  ;;  %v855_v41 = vld [vmem:[#allocation8 + $0x150] sm:$0xff]  ;;  %2052 = vmatpush.msra.mxu2 %v659_v31  ;;  %v995_v43 = vld [vmem:[#allocation8 + $0x1d8] sm:$0xff]  ;;  %552 = vst [vmem:[#allocation2 + $0xc5] sm:$0x1] %v2344_v4 }
  0x42   : > { %422 = vmatpush.msra.mxu0 %v407_v7  ;;  %2040 = vmatpush.msra.mxu3 %v407_v7  ;;  %v388_v44 = vld [vmem:[%s2498_s1 + $0x38] sm:$0xff]  ;;  %v394_v46 = vld [vmem:[%s2498_s1 + $0x68] sm:$0xff]  ;;  %v655_v47 = vld [vmem:[#allocation8 + $0xc0] sm:$0xff]  ;;  %555 = vst [vmem:[#allocation2 + $0x1b] sm:$0x3] %v2344_v4 }
  0x43   : > { %667 = vmatpush.msra.mxu1 %v658_v36  ;;  %v854_v45 = vld [vmem:[#allocation8 + $0x148] sm:$0xff]  ;;  %2053 = vmatpush.msra.mxu2 %v658_v36  ;;  %v853_v48 = vld [vmem:[#allocation8 + $0x140] sm:$0xff]  ;;  %v994_v49 = vld [vmem:[#allocation8 + $0x1d0] sm:$0xff]  ;;  %558 = vst [vmem:[#allocation2 + $0x29] sm:$0x3] %v2344_v4 }
  0x44   : > { %423 = vmatpush.msra.mxu0 %v406_v8  ;;  %2041 = vmatpush.msra.mxu3 %v406_v8  ;;  %v654_v50 = vld [vmem:[#allocation8 + $0xb8] sm:$0xff]  ;;  %v993_v52 = vld [vmem:[#allocation8 + $0x1c8] sm:$0xff]  ;;  %v653_v53 = vld [vmem:[#allocation8 + $0xb0] sm:$0xff]  ;;  %561 = vst [vmem:[#allocation2 + $0x37] sm:$0x3] %v2344_v4 }
  0x45   : > { %668 = vmatpush.msra.mxu1 %v657_v39  ;;  %2054 = vmatpush.msra.mxu2 %v657_v39  ;;  %v852_v51 = vld [vmem:[#allocation8 + $0x138] sm:$0xff]  ;;  %v851_v54 = vld [vmem:[#allocation8 + $0x130] sm:$0xff]  ;;  %v992_v55 = vld [vmem:[#allocation8 + $0x1c0] sm:$0xff]  ;;  %564 = vst [vmem:[#allocation2 + $0x45] sm:$0x3] %v2344_v4 }
  0x46   : > { %424 = vmatpush.msra.mxu0 %v405_v9  ;;  %2042 = vmatpush.msra.mxu3 %v405_v9  ;;  %v652_v56 = vld [vmem:[#allocation8 + $0xa8] sm:$0xff]  ;;  %v389_v57 = vld [vmem:[%s2498_s1 + $0x40] sm:$0xff]  ;;  %v395_v59 = vld [vmem:[%s2498_s1 + $0x70] sm:$0xff]  ;;  %567 = vst [vmem:[#allocation2 + $0x53] sm:$0x3] %v2344_v4 }
  0x47   : > { %669 = vmatpush.msra.mxu1 %v656_v42  ;;  %2055 = vmatpush.msra.mxu2 %v656_v42  ;;  %v850_v58 = vld [vmem:[#allocation8 + $0x128] sm:$0xff]  ;;  %v651_v60 = vld [vmem:[#allocation8 + $0xa0] sm:$0xff]  ;;  %v650_v2 = vld [vmem:[#allocation8 + $0x98] sm:$0xff]  ;;  %570 = vst [vmem:[#allocation2 + $0x61] sm:$0x3] %v2344_v4 }
  0x48   : > { %425 = vmatpush.msra.mxu0 %v404_v10  ;;  %2043 = vmatpush.msra.mxu3 %v404_v10  ;;  %v849_v61 = vld [vmem:[#allocation8 + $0x120] sm:$0xff]  ;;  %v390_v62 = vld [vmem:[%s2498_s1 + $0x48] sm:$0xff]  ;;  %v396_v63 = vld [vmem:[%s2498_s1 + $0x78] sm:$0xff]  ;;  %573 = vst [vmem:[#allocation2 + $0x6f] sm:$0x3] %v2344_v4 }
  0x49   : > { %670 = vmatpush.msra.mxu1 %v655_v47  ;;  %2056 = vmatpush.msra.mxu2 %v655_v47  ;;  %v397_v0 = vld [vmem:[%s2498_s1 + $0x80] sm:$0xff]  ;;  %v398_v1 = vld [vmem:[%s2498_s1 + $0x88] sm:$0xff]  ;;  %576 = vst [vmem:[#allocation2 + $0x7d] sm:$0x3] %v2344_v4  ;;  %s2266_s1 = sshra.s32 %s1890_s23, 4  ;;  %s2267_s1 = int_to_ptr.hbm [resolvable:$true] %s2266_s1 }
  0x4a   : > { %426 = vmatpush.msra.mxu0 %v403_v11  ;;  %2044 = vmatpush.msra.mxu3 %v403_v11  ;;  %v848_v3 = vld [vmem:[#allocation8 + $0x118] sm:$0xff]  ;;  %v649_v6 = vld [vmem:[#allocation8 + $0x90] sm:$0xff]  ;;  %v648_v9 = vld [vmem:[#allocation8 + $0x88] sm:$0xff]  ;;  %579 = vst [vmem:[#allocation2 + $0x8b] sm:$0x3] %v2344_v4  ;;  %s2268_s4 = scalar_lea.hbm %s2267_s1, 144  ;;  %p2273_p8 = scmp.lt.s32.totalorder %s2267_s1, %s3240_s7 }
  0x4b   : > { %671 = vmatpush.msra.mxu1 %v654_v50  ;;  %2057 = vmatpush.msra.mxu2 %v654_v50  ;;  %v991_v5 = vld [vmem:[#allocation8 + $0x1b8] sm:$0xff]  ;;  %v847_v7 = vld [vmem:[#allocation8 + $0x110] sm:$0xff]  ;;  %v846_v10 = vld [vmem:[#allocation8 + $0x108] sm:$0xff]  ;;  %582 = vst [vmem:[#allocation2 + $0x99] sm:$0x3] %v2344_v4  ;;  %p2269_p1 = scmp.ne.s32.totalorder %s2267_s1, %s2268_s4  ;;  %p2274_p12 = scmp.lt.s32.totalorder %s2272_s11, %s2268_s4 }
  0x4c   : > { %427 = vmatpush.msra.mxu0 %v402_v12  ;;  %2045 = vmatpush.msra.mxu3 %v402_v12  ;;  %v990_v8 = vld [vmem:[#allocation8 + $0x1b0] sm:$0xff]  ;;  %v989_v11 = vld [vmem:[#allocation8 + $0x1a8] sm:$0xff]  ;;  %v647_v12 = vld [vmem:[#allocation8 + $0x80] sm:$0xff]  ;;  %585 = vst [vmem:[#allocation2 + $0xa7] sm:$0x3] %v2344_v4 }
  0x4d   : > { %672 = vmatpush.msra.mxu1 %v653_v53  ;;  %2058 = vmatpush.msra.mxu2 %v653_v53  ;;  %v1138_v42 = vld [vmem:[#allocation8 + $0x278] sm:$0xff]  ;;  %p2270_p2 = pnand %p2269_p1, %p2472_p7  ;;  %p2275_p13 = por %p2274_p12, %p2273_p8 }
  0x4e   : > { %428 = vmatpush.msra.mxu0 %v401_v13  ;;  %2046 = vmatpush.msra.mxu3 %v401_v13  ;;  %v845_v13 = vld [vmem:[#allocation8 + $0x100] sm:$0xff]  ;;  %v1134_v53 = vld [vmem:[#allocation8 + $0x258] sm:$0xff] }
  0x4f   : > { %673 = vmatpush.msra.mxu1 %v652_v56  ;;  %2059 = vmatpush.msra.mxu2 %v652_v56  ;;  %p2271_p4 = pneg %p2270_p2 }
  0x50   : > { %429 = vmatpush.msra.mxu0 %v400_v14  ;;  %2047 = vmatpush.msra.mxu3 %v400_v14  ;;  %v988_v14 = vld [vmem:[#allocation8 + $0x1a0] sm:$0xff] }
  0x51   : > { %674 = vmatpush.msra.mxu1 %v651_v60  ;;  %2060 = vmatpush.msra.mxu2 %v651_v60  ;;  %p2276_p0 = pnand %p2275_p13, %p2271_p4 }
  0x52   : > { %430 = vmatpush.msra.mxu0 %v399_v15  ;;  %2048 = vmatpush.msra.mxu3 %v399_v15  ;;  %v625_v15 = vld [vmem:[#allocation2 + $0x1] sm:$0xff] }
  0x53   : > { %431 = vmatmul.f32.vlgmr.msra.gmra.mxu0 %v381_v16  ;;  %461 = vmatmul.f32.vlgmr.msra.gmra.mxu3 %v391_v21  ;;  %v823_v16 = vld [vmem:[#allocation2 + $0x2] sm:$0xff]  ;;  %v2545_v21 = vld [vmem:[%s3235_s2] ss:$0 sm:$0xff] }
  0x54   : > { %861 = vmatpush.msrb.mxu3 %v860_v25  ;;  %1000 = vmatpush.msrb.mxu0 %v999_v32 }
  0x55   : > { %675 = vmatpush.msra.mxu1 %v650_v2  ;;  %2061 = vmatpush.msra.mxu2 %v650_v2 }
  0x56   : > { %862 = vmatpush.msrb.mxu3 %v859_v27  ;;  %1001 = vmatpush.msrb.mxu0 %v998_v34 }
  0x57   : > { %676 = vmatpush.msra.mxu1 %v649_v6  ;;  %2062 = vmatpush.msra.mxu2 %v649_v6 }
  0x58   : > { %863 = vmatpush.msrb.mxu3 %v858_v29  ;;  %1002 = vmatpush.msrb.mxu0 %v997_v37 }
  0x59   : > { %677 = vmatpush.msra.mxu1 %v648_v9  ;;  %2063 = vmatpush.msra.mxu2 %v648_v9 }
  0x5a   : > { %864 = vmatpush.msrb.mxu3 %v857_v35  ;;  %1003 = vmatpush.msrb.mxu0 %v996_v40 }
  0x5b   : > { %434 = vmatmul.f32.gmra.mxu0 %v382_v17  ;;  %464 = vmatmul.f32.gmra.mxu3 %v392_v23  ;;  %v987_v17 = vld [vmem:[#allocation8 + $0x198] sm:$0xff] }
  0x5c   : > { %865 = vmatpush.msrb.mxu3 %v856_v38  ;;  %1004 = vmatpush.msrb.mxu0 %v995_v43 }
  0x5d   : > { %678 = vmatpush.msra.mxu1 %v647_v12  ;;  %2064 = vmatpush.msra.mxu2 %v647_v12 }
  0x5e   : > { %866 = vmatpush.msrb.mxu3 %v855_v41  ;;  %1005 = vmatpush.msrb.mxu0 %v994_v49 }
  0x5f   : > { %679 = vmatmul.f32.vlgmr.msra.gmra.mxu1 %v625_v15  ;;  %v623_v15 = vld [vmem:[#allocation8 + $0x70] sm:$0xff] }
  0x60   : > { %867 = vmatpush.msrb.mxu3 %v854_v45  ;;  %1006 = vmatpush.msrb.mxu0 %v993_v52 }
  0x61   : > { %1139 = vmatpush.msrb.mxu1 %v1138_v42 }
  0x62   : > { %868 = vmatpush.msrb.mxu3 %v853_v48  ;;  %1007 = vmatpush.msrb.mxu0 %v992_v55  ;;  %v1133_v55 = vld [vmem:[#allocation8 + $0x250] sm:$0xff] }
  0x63   : > { %437 = vmatmul.f32.gmra.mxu0 %v383_v18  ;;  %467 = vmatmul.f32.gmra.mxu3 %v393_v33  ;;  %v986_v18 = vld [vmem:[#allocation8 + $0x190] sm:$0xff] }
  0x64   : > { %869 = vmatpush.msrb.mxu3 %v852_v51  ;;  %1008 = vmatpush.msrb.mxu0 %v991_v5  ;;  %v1135_v51 = vld [vmem:[#allocation8 + $0x260] sm:$0xff]  ;;  %v1129_v5 = vld [vmem:[#allocation8 + $0x230] sm:$0xff] }
  0x66   : > { %870 = vmatpush.msrb.mxu3 %v851_v54  ;;  %1009 = vmatpush.msrb.mxu0 %v990_v8  ;;  %v1128_v8 = vld [vmem:[#allocation8 + $0x228] sm:$0xff] }
  0x68   : > { %871 = vmatpush.msrb.mxu3 %v850_v58  ;;  %1010 = vmatpush.msrb.mxu0 %v989_v11 }
  0x6a   : > { %872 = vmatpush.msrb.mxu3 %v849_v61  ;;  %1011 = vmatpush.msrb.mxu0 %v988_v14  ;;  %v1131_v61 = vld [vmem:[#allocation8 + $0x240] sm:$0xff] }
  0x6b   : > { %440 = vmatmul.f32.gmra.mxu0 %v384_v19  ;;  %470 = vmatmul.f32.gmra.mxu3 %v394_v46  ;;  %v985_v19 = vld [vmem:[#allocation8 + $0x188] sm:$0xff]  ;;  %v1127_v14 = vld [vmem:[#allocation8 + $0x220] sm:$0xff] }
  0x6c   : > { %873 = vmatpush.msrb.mxu3 %v848_v3  ;;  %1012 = vmatpush.msrb.mxu0 %v987_v17  ;;  %v1136_v46 = vld [vmem:[#allocation8 + $0x268] sm:$0xff]  ;;  %v1126_v17 = vld [vmem:[#allocation8 + $0x218] sm:$0xff] }
  0x6e   : > { %874 = vmatpush.msrb.mxu3 %v847_v7  ;;  %1013 = vmatpush.msrb.mxu0 %v986_v18  ;;  %v622_v18 = vld [vmem:[#allocation8 + $0x68] sm:$0xff] }
  0x70   : > { %875 = vmatpush.msrb.mxu3 %v846_v10  ;;  %1014 = vmatpush.msrb.mxu0 %v985_v19 }
  0x72   : > { %876 = vmatpush.msrb.mxu3 %v845_v13 }
  0x73   : > { %443 = vmatmul.f32.gmra.mxu0 %v385_v20  ;;  %473 = vmatmul.f32.gmra.mxu3 %v395_v59  ;;  %v984_v20 = vld [vmem:[#allocation8 + $0x180] sm:$0xff] }
  0x74   : > { %1015 = vmatpush.msrb.mxu0 %v984_v20 }
  0x7b   : > { %446 = vmatmul.f32.gmra.mxu0 %v386_v22  ;;  %476 = vmatmul.f32.gmra.mxu3 %v396_v63  ;;  %v2550_v22 = vld [vmem:[%s3236_s3] ss:$0 sm:$0xff] }
  0x7c   : > { %v624_v63 = vld [vmem:[#allocation8 + $0x78] sm:$0xff] }
  0x7d   : > { %743 = vmatpush.msrb.mxu2 %v624_v63  ;;  %v618_v63 = vld [vmem:[#allocation8 + $0x48] sm:$0xff] }
  0x7f   : > { %744 = vmatpush.msrb.mxu2 %v623_v15 }
  0x81   : > { %745 = vmatpush.msrb.mxu2 %v622_v18 }
  0x83   : > { %449 = vmatmul.f32.gmra.mxu0 %v387_v30  ;;  %479 = vmatmul.f32.gmra.mxu3 %v397_v0  ;;  %v1130_v0 = vld [vmem:[#allocation8 + $0x238] sm:$0xff] }
  0x8b   : > { %452 = vmatmul.f32.gmra.mxu0 %v388_v44  ;;  %482 = vmatmul.f32.gmra.mxu3 %v398_v1  ;;  %v1137_v44 = vld [vmem:[#allocation8 + $0x270] sm:$0xff] }
  0x8c   : > { %1140 = vmatpush.msrb.mxu1 %v1137_v44 }
  0x8e   : > { %1141 = vmatpush.msrb.mxu1 %v1136_v46 }
  0x90   : > { %1142 = vmatpush.msrb.mxu1 %v1135_v51 }
  0x92   : > { %1143 = vmatpush.msrb.mxu1 %v1134_v53 }
  0x93   : > { %455 = vmatmul.f32.gmra.mxu0 %v389_v57  ;;  %877 = vmatmul.f32.vlgmr.msrb.gmra.mxu3 %v823_v16  ;;  %v1132_v57 = vld [vmem:[#allocation8 + $0x248] sm:$0xff] }
  0x94   : > { %1144 = vmatpush.msrb.mxu1 %v1133_v55 }
  0x96   : > { %1145 = vmatpush.msrb.mxu1 %v1132_v57 }
  0x98   : > { %1146 = vmatpush.msrb.mxu1 %v1131_v61 }
  0x9a   : > { %1147 = vmatpush.msrb.mxu1 %v1130_v0  ;;  %v617_v0 = vld [vmem:[#allocation8 + $0x40] sm:$0xff] }
  0x9b   : > { %458 = vmatmul.f32.gmra.mxu0 %v390_v62 }
  0x9c   : > { %1148 = vmatpush.msrb.mxu1 %v1129_v5 }
  0x9e   : > { %1149 = vmatpush.msrb.mxu1 %v1128_v8 }
  0xa0   : > { %1150 = vmatpush.msrb.mxu1 %v1127_v14  ;;  %v616_v14 = vld [vmem:[#allocation8 + $0x38] sm:$0xff] }
  0xa2   : > { %1151 = vmatpush.msrb.mxu1 %v1126_v17 }
  0xd0   : > { %v432_v23 = vpop.f32.mrf.mxu0 }
  0xd1   : > { %v490_v24 = vmul.f32 %v2545_v21, %v432_v23 }
  0xd3   : > { %v2554_v25 = vadd.f32 %v2550_v22, %v490_v24  ;;  %v1125_v24 = vld [vmem:[#allocation8 + $0x210] sm:$0xff] }
  0xd4   : > { %1152 = vmatpush.msrb.mxu1 %v1125_v24  ;;  %v615_v24 = vld [vmem:[#allocation8 + $0x30] sm:$0xff] }
  0xd5   : > { %v530_v26 = vmax.f32 %v2554_v25, 0.0 }
  0xd6   : > { %v462_v2 = vpop.f32.mrf.mxu3 }
  0xd7   : > { %553 = vst [vmem:[#allocation2 + $0xf] sm:$0xff] %v530_v26  ;;  %v500_v3 = vmul.f32 %v2545_v21, %v462_v2 }
  0xd8   : > { %v435_v27 = vpop.f32.mrf.mxu0 }
  0xd9   : > { %v491_v28 = vmul.f32 %v2545_v21, %v435_v27  ;;  %v522_v7 = vadd.f32 %v2550_v22, %v500_v3 }
  0xdb   : > { %v513_v29 = vadd.f32 %v2550_v22, %v491_v28  ;;  %v540_v13 = vmax.f32 %v522_v7, 0.0 }
  0xdd   : > { %v531_v30 = vmax.f32 %v513_v29, 0.0  ;;  %572 = vst [vmem:[#allocation2 + $0x6b] sm:$0xf] %v540_v13 }
  0xde   : > { %v626_v31 = vld [vmem:[#allocation2 + $0x9] sm:$0xff]  ;;  %574 = vst [vmem:[#allocation2 + $0x6d] sm:$0xf0] %v540_v13  ;;  %v465_v20 = vpop.f32.mrf.mxu3 }
  0xdf   : > { %v824_v32 = vld [vmem:[#allocation2 + $0xa] sm:$0xff]  ;;  %554 = vst [vmem:[#allocation2 + $0x17] sm:$0xf] %v531_v30  ;;  %682 = vmatmul.f32.gmra.mxu1 %v626_v31  ;;  %v501_v23 = vmul.f32 %v2545_v21, %v465_v20 }
  0xe0   : > { %v962_v33 = vld [vmem:[#allocation2 + $0xe] sm:$0xff]  ;;  %880 = vmatmul.f32.gmra.mxu3 %v824_v32  ;;  %556 = vst [vmem:[#allocation2 + $0x19] sm:$0xf0] %v531_v30  ;;  %v438_v34 = vpop.f32.mrf.mxu0 }
  0xe1   : > { %1016 = vmatmul.f32.vlgmr.msrb.gmra.mxu0 %v962_v33  ;;  %v492_v35 = vmul.f32 %v2545_v21, %v438_v34  ;;  %v2582_v28 = vadd.f32 %v2550_v22, %v501_v23  ;;  %v1124_v30 = vld [vmem:[#allocation8 + $0x208] sm:$0xff] }
  0xe2   : > { %1153 = vmatpush.msrb.mxu1 %v1124_v30  ;;  %v614_v30 = vld [vmem:[#allocation8 + $0x28] sm:$0xff] }
  0xe3   : > { %v514_v36 = vadd.f32 %v2550_v22, %v492_v35  ;;  %v3247_v34 = vmax.f32 %v2582_v28, 0.0  ;;  %v1123_v35 = vld [vmem:[#allocation8 + $0x200] sm:$0xff] }
  0xe4   : > { %1154 = vmatpush.msrb.mxu1 %v1123_v35 }
  0xe5   : > { %v532_v37 = vmax.f32 %v514_v36, 0.0  ;;  %575 = vst [vmem:[#allocation2 + $0x75] sm:$0xff] %v3247_v34 }
  0xe6   : > { %v627_v38 = vld [vmem:[#allocation2 + $0x11] sm:$0xff] }
  0xe7   : > { %v825_v39 = vld [vmem:[#allocation2 + $0x12] sm:$0xff]  ;;  %557 = vst [vmem:[#allocation2 + $0x21] sm:$0xff] %v532_v37  ;;  %685 = vmatmul.f32.gmra.mxu1 %v627_v38  ;;  %v620_v38 = vld [vmem:[#allocation8 + $0x58] sm:$0xff] }
  0xe8   : > { %883 = vmatmul.f32.gmra.mxu3 %v825_v39  ;;  %v963_v40 = vld [vmem:[#allocation2 + $0x16] sm:$0xff]  ;;  %v441_v41 = vpop.f32.mrf.mxu0 }
  0xe9   : > { %1019 = vmatmul.f32.gmra.mxu0 %v963_v40  ;;  %v493_v43 = vmul.f32 %v2545_v21, %v441_v41  ;;  %v628_v48 = vld [vmem:[#allocation2 + $0x19] sm:$0xff]  ;;  %v468_v40 = vpop.f32.mrf.mxu3 }
  0xea   : > { %v502_v41 = vmul.f32 %v2545_v21, %v468_v40 }
  0xeb   : > { %v515_v45 = vadd.f32 %v2550_v22, %v493_v43 }
  0xec   : > { %v2594_v43 = vadd.f32 %v2550_v22, %v502_v41 }
  0xed   : > { %v533_v47 = vmax.f32 %v515_v45, 0.0 }
  0xee   : > { %v826_v49 = vld [vmem:[#allocation2 + $0x1a] sm:$0xff]  ;;  %v827_v59 = vld [vmem:[#allocation2 + $0x22] sm:$0xff] }
  0xef   : > { %v964_v50 = vld [vmem:[#allocation2 + $0x1e] sm:$0xff]  ;;  %559 = vst [vmem:[#allocation2 + $0x2b] sm:$0xff] %v533_v47  ;;  %688 = vmatmul.f32.gmra.mxu1 %v628_v48  ;;  %v542_v47 = vmax.f32 %v2594_v43, 0.0 }
  0xf0   : > { %886 = vmatmul.f32.gmra.mxu3 %v826_v49  ;;  %v444_v52 = vpop.f32.mrf.mxu0 }
  0xf1   : > { %1022 = vmatmul.f32.gmra.mxu0 %v964_v50  ;;  %v494_v54 = vmul.f32 %v2545_v21, %v444_v52  ;;  %v619_v50 = vld [vmem:[#allocation8 + $0x50] sm:$0xff]  ;;  %577 = vst [vmem:[#allocation2 + $0x7f] sm:$0xff] %v542_v47  ;;  %v471_v52 = vpop.f32.mrf.mxu3 }
  0xf2   : > { %v503_v53 = vmul.f32 %v2545_v21, %v471_v52  ;;  %v611_v52 = vld [vmem:[#allocation8 + $0x10] sm:$0xff] }
  0xf3   : > { %v516_v56 = vadd.f32 %v2550_v22, %v494_v54 }
  0xf4   : > { %v525_v55 = vadd.f32 %v2550_v22, %v503_v53  ;;  %v1416_v53 = vld [vmem:[#allocation8 + $0x378] sm:$0xff] }
  0xf5   : > { %v534_v58 = vmax.f32 %v516_v56, 0.0  ;;  %1417 = vmatpush.msra.mxu3 %v1416_v53 }
  0xf6   : > { %v965_v60 = vld [vmem:[#allocation2 + $0x26] sm:$0xff] }
  0xf7   : > { %560 = vst [vmem:[#allocation2 + $0x33] sm:$0xf] %v534_v58  ;;  %691 = vmatmul.f32.gmra.mxu1 %v532_v37  ;;  %v630_v10 = vld [vmem:[#allocation2 + $0x29] sm:$0xff] }
  0xf8   : > { %889 = vmatmul.f32.gmra.mxu3 %v827_v59  ;;  %562 = vst [vmem:[#allocation2 + $0x35] sm:$0xf0] %v534_v58  ;;  %v447_v62 = vpop.f32.mrf.mxu0  ;;  %v828_v11 = vld [vmem:[#allocation2 + $0x2a] sm:$0xff]  ;;  %v543_v59 = vmax.f32 %v525_v55, 0.0 }
  0xf9   : > { %1025 = vmatmul.f32.gmra.mxu0 %v965_v60  ;;  %v495_v1 = vmul.f32 %v2545_v21, %v447_v62  ;;  %v621_v37 = vld [vmem:[#allocation8 + $0x60] sm:$0xff]  ;;  %v474_v2 = vpop.f32.mrf.mxu3  ;;  %v610_v55 = vld [vmem:[#allocation8 + $0x8] sm:$0xff] }
  0xfa   : > { %746 = vmatpush.msrb.mxu2 %v621_v37  ;;  %578 = vst [vmem:[#allocation2 + $0x87] sm:$0xf] %v543_v59  ;;  %v504_v3 = vmul.f32 %v2545_v21, %v474_v2  ;;  %v1554_v2 = vld [vmem:[#allocation8 + $0x3f0] sm:$0xff] }
  0xfb   : > { %v2570_v6 = vadd.f32 %v2550_v22, %v495_v1  ;;  %580 = vst [vmem:[#allocation2 + $0x89] sm:$0xf0] %v543_v59  ;;  %v1413_v59 = vld [vmem:[#allocation8 + $0x360] sm:$0xff] }
  0xfc   : > { %747 = vmatpush.msrb.mxu2 %v620_v38  ;;  %v2607_v7 = vadd.f32 %v2550_v22, %v504_v3 }
  0xfd   : > { %v535_v9 = vmax.f32 %v2570_v6, 0.0 }
  0xfe   : > { %v966_v12 = vld [vmem:[#allocation2 + $0x2e] sm:$0xff]  ;;  %748 = vmatpush.msrb.mxu2 %v619_v50  ;;  %v640_v50 = vld [vmem:[#allocation2 + $0x79] sm:$0xff] }
  0xff   : > { %563 = vst [vmem:[#allocation2 + $0x3d] sm:$0xff] %v535_v9  ;;  %694 = vmatmul.f32.gmra.mxu1 %v630_v10  ;;  %v631_v31 = vld [vmem:[#allocation2 + $0x31] sm:$0xff] }
 0x100   : > { %892 = vmatmul.f32.gmra.mxu3 %v828_v11  ;;  %v450_v16 = vpop.f32.mrf.mxu0  ;;  %v829_v32 = vld [vmem:[#allocation2 + $0x32] sm:$0xff]  ;;  %749 = vmatpush.msrb.mxu2 %v618_v63  ;;  %v1555_v63 = vld [vmem:[#allocation8 + $0x3f8] sm:$0xff] }
 0x101   : > { %1028 = vmatmul.f32.gmra.mxu0 %v966_v12  ;;  %v496_v19 = vmul.f32 %v2545_v21, %v450_v16  ;;  %v544_v12 = vmax.f32 %v2607_v7, 0.0  ;;  %v477_v15 = vpop.f32.mrf.mxu3 }
 0x102   : > { %750 = vmatpush.msrb.mxu2 %v617_v0  ;;  %v505_v16 = vmul.f32 %v2545_v21, %v477_v15  ;;  %v609_v0 = vld [vmem:[#allocation8] sm:$0xff]  ;;  %1556 = vmatpush.msra.mxu0 %v1555_v63  ;;  %v2643_v15 = vld [vmem:[#allocation2 + $0x7e] sm:$0xff] }
 0x103   : > { %v2579_v27 = vadd.f32 %v2550_v22, %v496_v19  ;;  %581 = vst [vmem:[#allocation2 + $0x91] sm:$0xff] %v544_v12 }
 0x104   : > { %751 = vmatpush.msrb.mxu2 %v616_v14  ;;  %v527_v17 = vadd.f32 %v2550_v22, %v505_v16  ;;  %1557 = vmatpush.msra.mxu0 %v1554_v2  ;;  %v642_v14 = vld [vmem:[#allocation2 + $0x89] sm:$0xff] }
 0x105   : > { %v536_v29 = vmax.f32 %v2579_v27, 0.0  ;;  %v1409_v16 = vld [vmem:[#allocation8 + $0x340] sm:$0xff] }
 0x106   : > { %v967_v33 = vld [vmem:[#allocation2 + $0x36] sm:$0xff]  ;;  %v968_v48 = vld [vmem:[#allocation2 + $0x3e] sm:$0xff]  ;;  %v545_v20 = vmax.f32 %v527_v17, 0.0  ;;  %752 = vmatpush.msrb.mxu2 %v615_v24  ;;  %v1401_v27 = vld [vmem:[#allocation8 + $0x300] sm:$0xff] }
 0x107   : > { %565 = vst [vmem:[#allocation2 + $0x47] sm:$0xff] %v536_v29  ;;  %697 = vmatmul.f32.gmra.mxu1 %v631_v31  ;;  %v632_v45 = vld [vmem:[#allocation2 + $0x39] sm:$0xff]  ;;  %v1540_v2 = vld [vmem:[#allocation8 + $0x380] sm:$0xff] }
 0x108   : > { %895 = vmatmul.f32.gmra.mxu3 %v829_v32  ;;  %v453_v36 = vpop.f32.mrf.mxu0  ;;  %v830_v46 = vld [vmem:[#allocation2 + $0x3a] sm:$0xff]  ;;  %583 = vst [vmem:[#allocation2 + $0x9b] sm:$0xff] %v545_v20  ;;  %753 = vmatpush.msrb.mxu2 %v614_v30 }
 0x109   : > { %1031 = vmatmul.f32.gmra.mxu0 %v967_v33  ;;  %v497_v39 = vmul.f32 %v2545_v21, %v453_v36  ;;  %v480_v31 = vpop.f32.mrf.mxu3  ;;  %v1102_v36 = vld [vmem:[#allocation2 + $0x17] sm:$0xff]  ;;  %v1277_v17 = vld [vmem:[#allocation8 + $0x2f8] sm:$0xff] }
 0x10a   : > { %v506_v32 = vmul.f32 %v2545_v21, %v480_v31  ;;  %v1106_v3 = vld [vmem:[#allocation2 + $0x37] sm:$0xff]  ;;  %v1408_v20 = vld [vmem:[#allocation8 + $0x338] sm:$0xff]  ;;  %v840_v7 = vld [vmem:[#allocation2 + $0x8a] sm:$0xff] }
 0x10b   : > { %v519_v42 = vadd.f32 %v2550_v22, %v497_v39  ;;  %v1550_v24 = vld [vmem:[#allocation8 + $0x3d0] sm:$0xff]  ;;  %v839_v31 = vld [vmem:[#allocation2 + $0x82] sm:$0xff] }
 0x10c   : > { %v528_v33 = vadd.f32 %v2550_v22, %v506_v32  ;;  %v1107_v30 = vld [vmem:[#allocation2 + $0x3f] sm:$0xff] }
 0x10d   : > { %v537_v44 = vmax.f32 %v519_v42, 0.0  ;;  %v1407_v32 = vld [vmem:[#allocation8 + $0x330] sm:$0xff] }
 0x10e   : > { %v633_v57 = vld [vmem:[#allocation2 + $0x41] sm:$0xff]  ;;  %v546_v37 = vmax.f32 %v528_v33, 0.0  ;;  %v1549_v33 = vld [vmem:[#allocation8 + $0x3c8] sm:$0xff] }
 0x10f   : > { %566 = vst [vmem:[#allocation2 + $0x4f] sm:$0xf] %v537_v44  ;;  %700 = vmatmul.f32.gmra.mxu1 %v632_v45  ;;  %v831_v58 = vld [vmem:[#allocation2 + $0x42] sm:$0xff] }
 0x110   : > { %898 = vmatmul.f32.gmra.mxu3 %v830_v46  ;;  %568 = vst [vmem:[#allocation2 + $0x51] sm:$0xf0] %v537_v44  ;;  %v456_v49 = vpop.f32.mrf.mxu0  ;;  %v969_v61 = vld [vmem:[#allocation2 + $0x46] sm:$0xff]  ;;  %v639_v46 = vld [vmem:[#allocation2 + $0x71] sm:$0xff] }
 0x111   : > { %1034 = vmatmul.f32.gmra.mxu0 %v968_v48  ;;  %v498_v51 = vmul.f32 %v2545_v21, %v456_v49  ;;  %584 = vst [vmem:[#allocation2 + $0xa3] sm:$0xf] %v546_v37  ;;  %v483_v39 = vpop.f32.mrf.mxu3  ;;  %v1103_v44 = vld [vmem:[#allocation2 + $0x1f] sm:$0xff] }
 0x112   : > { %586 = vst [vmem:[#allocation2 + $0xa5] sm:$0xf0] %v546_v37  ;;  %v507_v40 = vmul.f32 %v2545_v21, %v483_v39  ;;  %v612_v49 = vld [vmem:[#allocation8 + $0x18] sm:$0xff]  ;;  %v1548_v37 = vld [vmem:[#allocation8 + $0x3c0] sm:$0xff]  ;;  %v1276_v39 = vld [vmem:[#allocation8 + $0x2f0] sm:$0xff] }
 0x113   : > { %v520_v54 = vadd.f32 %v2550_v22, %v498_v51  ;;  %v2637_v51 = vld [vmem:[#allocation2 + $0x6e] sm:$0xff]  ;;  %v1523_v6 = vld [vmem:[#allocation2 + $0x45] sm:$0xff] }
 0x114   : > { %v2629_v41 = vadd.f32 %v2550_v22, %v507_v40  ;;  %v1694_v40 = vld [vmem:[#allocation8 + $0x478] sm:$0xff] }
 0x115   : > { %v538_v56 = vmax.f32 %v520_v54, 0.0  ;;  %v1415_v54 = vld [vmem:[#allocation8 + $0x370] sm:$0xff]  ;;  %1695 = vmatpush.msra.mxu1 %v1694_v40  ;;  %v1113_v40 = vld [vmem:[#allocation2 + $0x6f] sm:$0xff] }
 0x116   : > { %v634_v10 = vld [vmem:[#allocation2 + $0x49] sm:$0xff]  ;;  %v3246_v45 = vmax.f32 %v2629_v41, 0.0  ;;  %1418 = vmatpush.msra.mxu3 %v1415_v54 }
 0x117   : > { %569 = vst [vmem:[#allocation2 + $0x59] sm:$0xff] %v538_v56  ;;  %703 = vmatmul.f32.gmra.mxu1 %v633_v57  ;;  %v635_v60 = vld [vmem:[#allocation2 + $0x51] sm:$0xff] }
 0x118   : > { %901 = vmatmul.f32.gmra.mxu3 %v831_v58  ;;  %709 = vmatmul.f32.vlgmr.msra.gmra.mxu2 %v635_v60  ;;  %v459_v62 = vpop.f32.mrf.mxu0  ;;  %v832_v11 = vld [vmem:[#allocation2 + $0x4a] sm:$0xff]  ;;  %587 = vst [vmem:[#allocation2 + $0xad] sm:$0xff] %v3246_v45  ;;  %v837_v57 = vld [vmem:[#allocation2 + $0x72] sm:$0xff]  ;;  %v641_v60 = vld [vmem:[#allocation2 + $0x81] sm:$0xff] }
 0x119   : > { %1037 = vmatmul.f32.gmra.mxu0 %v969_v61  ;;  %v499_v1 = vmul.f32 %v2545_v21, %v459_v62  ;;  %v2610_v13 = vld [vmem:[#allocation2 + $0x4e] sm:$0xff]  ;;  %v2640_v61 = vld [vmem:[#allocation2 + $0x76] sm:$0xff]  ;;  %v1412_v62 = vld [vmem:[#allocation8 + $0x358] sm:$0xff] }
 0x11a   : > { %v1105_v58 = vld [vmem:[#allocation2 + $0x2f] sm:$0xff] }
 0x11b   : > { %v521_v5 = vadd.f32 %v2550_v22, %v499_v1  ;;  %v1104_v22 = vld [vmem:[#allocation2 + $0x27] sm:$0xff]  ;;  %v1411_v1 = vld [vmem:[#allocation8 + $0x350] sm:$0xff]  ;;  %v1109_v54 = vld [vmem:[#allocation2 + $0x4f] sm:$0xff] }
 0x11c   : > { %v2763_v45 = vld [vmem:[#allocation2 + $0x50] sm:$0xff] }
 0x11d   : > { %v539_v8 = vmax.f32 %v521_v5, 0.0  ;;  %v1553_v5 = vld [vmem:[#allocation8 + $0x3e8] sm:$0xff] }
 0x11e   : > { %v833_v19 = vld [vmem:[#allocation2 + $0x52] sm:$0xff]  ;;  %v834_v35 = vld [vmem:[#allocation2 + $0x5a] sm:$0xff]  ;;  %1558 = vmatpush.msra.mxu0 %v1553_v5  ;;  %v1274_v5 = vld [vmem:[#allocation8 + $0x2e0] sm:$0xff] }
 0x11f   : > { %571 = vst [vmem:[#allocation2 + $0x63] sm:$0xff] %v539_v8  ;;  %706 = vmatmul.f32.gmra.mxu1 %v634_v10  ;;  %v2617_v23 = vld [vmem:[#allocation2 + $0x56] sm:$0xff] }
 0x120   : > { %904 = vmatmul.f32.gmra.mxu3 %v832_v11  ;;  %712 = vmatmul.f32.gmra.mxu2 %v538_v56  ;;  %v1414_v56 = vld [vmem:[#allocation8 + $0x368] sm:$0xff]  ;;  %v838_v8 = vld [vmem:[#allocation2 + $0x7a] sm:$0xff]  ;;  %v1552_v11 = vld [vmem:[#allocation8 + $0x3e0] sm:$0xff] }
 0x121   : > { %1040 = vmatmul.f32.gmra.mxu0 %v2610_v13  ;;  %1419 = vmatpush.msra.mxu3 %v1414_v56  ;;  %v1410_v10 = vld [vmem:[#allocation8 + $0x348] sm:$0xff] }
 0x122   : > { %1559 = vmatpush.msra.mxu0 %v1552_v11  ;;  %v841_v56 = vld [vmem:[#allocation2 + $0x92] sm:$0xff]  ;;  %v843_v11 = vld [vmem:[#allocation2 + $0xa2] sm:$0xff] }
 0x123   : > { %1420 = vmatpush.msra.mxu3 %v1413_v59  ;;  %v1693_v59 = vld [vmem:[#allocation8 + $0x470] sm:$0xff]  ;;  %v1121_v34 = vld [vmem:[#allocation2 + $0xaf] sm:$0xff] }
 0x124   : > { %1696 = vmatpush.msra.mxu1 %v1693_v59 }
 0x125   : > { %1421 = vmatpush.msra.mxu3 %v1412_v62  ;;  %v1541_v62 = vld [vmem:[#allocation8 + $0x388] sm:$0xff] }
 0x126   : > { %v637_v18 = vld [vmem:[#allocation2 + $0x61] sm:$0xff]  ;;  %v638_v38 = vld [vmem:[#allocation2 + $0x69] sm:$0xff] }
 0x127   : > { %1155 = vmatmul.f32.vlgmr.msrb.gmra.mxu1 %v530_v26  ;;  %v2624_v25 = vld [vmem:[#allocation2 + $0x5e] sm:$0xff]  ;;  %v613_v26 = vld [vmem:[#allocation8 + $0x20] sm:$0xff]  ;;  %1422 = vmatpush.msra.mxu3 %v1411_v1 }
 0x128   : > { %907 = vmatmul.f32.gmra.mxu3 %v833_v19  ;;  %715 = vmatmul.f32.gmra.mxu2 %v637_v18  ;;  %v835_v42 = vld [vmem:[#allocation2 + $0x62] sm:$0xff]  ;;  %v836_v21 = vld [vmem:[#allocation2 + $0x6a] sm:$0xff]  ;;  %v2646_v19 = vpop.f32.mrf.mxu1  ;;  %v1110_v1 = vld [vmem:[#allocation2 + $0x57] sm:$0xff] }
 0x129   : > { %1043 = vmatmul.f32.gmra.mxu0 %v2617_v23  ;;  %754 = vmatpush.msrb.mxu2 %v613_v26  ;;  %v2632_v48 = vld [vmem:[#allocation2 + $0x66] sm:$0xff] }
 0x12a   : > { %v1551_v18 = vld [vmem:[#allocation8 + $0x3d8] sm:$0xff]  ;;  %1423 = vmatpush.msra.mxu3 %v1410_v10 }
 0x12b   : > { %755 = vmatpush.msrb.mxu2 %v612_v49  ;;  %1560 = vmatpush.msra.mxu0 %v1551_v18  ;;  %v1547_v26 = vld [vmem:[#allocation8 + $0x3b8] sm:$0xff]  ;;  %v2655_v49 = vld [vmem:[#allocation2 + $0x8e] sm:$0xff] }
 0x12c   : > { %1424 = vmatpush.msra.mxu3 %v1409_v16  ;;  %v2673_v16 = vpop.f32.mrf.mxu3  ;;  %v2675_v18 = vld [vmem:[#allocation2 + $0xa6] sm:$0xff] }
 0x12d   : > { %756 = vmatpush.msrb.mxu2 %v611_v52  ;;  %1561 = vmatpush.msra.mxu0 %v1550_v24  ;;  %v1544_v52 = vld [vmem:[#allocation8 + $0x3a0] sm:$0xff] }
 0x12e   : > { %1425 = vmatpush.msra.mxu3 %v1408_v20  ;;  %v1691_v20 = vld [vmem:[#allocation8 + $0x460] sm:$0xff] }
 0x12f   : > { %1158 = vmatmul.f32.gmra.mxu1 %v1102_v36  ;;  %757 = vmatpush.msrb.mxu2 %v610_v55  ;;  %v1406_v36 = vld [vmem:[#allocation8 + $0x328] sm:$0xff] }
 0x130   : > { %910 = vmatmul.f32.gmra.mxu3 %v834_v35  ;;  %718 = vmatmul.f32.gmra.mxu2 %v638_v38  ;;  %v2648_v35 = vld [vmem:[#allocation2 + $0x86] sm:$0xff]  ;;  %v1275_v55 = vld [vmem:[#allocation8 + $0x2e8] sm:$0xff] }
 0x131   : > { %1046 = vmatmul.f32.gmra.mxu0 %v2624_v25  ;;  %758 = vmatpush.msrb.mxu2 %v609_v0  ;;  %v1405_v38 = vld [vmem:[#allocation8 + $0x320] sm:$0xff]  ;;  %v842_v0 = vld [vmem:[#allocation2 + $0x9a] sm:$0xff] }
 0x132   : > { %1426 = vmatpush.msra.mxu3 %v1407_v32  ;;  %1562 = vmatpush.msra.mxu0 %v1549_v33  ;;  %v1112_v32 = vld [vmem:[#allocation2 + $0x67] sm:$0xff]  ;;  %v1379_v33 = vld [vmem:[#allocation2 + $0x1c] sm:$0xff] }
 0x133   : > { %1278 = vmatpush.msra.mxu2 %v1277_v17  ;;  %v589_v17 = vld [vmem:[#allocation2 + $0x8] sm:$0xff] }
 0x134   : > { %1427 = vmatpush.msra.mxu3 %v1406_v36  ;;  %1563 = vmatpush.msra.mxu0 %v1548_v37  ;;  %v2684_v36 = vld [vmem:[#allocation2 + $0x10] sm:$0xff] }
 0x135   : > { %1279 = vmatpush.msra.mxu2 %v1276_v39  ;;  %v1690_v39 = vld [vmem:[#allocation8 + $0x458] sm:$0xff] }
 0x136   : > { %1428 = vmatpush.msra.mxu3 %v1405_v38  ;;  %1564 = vmatpush.msra.mxu0 %v1547_v26  ;;  %v1272_v26 = vld [vmem:[#allocation8 + $0x2d0] sm:$0xff] }
 0x137   : > { %1161 = vmatmul.f32.gmra.mxu1 %v1103_v44  ;;  %v644_v44 = vld [vmem:[#allocation2 + $0x99] sm:$0xff]  ;;  %1280 = vmatpush.msra.mxu2 %v1275_v55 }
 0x138   : > { %913 = vmatmul.f32.gmra.mxu3 %v835_v42  ;;  %721 = vmatmul.f32.gmra.mxu2 %v639_v46  ;;  %v1546_v46 = vld [vmem:[#allocation8 + $0x3b0] sm:$0xff]  ;;  %v2701_v55 = vld [vmem:[#allocation2 + $0x20] sm:$0xff] }
 0x139   : > { %1049 = vmatmul.f32.gmra.mxu0 %v2632_v48  ;;  %1281 = vmatpush.msra.mxu2 %v1274_v5  ;;  %v1688_v5 = vld [vmem:[#allocation8 + $0x448] sm:$0xff] }
 0x13a   : > { %1565 = vmatpush.msra.mxu0 %v1546_v46 }
 0x13f   : > { %1164 = vmatmul.f32.gmra.mxu1 %v1104_v22  ;;  %v1545_v22 = vld [vmem:[#allocation8 + $0x3a8] sm:$0xff] }
 0x140   : > { %916 = vmatmul.f32.gmra.mxu3 %v836_v21  ;;  %724 = vmatmul.f32.gmra.mxu2 %v640_v50  ;;  %v1403_v21 = vld [vmem:[#allocation8 + $0x310] sm:$0xff]  ;;  %v1402_v50 = vld [vmem:[#allocation8 + $0x308] sm:$0xff] }
 0x141   : > { %1052 = vmatmul.f32.gmra.mxu0 %v2637_v51 }
 0x142   : > { %1566 = vmatpush.msra.mxu0 %v1545_v22 }
 0x144   : > { %1567 = vmatpush.msra.mxu0 %v1544_v52  ;;  %v1114_v52 = vld [vmem:[#allocation2 + $0x77] sm:$0xff] }
 0x147   : > { %1167 = vmatmul.f32.gmra.mxu1 %v1105_v58  ;;  %v2662_v58 = vld [vmem:[#allocation2 + $0x96] sm:$0xff] }
 0x148   : > { %919 = vmatmul.f32.gmra.mxu3 %v837_v57  ;;  %727 = vmatmul.f32.gmra.mxu2 %v641_v60  ;;  %v645_v57 = vld [vmem:[#allocation2 + $0xa1] sm:$0xff]  ;;  %v1542_v60 = vld [vmem:[#allocation8 + $0x390] sm:$0xff] }
 0x149   : > { %1055 = vmatmul.f32.gmra.mxu0 %v2640_v61 }
 0x14f   : > { %1170 = vmatmul.f32.gmra.mxu1 %v1106_v3  ;;  %v2667_v3 = vld [vmem:[#allocation2 + $0x9e] sm:$0xff] }
 0x150   : > { %922 = vmatmul.f32.gmra.mxu3 %v838_v8  ;;  %730 = vmatmul.f32.gmra.mxu2 %v642_v14  ;;  %v1692_v8 = vld [vmem:[#allocation8 + $0x468] sm:$0xff]  ;;  %v1111_v14 = vld [vmem:[#allocation2 + $0x5f] sm:$0xff] }
 0x151   : > { %1058 = vmatmul.f32.gmra.mxu0 %v2643_v15  ;;  %1697 = vmatpush.msra.mxu1 %v1692_v8 }
 0x153   : > { %1698 = vmatpush.msra.mxu1 %v1691_v20  ;;  %v1521_v20 = vld [vmem:[#allocation2 + $0x35] sm:$0xff] }
 0x155   : > { %1699 = vmatpush.msra.mxu1 %v1690_v39  ;;  %v1269_v39 = vld [vmem:[#allocation8 + $0x2b8] sm:$0xff] }
 0x157   : > { %1173 = vmatmul.f32.gmra.mxu1 %v1107_v30  ;;  %v2680_v30 = vld [vmem:[#allocation2 + $0xae] sm:$0xff] }
 0x158   : > { %925 = vmatmul.f32.gmra.mxu3 %v839_v31  ;;  %733 = vmatmul.f32.gmra.mxu2 %v544_v12  ;;  %v1404_v12 = vld [vmem:[#allocation8 + $0x318] sm:$0xff] }
 0x159   : > { %1061 = vmatmul.f32.gmra.mxu0 %v2648_v35  ;;  %1429 = vmatpush.msra.mxu3 %v1404_v12  ;;  %v1518_v12 = vld [vmem:[#allocation2 + $0x1d] sm:$0xff] }
 0x15b   : > { %1430 = vmatpush.msra.mxu3 %v1403_v21 }
 0x15c   : > { %v2653_v42 = vpop.f32.mrf.mxu1 }
 0x15d   : > { %1431 = vmatpush.msra.mxu3 %v1402_v50  ;;  %v1271_v50 = vld [vmem:[#allocation8 + $0x2c8] sm:$0xff] }
 0x15e   : > { %v2682_v31 = vpop.f32.mrf.mxu0 }
 0x15f   : > { %1176 = vmatmul.f32.gmra.mxu1 %v536_v29  ;;  %v1543_v29 = vld [vmem:[#allocation8 + $0x398] sm:$0xff]  ;;  %1432 = vmatpush.msra.mxu3 %v1401_v27  ;;  %v1689_v27 = vld [vmem:[#allocation8 + $0x450] sm:$0xff] }
 0x160   : > { %928 = vmatmul.f32.gmra.mxu3 %v840_v7  ;;  %736 = vmatmul.f32.gmra.mxu2 %v644_v44  ;;  %v1380_v44 = vld [vmem:[#allocation2 + $0x24] sm:$0xff]  ;;  %v2692_v7 = vld [vmem:[#allocation2 + $0x18] sm:$0xff] }
 0x161   : > { %1064 = vmatmul.f32.gmra.mxu0 %v2655_v49  ;;  %1700 = vmatpush.msra.mxu1 %v1689_v27  ;;  %v1682_v27 = vld [vmem:[#allocation8 + $0x418] sm:$0xff] }
 0x162   : > { %1568 = vmatpush.msra.mxu0 %v1543_v29 }
 0x163   : > { %v2688_v37 = vpop.f32.mrf.mxu3  ;;  %1701 = vmatpush.msra.mxu1 %v1688_v5  ;;  %v1268_v5 = vld [vmem:[#allocation8 + $0x2b0] sm:$0xff] }
 0x164   : > { %v2660_v53 = vpop.f32.mrf.mxu1  ;;  %1569 = vmatpush.msra.mxu0 %v1542_v60  ;;  %v1382_v60 = vld [vmem:[#allocation2 + $0x34] sm:$0xff] }
 0x166   : > { %1570 = vmatpush.msra.mxu0 %v1541_v62  ;;  %v2694_v46 = vpop.f32.mrf.mxu0  ;;  %v2710_v62 = vld [vmem:[#allocation2 + $0x28] sm:$0xff] }
 0x167   : > { %1179 = vmatmul.f32.gmra.mxu1 %v1109_v54  ;;  %v1381_v54 = vld [vmem:[#allocation2 + $0x2c] sm:$0xff] }
 0x168   : > { %931 = vmatmul.f32.gmra.mxu3 %v841_v56  ;;  %739 = vmatmul.f32.gmra.mxu2 %v645_v57  ;;  %v1519_v56 = vld [vmem:[#allocation2 + $0x25] sm:$0xff] }
 0x169   : > { %1067 = vmatmul.f32.gmra.mxu0 %v2662_v58 }
 0x16a   : > { %1571 = vmatpush.msra.mxu0 %v1540_v2 }
 0x16b   : > { %v2697_v21 = vpop.f32.mrf.mxu3 }
 0x16c   : > { %v2665_v63 = vpop.f32.mrf.mxu1 }
 0x16e   : > { %v2704_v29 = vpop.f32.mrf.mxu0 }
 0x16f   : > { %1182 = vmatmul.f32.gmra.mxu1 %v1110_v1  ;;  %v1270_v1 = vld [vmem:[#allocation8 + $0x2c0] sm:$0xff] }
 0x170   : > { %934 = vmatmul.f32.gmra.mxu3 %v842_v0  ;;  %759 = vmatmul.f32.vlgmr.msrb.gmra.mxu2 %v2344_v4  ;;  %v1273_v4 = vld [vmem:[#allocation8 + $0x2d8] sm:$0xff]  ;;  %v1520_v0 = vld [vmem:[#allocation2 + $0x2d] sm:$0xff] }
 0x171   : > { %1070 = vmatmul.f32.gmra.mxu0 %v2667_v3  ;;  %1282 = vmatpush.msra.mxu2 %v1273_v4  ;;  %v1383_v4 = vld [vmem:[#allocation2 + $0x3c] sm:$0xff] }
 0x173   : > { %1283 = vmatpush.msra.mxu2 %v1272_v26  ;;  %v2708_v59 = vpop.f32.mrf.mxu3  ;;  %v1685_v26 = vld [vmem:[#allocation8 + $0x430] sm:$0xff] }
 0x174   : > { %v2671_v10 = vpop.f32.mrf.mxu1 }
 0x175   : > { %1284 = vmatpush.msra.mxu2 %v1271_v50  ;;  %v1384_v50 = vld [vmem:[#allocation2 + $0x44] sm:$0xff] }
 0x176   : > { %v2717_v8 = vpop.f32.mrf.mxu0 }
 0x177   : > { %1185 = vmatmul.f32.gmra.mxu1 %v1111_v14  ;;  %1285 = vmatpush.msra.mxu2 %v1270_v1  ;;  %v1687_v14 = vld [vmem:[#allocation8 + $0x440] sm:$0xff]  ;;  %v1681_v1 = vld [vmem:[#allocation8 + $0x410] sm:$0xff] }
 0x178   : > { %937 = vmatmul.f32.gmra.mxu3 %v843_v11  ;;  %762 = vmatmul.f32.gmra.mxu2 %v589_v17  ;;  %v1116_v17 = vld [vmem:[#allocation2 + $0x87] sm:$0xff] }
 0x179   : > { %1073 = vmatmul.f32.gmra.mxu0 %v2675_v18  ;;  %1702 = vmatpush.msra.mxu1 %v1687_v14  ;;  %v1118_v14 = vld [vmem:[#allocation2 + $0x97] sm:$0xff] }
 0x17a   : > { %1286 = vmatpush.msra.mxu2 %v1269_v39 }
 0x17b   : > { %v2721_v43 = vpop.f32.mrf.mxu3 }
 0x17c   : > { %v2678_v24 = vpop.f32.mrf.mxu1  ;;  %1287 = vmatpush.msra.mxu2 %v1268_v5 }
 0x17f   : > { %1188 = vmatmul.f32.gmra.mxu1 %v1112_v32  ;;  %v1686_v32 = vld [vmem:[#allocation8 + $0x438] sm:$0xff] }
 0x180   : > { %1433 = vmatmul.f32.vlgmr.msra.gmra.mxu3 %v1379_v33  ;;  %765 = vmatmul.f32.gmra.mxu2 %v2684_v36 }
 0x181   : > { %1076 = vmatmul.f32.gmra.mxu0 %v2680_v30  ;;  %1703 = vmatpush.msra.mxu1 %v1686_v32  ;;  %v1679_v32 = vld [vmem:[#allocation8 + $0x400] sm:$0xff] }
 0x183   : > { %1704 = vmatpush.msra.mxu1 %v1685_v26 }
 0x184   : > { %v2690_v38 = vpop.f32.mrf.mxu1 }
 0x185   : > { %3262 = vst [vmem:[#allocation15_spill] sm:$0xff] %v2690_v38  ;;  %v1534_v38 = vld [vmem:[#allocation2 + $0x9d] sm:$0xff] }
 0x187   : > { %1191 = vmatmul.f32.gmra.mxu1 %v1113_v40  ;;  %v1684_v40 = vld [vmem:[#allocation8 + $0x428] sm:$0xff] }
 0x188   : > { %1436 = vmatmul.f32.gmra.mxu3 %v1380_v44  ;;  %768 = vmatmul.f32.gmra.mxu2 %v2692_v7  ;;  %v2728_v44 = vpop.f32.mrf.mxu0 }
 0x189   : > { %1572 = vmatmul.f32.vlgmr.msra.gmra.mxu0 %v1518_v12  ;;  %v1117_v12 = vld [vmem:[#allocation2 + $0x8f] sm:$0xff]  ;;  %1705 = vmatpush.msra.mxu1 %v1684_v40 }
 0x18c   : > { %v2699_v22 = vpop.f32.mrf.mxu1 }
 0x18d   : > { %3263 = vst [vmem:[#allocation16_spill] sm:$0xff] %v2699_v22  ;;  %v1263_v22 = vld [vmem:[#allocation8 + $0x288] sm:$0xff] }
 0x18f   : > { %1194 = vmatmul.f32.gmra.mxu1 %v1114_v52  ;;  %v1683_v52 = vld [vmem:[#allocation8 + $0x420] sm:$0xff] }
 0x190   : > { %1439 = vmatmul.f32.gmra.mxu3 %v1381_v54  ;;  %771 = vmatmul.f32.gmra.mxu2 %v2701_v55 }
 0x191   : > { %1575 = vmatmul.f32.gmra.mxu0 %v1519_v56  ;;  %v2732_v56 = vld [vmem:[#allocation2 + $0x38] sm:$0xff]  ;;  %1706 = vmatpush.msra.mxu1 %v1683_v52  ;;  %v2752_v52 = vld [vmem:[#allocation2 + $0x48] sm:$0xff] }
 0x193   : > { %1707 = vmatpush.msra.mxu1 %v1682_v27  ;;  %v1524_v27 = vld [vmem:[#allocation2 + $0x4d] sm:$0xff] }
 0x194   : > { %v2706_v57 = vpop.f32.mrf.mxu1 }
 0x195   : > { %3264 = vst [vmem:[#allocation17_spill] sm:$0xff] %v2706_v57  ;;  %1708 = vmatpush.msra.mxu1 %v1681_v1  ;;  %v1267_v1 = vld [vmem:[#allocation8 + $0x2a8] sm:$0xff] }
 0x196   : > { %1288 = vmatpush.msra.mxu2 %v1267_v1 }
 0x197   : > { %1197 = vmatmul.f32.gmra.mxu1 %v542_v47  ;;  %v2723_v47 = vld [vmem:[#allocation2 + $0x30] sm:$0xff] }
 0x198   : > { %1442 = vmatmul.f32.gmra.mxu3 %v1382_v60  ;;  %774 = vmatmul.f32.gmra.mxu2 %v2710_v62  ;;  %v2737_v60 = vpop.f32.mrf.mxu3 }
 0x199   : > { %1578 = vmatmul.f32.gmra.mxu0 %v1520_v0 }
 0x19b   : > { %v2715_v2 = vpop.f32.mrf.mxu2 }
 0x19c   : > { %3265 = vst [vmem:[#allocation18_spill] sm:$0xff] %v2715_v2  ;;  %v2719_v11 = vpop.f32.mrf.mxu1  ;;  %v1389_v2 = vld [vmem:[#allocation2 + $0x6c] sm:$0xff] }
 0x19d   : > { %3266 = vst [vmem:[#allocation19_spill] sm:$0xff] %v2719_v11 }
 0x19f   : > { %1200 = vmatmul.f32.gmra.mxu1 %v1116_v17  ;;  %v1385_v17 = vld [vmem:[#allocation2 + $0x4c] sm:$0xff] }
 0x1a0   : > { %1445 = vmatmul.f32.gmra.mxu3 %v1383_v4  ;;  %777 = vmatmul.f32.gmra.mxu2 %v2723_v47  ;;  %v1680_v4 = vld [vmem:[#allocation8 + $0x408] sm:$0xff]  ;;  %v2748_v39 = vpop.f32.mrf.mxu3 }
 0x1a1   : > { %1581 = vmatmul.f32.gmra.mxu0 %v1521_v20  ;;  %v2741_v20 = vld [vmem:[#allocation2 + $0x40] sm:$0xff]  ;;  %1709 = vmatpush.msra.mxu1 %v1680_v4  ;;  %3270 = vst [vmem:[#allocation23_spill] sm:$0xff] %v2748_v39 }
 0x1a2   : > { %v2825_v39 = vld [vmem:[#allocation2 + $0x80] sm:$0xff] }
 0x1a3   : > { %v2726_v33 = vpop.f32.mrf.mxu2  ;;  %1710 = vmatpush.msra.mxu1 %v1679_v32  ;;  %v1387_v32 = vld [vmem:[#allocation2 + $0x5c] sm:$0xff] }
 0x1a4   : > { %3267 = vst [vmem:[#allocation20_spill] sm:$0xff] %v2726_v33  ;;  %v2730_v54 = vpop.f32.mrf.mxu1  ;;  %v2774_v33 = vld [vmem:[#allocation2 + $0x58] sm:$0xff] }
 0x1a7   : > { %1203 = vmatmul.f32.gmra.mxu1 %v1117_v12  ;;  %v1119_v12 = vld [vmem:[#allocation2 + $0x9f] sm:$0xff] }
 0x1a8   : > { %1448 = vmatmul.f32.gmra.mxu3 %v1384_v50  ;;  %780 = vmatmul.f32.gmra.mxu2 %v2732_v56  ;;  %v1386_v50 = vld [vmem:[#allocation2 + $0x54] sm:$0xff]  ;;  %v2761_v4 = vpop.f32.mrf.mxu3 }
 0x1a9   : > { %1584 = vmatmul.f32.gmra.mxu0 %v535_v9  ;;  %v2743_v9 = vpop.f32.mrf.mxu0  ;;  %3274 = vst [vmem:[#allocation27_spill] sm:$0xff] %v2761_v4  ;;  %v1659_v4 = vld [vmem:[#allocation2 + $0x2e] sm:$0xff] }
 0x1aa   : > { %3269 = vst [vmem:[#allocation22_spill] sm:$0xff] %v2743_v9  ;;  %v2853_v9 = vld [vmem:[#allocation2 + $0x98] sm:$0xff] }
 0x1ab   : > { %v2739_v0 = vpop.f32.mrf.mxu2 }
 0x1ac   : > { %3268 = vst [vmem:[#allocation21_spill] sm:$0xff] %v2739_v0  ;;  %v2746_v26 = vpop.f32.mrf.mxu1 }
 0x1af   : > { %1206 = vmatmul.f32.gmra.mxu1 %v1118_v14 }
 0x1b0   : > { %1451 = vmatmul.f32.gmra.mxu3 %v1385_v17  ;;  %783 = vmatmul.f32.gmra.mxu2 %v2741_v20  ;;  %v2772_v0 = vpop.f32.mrf.mxu3 }
 0x1b1   : > { %1587 = vmatmul.f32.gmra.mxu0 %v1523_v6  ;;  %v2755_v5 = vpop.f32.mrf.mxu0  ;;  %v1120_v6 = vld [vmem:[#allocation2 + $0xa7] sm:$0xff]  ;;  %3277 = vst [vmem:[#allocation30_spill] sm:$0xff] %v2772_v0 }
 0x1b2   : > { %3272 = vst [vmem:[#allocation25_spill] sm:$0xff] %v2755_v5  ;;  %v1527_v0 = vld [vmem:[#allocation2 + $0x65] sm:$0xff]  ;;  %v2801_v5 = vld [vmem:[#allocation2 + $0x70] sm:$0xff] }
 0x1b3   : > { %v2750_v40 = vpop.f32.mrf.mxu2 }
 0x1b4   : > { %3271 = vst [vmem:[#allocation24_spill] sm:$0xff] %v2750_v40  ;;  %v2757_v14 = vpop.f32.mrf.mxu1  ;;  %v1388_v40 = vld [vmem:[#allocation2 + $0x64] sm:$0xff] }
 0x1b7   : > { %1209 = vmatmul.f32.gmra.mxu1 %v1119_v12  ;;  %v1525_v12 = vld [vmem:[#allocation2 + $0x55] sm:$0xff] }
 0x1b8   : > { %1454 = vmatmul.f32.gmra.mxu3 %v1386_v50  ;;  %786 = vmatmul.f32.gmra.mxu2 %v2752_v52 }
 0x1b9   : > { %1590 = vmatmul.f32.gmra.mxu0 %v1524_v27  ;;  %v1266_v27 = vld [vmem:[#allocation8 + $0x2a0] sm:$0xff]  ;;  %v2768_v1 = vpop.f32.mrf.mxu0 }
 0x1ba   : > { %3276 = vst [vmem:[#allocation29_spill] sm:$0xff] %v2768_v1  ;;  %1289 = vmatpush.msra.mxu2 %v1266_v27  ;;  %v1657_v27 = vld [vmem:[#allocation2 + $0x1e] sm:$0xff] }
 0x1bb   : > { %v2759_v17 = vpop.f32.mrf.mxu2  ;;  %v2783_v1 = vld [vmem:[#allocation2 + $0x60] sm:$0xff] }
 0x1bc   : > { %3273 = vst [vmem:[#allocation26_spill] sm:$0xff] %v2759_v17  ;;  %v2770_v17 = vpop.f32.mrf.mxu1 }
 0x1bf   : > { %1212 = vmatmul.f32.gmra.mxu1 %v1120_v6  ;;  %v1526_v6 = vld [vmem:[#allocation2 + $0x5d] sm:$0xff] }
 0x1c0   : > { %1457 = vmatmul.f32.gmra.mxu3 %v1387_v32  ;;  %789 = vmatmul.f32.gmra.mxu2 %v2763_v45 }
 0x1c1   : > { %1593 = vmatmul.f32.gmra.mxu0 %v1525_v12  ;;  %v1265_v12 = vld [vmem:[#allocation8 + $0x298] sm:$0xff] }
 0x1c2   : > { %1290 = vmatpush.msra.mxu2 %v1265_v12  ;;  %v1528_v12 = vld [vmem:[#allocation2 + $0x6d] sm:$0xff] }
 0x1c3   : > { %v2766_v50 = vpop.f32.mrf.mxu2 }
 0x1c4   : > { %3275 = vst [vmem:[#allocation28_spill] sm:$0xff] %v2766_v50  ;;  %v2779_v50 = vpop.f32.mrf.mxu0  ;;  %v2781_v11 = vpop.f32.mrf.mxu1 }
 0x1c5   : > { %3279 = vst [vmem:[#allocation32_spill] sm:$0xff] %v2779_v50  ;;  %v2790_v50 = vld [vmem:[#allocation2 + $0x68] sm:$0xff] }
 0x1c6   : > { %3280 = vst [vmem:[#allocation33_spill] sm:$0xff] %v2781_v11  ;;  %v1535_v11 = vld [vmem:[#allocation2 + $0xa5] sm:$0xff] }
 0x1c7   : > { %1215 = vmatmul.f32.gmra.mxu1 %v1121_v34  ;;  %v2786_v34 = vpop.f32.mrf.mxu3 }
 0x1c8   : > { %1460 = vmatmul.f32.gmra.mxu3 %v1388_v40  ;;  %792 = vmatmul.f32.gmra.mxu2 %v2774_v33  ;;  %3281 = vst [vmem:[#allocation34_spill] sm:$0xff] %v2786_v34 }
 0x1c9   : > { %1596 = vmatmul.f32.gmra.mxu0 %v1526_v6  ;;  %v1390_v6 = vld [vmem:[#allocation2 + $0x74] sm:$0xff] }
 0x1cb   : > { %v2777_v32 = vpop.f32.mrf.mxu2 }
 0x1cc   : > { %3278 = vst [vmem:[#allocation31_spill] sm:$0xff] %v2777_v32  ;;  %v1658_v32 = vld [vmem:[#allocation2 + $0x26] sm:$0xff]  ;;  %v2792_v57 = vpop.f32.mrf.mxu0 }
 0x1cd   : > { %3283 = vst [vmem:[#allocation36_spill] sm:$0xff] %v2792_v57  ;;  %v1660_v57 = vld [vmem:[#allocation2 + $0x36] sm:$0xff] }
 0x1cf   : > { %1711 = vmatmul.f32.vlgmr.msra.gmra.mxu1 %v1657_v27  ;;  %v2795_v27 = vpop.f32.mrf.mxu1 }
 0x1d0   : > { %1463 = vmatmul.f32.gmra.mxu3 %v1389_v2  ;;  %795 = vmatmul.f32.gmra.mxu2 %v2783_v1  ;;  %v1264_v2 = vld [vmem:[#allocation8 + $0x290] sm:$0xff]  ;;  %3284 = vst [vmem:[#allocation37_spill] sm:$0xff] %v2795_v27 }
 0x1d1   : > { %1599 = vmatmul.f32.gmra.mxu0 %v1527_v0  ;;  %1291 = vmatpush.msra.mxu2 %v1264_v2  ;;  %v2797_v0 = vpop.f32.mrf.mxu3  ;;  %v2814_v27 = vld [vmem:[#allocation2 + $0x78] sm:$0xff] }
 0x1d2   : > { %3285 = vst [vmem:[#allocation38_spill] sm:$0xff] %v2797_v0 }
 0x1d3   : > { %v2788_v40 = vpop.f32.mrf.mxu2  ;;  %1292 = vmatpush.msra.mxu2 %v1263_v22 }
 0x1d4   : > { %3282 = vst [vmem:[#allocation35_spill] sm:$0xff] %v2788_v40  ;;  %v1391_v40 = vld [vmem:[#allocation2 + $0x7c] sm:$0xff] }
 0x1d7   : > { %1714 = vmatmul.f32.gmra.mxu1 %v1658_v32  ;;  %v3287_v32 = vmax.f32 %v2582_v28, 0.0 }
 0x1d8   : > { %1466 = vmatmul.f32.gmra.mxu3 %v1390_v6  ;;  %798 = vmatmul.f32.gmra.mxu2 %v2790_v50  ;;  %v2806_v6 = vpop.f32.mrf.mxu0 }
 0x1d9   : > { %1602 = vmatmul.f32.gmra.mxu0 %v1528_v12  ;;  %3288 = vst [vmem:[#allocation40_spill] sm:$0xff] %v2806_v6  ;;  %v2808_v12 = vpop.f32.mrf.mxu1  ;;  %v2812_v0 = vpop.f32.mrf.mxu3  ;;  %v1262_v6 = vld [vmem:[#allocation8 + $0x280] sm:$0xff] }
 0x1da   : > { %3289 = vst [vmem:[#allocation41_spill] sm:$0xff] %v2808_v12  ;;  %1293 = vmatpush.msra.mxu2 %v1262_v6  ;;  %v1395_v6 = vld [vmem:[#allocation2 + $0x9c] sm:$0xff] }
 0x1db   : > { %v2799_v34 = vpop.f32.mrf.mxu2  ;;  %3291 = vst [vmem:[#allocation43_spill] sm:$0xff] %v2812_v0  ;;  %v1661_v0 = vld [vmem:[#allocation2 + $0x3e] sm:$0xff] }
 0x1dc   : > { %3286 = vst [vmem:[#allocation39_spill] sm:$0xff] %v2799_v34  ;;  %v1392_v34 = vld [vmem:[#allocation2 + $0x84] sm:$0xff] }
 0x1df   : > { %1717 = vmatmul.f32.gmra.mxu1 %v1659_v4  ;;  %v1530_v4 = vld [vmem:[#allocation2 + $0x7d] sm:$0xff] }
 0x1e0   : > { %1469 = vmatmul.f32.gmra.mxu3 %v1391_v40  ;;  %801 = vmatmul.f32.gmra.mxu2 %v2801_v5  ;;  %v2819_v40 = vpop.f32.mrf.mxu0 }
 0x1e1   : > { %1605 = vmatmul.f32.gmra.mxu0 %v3287_v32  ;;  %3293 = vst [vmem:[#allocation45_spill] sm:$0xff] %v2819_v40  ;;  %v2821_v32 = vpop.f32.mrf.mxu1  ;;  %v2823_v12 = vpop.f32.mrf.mxu3 }
 0x1e2   : > { %3294 = vst [vmem:[#allocation46_spill] sm:$0xff] %v2821_v32  ;;  %v2834_v32 = vld [vmem:[#allocation2 + $0x88] sm:$0xff] }
 0x1e3   : > { %v2810_v2 = vpop.f32.mrf.mxu2  ;;  %3295 = vst [vmem:[#allocation47_spill] sm:$0xff] %v2823_v12  ;;  %v1532_v12 = vld [vmem:[#allocation2 + $0x8d] sm:$0xff] }
 0x1e4   : > { %3290 = vst [vmem:[#allocation42_spill] sm:$0xff] %v2810_v2  ;;  %v1393_v2 = vld [vmem:[#allocation2 + $0x8c] sm:$0xff] }
 0x1e7   : > { %1720 = vmatmul.f32.gmra.mxu1 %v1660_v57 }
 0x1e8   : > { %1472 = vmatmul.f32.gmra.mxu3 %v1392_v34  ;;  %804 = vmatmul.f32.gmra.mxu2 %v2814_v27  ;;  %v1531_v34 = vld [vmem:[#allocation2 + $0x85] sm:$0xff]  ;;  %v2830_v57 = vpop.f32.mrf.mxu0 }
 0x1e9   : > { %1608 = vmatmul.f32.gmra.mxu0 %v1530_v4  ;;  %3296 = vst [vmem:[#allocation48_spill] sm:$0xff] %v2830_v57  ;;  %v1394_v4 = vld [vmem:[#allocation2 + $0x94] sm:$0xff]  ;;  %v2832_v40 = vpop.f32.mrf.mxu1 }
 0x1ea   : > { %3297 = vst [vmem:[#allocation49_spill] sm:$0xff] %v2832_v40  ;;  %v1533_v57 = vld [vmem:[#allocation2 + $0x95] sm:$0xff] }
 0x1eb   : > { %v2817_v28 = vpop.f32.mrf.mxu2 }
 0x1ec   : > { %3292 = vst [vmem:[#allocation44_spill] sm:$0xff] %v2817_v28  ;;  %v1662_v28 = vld [vmem:[#allocation2 + $0x46] sm:$0xff] }
 0x1ef   : > { %1723 = vmatmul.f32.gmra.mxu1 %v1661_v0  ;;  %v2837_v0 = vpop.f32.mrf.mxu3 }
 0x1f0   : > { %1475 = vmatmul.f32.gmra.mxu3 %v1393_v2  ;;  %807 = vmatmul.f32.gmra.mxu2 %v2825_v39  ;;  %3298 = vst [vmem:[#allocation50_spill] sm:$0xff] %v2837_v0  ;;  %v2844_v40 = vpop.f32.mrf.mxu0  ;;  %v1396_v0 = vld [vmem:[#allocation2 + $0xa4] sm:$0xff] }
 0x1f1   : > { %1611 = vmatmul.f32.gmra.mxu0 %v1531_v34  ;;  %v2841_v34 = vld [vmem:[#allocation2 + $0x90] sm:$0xff]  ;;  %3299 = vst [vmem:[#allocation51_spill] sm:$0xff] %v2844_v40 }
 0x1f3   : > { %v2828_v22 = vpop.f32.mrf.mxu2 }
 0x1f7   : > { %1726 = vmatmul.f32.gmra.mxu1 %v1662_v28  ;;  %v2847_v28 = vpop.f32.mrf.mxu1 }
 0x1f8   : > { %1478 = vmatmul.f32.gmra.mxu3 %v1394_v4  ;;  %810 = vmatmul.f32.gmra.mxu2 %v2834_v32  ;;  %3300 = vst [vmem:[#allocation52_spill] sm:$0xff] %v2847_v28  ;;  %v2849_v4 = vpop.f32.mrf.mxu3  ;;  %v2865_v28 = vld [vmem:[#allocation2 + $0xa0] sm:$0xff] }
 0x1f9   : > { %1614 = vmatmul.f32.gmra.mxu0 %v1532_v12  ;;  %3301 = vst [vmem:[#allocation53_spill] sm:$0xff] %v2849_v4  ;;  %v1397_v4 = vld [vmem:[#allocation2 + $0xac] sm:$0xff] }
 0x1fb   : > { %v2839_v2 = vpop.f32.mrf.mxu2 }
 0x1ff   : > { %1729 = vmatmul.f32.gmra.mxu1 %v2610_v13  ;;  %v2857_v13 = vpop.f32.mrf.mxu0 }
 0x200   : > { %1481 = vmatmul.f32.gmra.mxu3 %v1395_v6  ;;  %813 = vmatmul.f32.gmra.mxu2 %v2841_v34  ;;  %3302 = vst [vmem:[#allocation54_spill] sm:$0xff] %v2857_v13  ;;  %v2859_v6 = vpop.f32.mrf.mxu1  ;;  %v2863_v40 = vpop.f32.mrf.mxu3  ;;  %v1398_v13 = vld [vmem:[#allocation2 + $0xb4] sm:$0xff] }
 0x201   : > { %1617 = vmatmul.f32.gmra.mxu0 %v1533_v57  ;;  %3303 = vst [vmem:[#allocation55_spill] sm:$0xff] %v2859_v6 }
 0x202   : > { %3304 = vst [vmem:[#allocation56_spill] sm:$0xff] %v2863_v40 }
 0x203   : > { %v2851_v12 = vpop.f32.mrf.mxu2 }
 0x207   : > { %1732 = vmatmul.f32.gmra.mxu1 %v2617_v23 }
 0x208   : > { %1484 = vmatmul.f32.gmra.mxu3 %v1396_v0  ;;  %816 = vmatmul.f32.gmra.mxu2 %v2853_v9  ;;  %v2873_v0 = vpop.f32.mrf.mxu1  ;;  %v2875_v6 = vpop.f32.mrf.mxu3 }
 0x209   : > { %1620 = vmatmul.f32.gmra.mxu0 %v1534_v38  ;;  %v2871_v38 = vpop.f32.mrf.mxu0  ;;  %3306 = vst [vmem:[#allocation58_spill] sm:$0xff] %v2875_v6 }
 0x20a   : > { %3305 = vst [vmem:[#allocation57_spill] sm:$0xff] %v2871_v38  ;;  %v2161_v38 = vld [vmem:[#allocation2] sm:$0xff] }
 0x20b   : > { %v2861_v57 = vpop.f32.mrf.mxu2 }
 0x20f   : > { %1735 = vmatmul.f32.gmra.mxu1 %v2624_v25 }
 0x210   : > { %1487 = vmatmul.f32.gmra.mxu3 %v1397_v4  ;;  %819 = vmatmul.f32.gmra.mxu2 %v2865_v28  ;;  %v3307_v4 = vmax.f32 %v2629_v41, 0.0  ;;  %v2885_v40 = vpop.f32.mrf.mxu1 }
 0x211   : > { %1623 = vmatmul.f32.gmra.mxu0 %v1535_v11  ;;  %v2883_v11 = vpop.f32.mrf.mxu0 }
 0x212   : > { %3308 = vst [vmem:[#allocation59_spill] sm:$0xff] %v2883_v11 }
 0x213   : > { %v2869_v23 = vpop.f32.mrf.mxu2 }
 0x217   : > { %1738 = vmatmul.f32.gmra.mxu1 %v2632_v48 }
 0x218   : > { %1490 = vmatmul.f32.gmra.mxu3 %v1398_v13  ;;  %1294 = vmatmul.f32.vlgmr.msra.gmra.mxu2 %v2684_v36  ;;  %v2895_v41 = vpop.f32.mrf.mxu1 }
 0x219   : > { %1626 = vmatmul.f32.gmra.mxu0 %v3307_v4  ;;  %v2892_v48 = vpop.f32.mrf.mxu0 }
 0x21a   : > { %3309 = vst [vmem:[#allocation60_spill] sm:$0xff] %v2892_v48 }
 0x21b   : > { %v2881_v25 = vpop.f32.mrf.mxu2 }
 0x21f   : > { %1741 = vmatmul.f32.gmra.mxu1 %v2637_v51 }
 0x220   : > { %1297 = vmatmul.f32.gmra.mxu2 %v2692_v7  ;;  %v2901_v51 = vpop.f32.mrf.mxu1 }
 0x221   : > { %1629 = vmatmul.f32.gmra.mxu0 %v2161_v38 }
 0x223   : > { %v2889_v13 = vpop.f32.mrf.mxu2 }
 0x227   : > { %1744 = vmatmul.f32.gmra.mxu1 %v2640_v61 }
 0x228   : > { %1300 = vmatmul.f32.gmra.mxu2 %v2701_v55  ;;  %v2909_v55 = vpop.f32.mrf.mxu1 }
 0x229   : > { %1632 = vmatmul.f32.gmra.mxu0 %v2161_v38  ;;  %3310 = vst [vmem:[#allocation61_spill] sm:$0xff] %v2909_v55 }
 0x22b   : > { %v2897_v36 = vpop.f32.mrf.mxu2 }
 0x22f   : > { %1747 = vmatmul.f32.gmra.mxu1 %v2643_v15 }
 0x230   : > { %1303 = vmatmul.f32.gmra.mxu2 %v2710_v62  ;;  %v2915_v15 = vpop.f32.mrf.mxu1 }
 0x231   : > { %3311 = vst [vmem:[#allocation62_spill] sm:$0xff] %v2915_v15 }
 0x233   : > { %v2903_v7 = vpop.f32.mrf.mxu2 }
 0x237   : > { %1750 = vmatmul.f32.gmra.mxu1 %v2648_v35  ;;  %v2921_v35 = vpop.f32.mrf.mxu3 }
 0x238   : > { %1306 = vmatmul.f32.gmra.mxu2 %v2723_v47  ;;  %3312 = vst [vmem:[#allocation63_spill] sm:$0xff] %v2921_v35  ;;  %v2925_v47 = vpop.f32.mrf.mxu1 }
 0x239   : > { %3313 = vst [vmem:[#allocation64_spill] sm:$0xff] %v2925_v47 }
 0x23b   : > { %v2907_v61 = vpop.f32.mrf.mxu2 }
 0x23f   : > { %1753 = vmatmul.f32.gmra.mxu1 %v2655_v49 }
 0x240   : > { %1309 = vmatmul.f32.gmra.mxu2 %v2732_v56  ;;  %v2929_v56 = vpop.f32.mrf.mxu3 }
 0x241   : > { %3314 = vst [vmem:[#allocation65_spill] sm:$0xff] %v2929_v56 }
 0x243   : > { %v2913_v38 = vpop.f32.mrf.mxu2 }
 0x247   : > { %1756 = vmatmul.f32.gmra.mxu1 %v2662_v58  ;;  %v2933_v58 = vpop.f32.mrf.mxu0 }
 0x248   : > { %1312 = vmatmul.f32.gmra.mxu2 %v2741_v20  ;;  %3315 = vst [vmem:[#allocation66_spill] sm:$0xff] %v2933_v58  ;;  %v2935_v20 = vpop.f32.mrf.mxu1 }
 0x249   : > { %3316 = vst [vmem:[#allocation67_spill] sm:$0xff] %v2935_v20 }
 0x24b   : > { %v2919_v62 = vpop.f32.mrf.mxu2 }
 0x24f   : > { %1759 = vmatmul.f32.gmra.mxu1 %v2667_v3  ;;  %v2940_v3 = vpop.f32.mrf.mxu3 }
 0x250   : > { %1315 = vmatmul.f32.gmra.mxu2 %v2752_v52  ;;  %3317 = vst [vmem:[#allocation68_spill] sm:$0xff] %v2940_v3  ;;  %v2943_v52 = vpop.f32.mrf.mxu0  ;;  %v2947_v56 = vpop.f32.mrf.mxu1 }
 0x251   : > { %3318 = vst [vmem:[#allocation69_spill] sm:$0xff] %v2943_v52 }
 0x252   : > { %3319 = vst [vmem:[#allocation70_spill] sm:$0xff] %v2947_v56 }
 0x253   : > { %v2927_v49 = vpop.f32.mrf.mxu2 }
 0x257   : > { %1762 = vmatmul.f32.gmra.mxu1 %v2675_v18 }
 0x258   : > { %1318 = vmatmul.f32.gmra.mxu2 %v2763_v45  ;;  %v2950_v45 = vpop.f32.mrf.mxu3  ;;  %v2954_v20 = vpop.f32.mrf.mxu0 }
 0x259   : > { %3320 = vst [vmem:[#allocation71_spill] sm:$0xff] %v2950_v45  ;;  %v2956_v58 = vpop.f32.mrf.mxu1 }
 0x25a   : > { %3321 = vst [vmem:[#allocation72_spill] sm:$0xff] %v2954_v20 }
 0x25b   : > { %v2937_v4 = vpop.f32.mrf.mxu2  ;;  %3322 = vst [vmem:[#allocation73_spill] sm:$0xff] %v2956_v58 }
 0x25f   : > { %1765 = vmatmul.f32.gmra.mxu1 %v2680_v30 }
 0x260   : > { %1321 = vmatmul.f32.gmra.mxu2 %v2774_v33  ;;  %v1434_v33 = vpop.f32.mrf.mxu3  ;;  %v1573_v52 = vpop.f32.mrf.mxu0 }
 0x261   : > { %v1712_v3 = vpop.f32.mrf.mxu1 }
 0x263   : > { %v2945_v47 = vpop.f32.mrf.mxu2 }
 0x268   : > { %1324 = vmatmul.f32.gmra.mxu2 %v2783_v1  ;;  %v1437_v1 = vpop.f32.mrf.mxu3  ;;  %v1576_v45 = vpop.f32.mrf.mxu0 }
 0x269   : > { %v1715_v48 = vpop.f32.mrf.mxu1 }
 0x26b   : > { %v2952_v18 = vpop.f32.mrf.mxu2 }
 0x270   : > { %1327 = vmatmul.f32.gmra.mxu2 %v2790_v50  ;;  %v1440_v20 = vpop.f32.mrf.mxu3  ;;  %v2968_v50 = vpop.f32.mrf.mxu0 }
 0x271   : > { %v2972_v35 = vpop.f32.mrf.mxu1 }
 0x273   : > { %v2959_v30 = vpop.f32.mrf.mxu2 }
 0x278   : > { %1330 = vmatmul.f32.gmra.mxu2 %v2801_v5  ;;  %v761_v5 = vadd.f32 %v2828_v22, %v2646_v19  ;;  %v2978_v11 = vpop.f32.mrf.mxu3 }
 0x279   : > { %v2987_v55 = vpop.f32.mrf.mxu1 }
 0x27b   : > { %v2962_v56 = vpop.f32.mrf.mxu2 }
 0x27c   : > { %3323 = vst [vmem:[#allocation74_spill] sm:$0xff] %v2962_v56 }
 0x280   : > { %1333 = vmatmul.f32.gmra.mxu2 %v2814_v27  ;;  %v941_v27 = vadd.f32 %v2673_v16, %v761_v5  ;;  %v2992_v22 = vpop.f32.mrf.mxu3 }
 0x283   : > { %v2965_v15 = vpop.f32.mrf.mxu2 }
 0x284   : > { %3324 = vst [vmem:[#allocation75_spill] sm:$0xff] %v2965_v15  ;;  %v2982_v15 = vpop.f32.mrf.mxu0 }
 0x288   : > { %1336 = vmatmul.f32.gmra.mxu2 %v2825_v39  ;;  %v764_v39 = vadd.f32 %v2839_v2, %v2653_v42  ;;  %v1399_v2 = vld [vmem:[#allocation2 + $0xbc] sm:$0xff] }
 0x289   : > { %1493 = vmatmul.f32.gmra.mxu3 %v1399_v2 }
 0x28a   : > { %v942_v19 = vadd.f32 %v2688_v37, %v764_v39  ;;  %v3002_v37 = vld [vmem:[%s3238_s5] ss:$0 sm:$0xff]  ;;  %v3017_v39 = vpop.f32.mrf.mxu3 }
 0x28b   : > { %v2970_v58 = vpop.f32.mrf.mxu2 }
 0x28c   : > { %3325 = vst [vmem:[#allocation76_spill] sm:$0xff] %v2970_v58  ;;  %v1080_v58 = vadd.f32 %v2682_v31, %v941_v27  ;;  %v1081_v42 = vadd.f32 %v2694_v46, %v942_v19  ;;  %v2997_v31 = vpop.f32.mrf.mxu0 }
 0x290   : > { %1339 = vmatmul.f32.gmra.mxu2 %v2834_v32  ;;  %v1219_v32 = vadd.f32 %v2730_v54, %v1080_v58  ;;  %v1676_v54 = vld [vmem:[#allocation2 + $0xb6] sm:$0xff] }
 0x291   : > { %1768 = vmatmul.f32.gmra.mxu1 %v1676_v54  ;;  %v1259_v54 = vld [vmem:[#allocation2 + $0xa8] sm:$0xff] }
 0x293   : > { %v2980_v56 = vpop.f32.mrf.mxu2 }
 0x294   : > { %3326 = vst [vmem:[#allocation77_spill] sm:$0xff] %v2980_v56  ;;  %v767_v56 = vadd.f32 %v2851_v12, %v2660_v53  ;;  %v3011_v12 = vld [vmem:[%s3239_s6] ss:$0 sm:$0xff] }
 0x296   : > { %v943_v53 = vadd.f32 %v2697_v21, %v767_v56 }
 0x298   : > { %1342 = vmatmul.f32.gmra.mxu2 %v2841_v34  ;;  %v3005_v34 = vpop.f32.mrf.mxu1  ;;  %v1082_v56 = vadd.f32 %v2704_v29, %v943_v53  ;;  %v1452_v53 = vpop.f32.mrf.mxu3 }
 0x29b   : > { %v1295_v16 = vpop.f32.mrf.mxu2 }
 0x29c   : > { %v1358_v5 = vadd.f32 %v1295_v16, %v1219_v32  ;;  %v3027_v32 = vpop.f32.mrf.mxu0 }
 0x29e   : > { %v1497_v6 = vadd.f32 %v1434_v33, %v1358_v5 }
 0x2a0   : > { %v1636_v27 = vadd.f32 %v1573_v52, %v1497_v6  ;;  %1345 = vmatmul.f32.gmra.mxu2 %v2853_v9  ;;  %v1220_v6 = vadd.f32 %v2746_v26, %v1081_v42  ;;  %v770_v9 = vadd.f32 %v2861_v57, %v2665_v63  ;;  %v1727_v29 = vpop.f32.mrf.mxu1 }
 0x2a2   : > { %v1775_v46 = vadd.f32 %v1712_v3, %v1636_v27  ;;  %v1677_v3 = vld [vmem:[#allocation2 + $0xbe] sm:$0xff]  ;;  %v944_v63 = vadd.f32 %v2708_v59, %v770_v9  ;;  %v1455_v9 = vpop.f32.mrf.mxu3 }
 0x2a3   : > { %v1298_v58 = vpop.f32.mrf.mxu2  ;;  %1771 = vmatmul.f32.gmra.mxu1 %v1677_v3 }
 0x2a4   : > { %v1800_v52 = vmul.f32 %v3002_v37, %v1775_v46  ;;  %v1359_v33 = vadd.f32 %v1298_v58, %v1220_v6  ;;  %v1083_v27 = vadd.f32 %v2717_v8, %v944_v63  ;;  %v776_v58 = vadd.f32 %v2881_v25, %v2678_v24 }
 0x2a6   : > { %v1825_v19 = vadd.f32 %v3011_v12, %v1800_v52  ;;  %v1498_v21 = vadd.f32 %v1437_v1, %v1359_v33  ;;  %v1221_v1 = vadd.f32 %v2757_v14, %v1082_v56  ;;  %v1222_v46 = vadd.f32 %v2770_v17, %v1083_v27 }
 0x2a8   : > { %1846 = vst [vmem:[%s3023_s19] sm:$0xff] %v1825_v19  ;;  %v1637_v26 = vadd.f32 %v1576_v45, %v1498_v21  ;;  %1348 = vmatmul.f32.gmra.mxu2 %v2865_v28  ;;  %v773_v45 = vadd.f32 %v2869_v23, %v2671_v10  ;;  %v1591_v10 = vpop.f32.mrf.mxu0  ;;  %v1730_v8 = vpop.f32.mrf.mxu1  ;;  %v3327_v21 = vld [vmem:[#allocation33_spill] sm:$0xff] }
 0x2aa   : > { %v1776_v57 = vadd.f32 %v1715_v48, %v1637_v26  ;;  %v945_v14 = vadd.f32 %v2721_v43, %v773_v45  ;;  %v1260_v43 = vld [vmem:[#allocation2 + $0xb0] sm:$0xff]  ;;  %v3331_v45 = vld [vmem:[#allocation37_spill] sm:$0xff] }
 0x2ab   : > { %v1301_v16 = vpop.f32.mrf.mxu2 }
 0x2ac   : > { %v1801_v5 = vmul.f32 %v3002_v37, %v1776_v57  ;;  %v1360_v42 = vadd.f32 %v1301_v16, %v1221_v1  ;;  %v1084_v33 = vadd.f32 %v2728_v44, %v945_v14  ;;  %v3328_v44 = vld [vmem:[#allocation15_spill] sm:$0xff]  ;;  %v3329_v57 = vld [vmem:[#allocation22_spill] sm:$0xff] }
 0x2ad   : > { %v779_v3 = vadd.f32 %v2889_v13, %v3328_v44  ;;  %v3330_v16 = vld [vmem:[#allocation23_spill] sm:$0xff]  ;;  %v1458_v13 = vpop.f32.mrf.mxu3 }
 0x2ae   : > { %v1826_v28 = vadd.f32 %v3011_v12, %v1801_v5  ;;  %v1499_v2 = vadd.f32 %v1440_v20, %v1360_v42  ;;  %v1223_v24 = vadd.f32 %v3327_v21, %v1084_v33 }
 0x2af   : > { %v947_v5 = vadd.f32 %v3330_v16, %v779_v3  ;;  %v3340_v16 = vld [vmem:[#allocation19_spill] sm:$0xff] }
 0x2b0   : > { %1847 = vst [vmem:[%s3023_s19 + $0x8] sm:$0xf] %v1826_v28  ;;  %v1638_v59 = vadd.f32 %v2968_v50, %v1499_v2  ;;  %1351 = vmatmul.f32.gmra.mxu2 %v1259_v54  ;;  %v1594_v26 = vpop.f32.mrf.mxu0 }
 0x2b1   : > { %1848 = vst [vmem:[%s3023_s19 + $0x6] sm:$0xc0] %v1826_v28 }
 0x2b2   : > { %v1777_v48 = vadd.f32 %v2972_v35, %v1638_v59  ;;  %v946_v35 = vadd.f32 %v2737_v60, %v776_v58  ;;  %v1733_v60 = vpop.f32.mrf.mxu1 }
 0x2b3   : > { %v1304_v23 = vpop.f32.mrf.mxu2 }
 0x2b4   : > { %v1802_v20 = vmul.f32 %v3002_v37, %v1777_v48  ;;  %v1361_v6 = vadd.f32 %v1304_v23, %v1222_v46  ;;  %v1085_v1 = vadd.f32 %v3329_v57, %v946_v35  ;;  %v3336_v35 = vld [vmem:[#allocation17_spill] sm:$0xff] }
 0x2b6   : > { %v1827_v50 = vadd.f32 %v3011_v12, %v1802_v20  ;;  %v1500_v52 = vadd.f32 %v2978_v11, %v1361_v6  ;;  %v1224_v28 = vadd.f32 %v3331_v45, %v1085_v1  ;;  %v3334_v6 = vld [vmem:[#allocation27_spill] sm:$0xff]  ;;  %v3341_v45 = vld [vmem:[#allocation32_spill] sm:$0xff] }
 0x2b8   : > { %1849 = vst [vmem:[%s3023_s19 + $0xe] sm:$0xff] %v1827_v50  ;;  %v1639_v17 = vadd.f32 %v2982_v15, %v1500_v52  ;;  %1354 = vmatmul.f32.gmra.mxu2 %v1260_v43  ;;  %v1597_v23 = vpop.f32.mrf.mxu0  ;;  %v3335_v52 = vld [vmem:[#allocation41_spill] sm:$0xff] }
 0x2ba   : > { %v1778_v19 = vadd.f32 %v2987_v55, %v1639_v17  ;;  %v1736_v20 = vpop.f32.mrf.mxu1 }
 0x2bb   : > { %v1307_v25 = vpop.f32.mrf.mxu2 }
 0x2bc   : > { %v1803_v56 = vmul.f32 %v3002_v37, %v1778_v19  ;;  %v1362_v11 = vadd.f32 %v1307_v25, %v1223_v24  ;;  %v1461_v19 = vpop.f32.mrf.mxu3  ;;  %v3337_v25 = vld [vmem:[#allocation29_spill] sm:$0xff] }
 0x2be   : > { %v1828_v63 = vadd.f32 %v3011_v12, %v1803_v56  ;;  %v1501_v15 = vadd.f32 %v2992_v22, %v1362_v11  ;;  %v3332_v22 = vld [vmem:[#allocation16_spill] sm:$0xff] }
 0x2bf   : > { %v782_v59 = vadd.f32 %v2897_v36, %v3332_v22  ;;  %v3343_v22 = vld [vmem:[#allocation49_spill] sm:$0xff] }
 0x2c0   : > { %1850 = vst [vmem:[%s3023_s19 + $0x16] sm:$0x3] %v1828_v63  ;;  %v1640_v55 = vadd.f32 %v2997_v31, %v1501_v15  ;;  %v3333_v31 = vld [vmem:[#allocation25_spill] sm:$0xff]  ;;  %v1600_v11 = vpop.f32.mrf.mxu0 }
 0x2c1   : > { %1851 = vst [vmem:[%s3023_s19 + $0x14] sm:$0xf0] %v1828_v63  ;;  %v1086_v46 = vadd.f32 %v3333_v31, %v947_v5  ;;  %v948_v58 = vadd.f32 %v3334_v6, %v782_v59  ;;  %v3339_v63 = vld [vmem:[#allocation46_spill] sm:$0xff]  ;;  %v788_v5 = vadd.f32 %v2907_v61, %v3340_v16 }
 0x2c2   : > { %v1779_v42 = vadd.f32 %v3005_v34, %v1640_v55  ;;  %v1739_v57 = vpop.f32.mrf.mxu1 }
 0x2c3   : > { %v1310_v2 = vpop.f32.mrf.mxu2  ;;  %v1225_v33 = vadd.f32 %v3335_v52, %v1086_v46  ;;  %v1087_v56 = vadd.f32 %v3337_v25, %v948_v58  ;;  %v3348_v25 = vld [vmem:[#allocation20_spill] sm:$0xff] }
 0x2c4   : > { %v1804_v27 = vmul.f32 %v3002_v37, %v1779_v42  ;;  %v1363_v54 = vadd.f32 %v1310_v2, %v1224_v28 }
 0x2c5   : > { %v1226_v15 = vadd.f32 %v3339_v63, %v1087_v56 }
 0x2c6   : > { %v1829_v14 = vadd.f32 %v3011_v12, %v1804_v27  ;;  %v1502_v48 = vadd.f32 %v3017_v39, %v1363_v54  ;;  %v785_v39 = vadd.f32 %v2903_v7, %v3336_v35 }
 0x2c8   : > { %1852 = vst [vmem:[%s3023_s19 + $0x1c] sm:$0xff] %v1829_v14  ;;  %v1641_v34 = vadd.f32 %v3027_v32, %v1502_v48  ;;  %v1603_v14 = vpop.f32.mrf.mxu0 }
 0x2ca   : > { %v1780_v50 = vadd.f32 %v1727_v29, %v1641_v34  ;;  %v3338_v29 = vld [vmem:[#allocation30_spill] sm:$0xff]  ;;  %v1742_v61 = vpop.f32.mrf.mxu1 }
 0x2cb   : > { %v1313_v43 = vpop.f32.mrf.mxu2  ;;  %v949_v44 = vadd.f32 %v3338_v29, %v785_v39  ;;  %v3344_v34 = vld [vmem:[#allocation18_spill] sm:$0xff]  ;;  %v3349_v29 = vld [vmem:[#allocation40_spill] sm:$0xff] }
 0x2cc   : > { %v1805_v36 = vmul.f32 %v3002_v37, %v1780_v50  ;;  %v1364_v17 = vadd.f32 %v1313_v43, %v1225_v33  ;;  %v3345_v50 = vld [vmem:[#allocation36_spill] sm:$0xff] }
 0x2cd   : > { %v1088_v28 = vadd.f32 %v3341_v45, %v949_v44 }
 0x2ce   : > { %v1830_v21 = vadd.f32 %v3011_v12, %v1805_v36  ;;  %v1503_v24 = vadd.f32 %v1452_v53, %v1364_v17  ;;  %v3347_v17 = vld [vmem:[#allocation52_spill] sm:$0xff] }
 0x2cf   : > { %v1227_v59 = vadd.f32 %v3343_v22, %v1088_v28  ;;  %v3353_v28 = vld [vmem:[#allocation45_spill] sm:$0xff] }
 0x2d0   : > { %1853 = vst [vmem:[%s3023_s19 + $0x22] sm:$0xfc] %v1830_v21  ;;  %v1642_v32 = vadd.f32 %v1591_v10, %v1503_v24  ;;  %v1464_v10 = vpop.f32.mrf.mxu3 }
 0x2d2   : > { %v1781_v3 = vadd.f32 %v1730_v8, %v1642_v32  ;;  %v3342_v8 = vld [vmem:[#allocation34_spill] sm:$0xff]  ;;  %v1745_v44 = vpop.f32.mrf.mxu1 }
 0x2d3   : > { %v1316_v1 = vpop.f32.mrf.mxu2  ;;  %v950_v27 = vadd.f32 %v3342_v8, %v788_v5 }
 0x2d4   : > { %v1806_v55 = vmul.f32 %v3002_v37, %v1781_v3  ;;  %v1365_v7 = vadd.f32 %v1316_v1, %v1226_v15  ;;  %v3351_v1 = vld [vmem:[#allocation55_spill] sm:$0xff] }
 0x2d5   : > { %v1089_v52 = vadd.f32 %v3345_v50, %v950_v27  ;;  %v3354_v27 = vld [vmem:[#allocation47_spill] sm:$0xff] }
 0x2d6   : > { %v1831_v53 = vadd.f32 %v3011_v12, %v1806_v55  ;;  %v1504_v42 = vadd.f32 %v1455_v9, %v1365_v7  ;;  %v791_v9 = vadd.f32 %v2913_v38, %v3344_v34  ;;  %v1606_v38 = vpop.f32.mrf.mxu0 }
 0x2d7   : > { %v1228_v35 = vadd.f32 %v3347_v17, %v1089_v52 }
 0x2d8   : > { %1854 = vst [vmem:[%s3023_s19 + $0x2a] sm:$0x3f] %v1831_v53  ;;  %v1643_v2 = vadd.f32 %v1594_v26, %v1504_v42  ;;  %v1467_v43 = vpop.f32.mrf.mxu3  ;;  %v3352_v53 = vld [vmem:[#allocation21_spill] sm:$0xff] }
 0x2da   : > { %v1782_v54 = vadd.f32 %v1733_v60, %v1643_v2  ;;  %v3346_v60 = vld [vmem:[#allocation38_spill] sm:$0xff] }
 0x2db   : > { %v1319_v48 = vpop.f32.mrf.mxu2  ;;  %v951_v33 = vadd.f32 %v3346_v60, %v791_v9 }
 0x2dc   : > { %v1807_v31 = vmul.f32 %v3002_v37, %v1782_v54  ;;  %v1366_v46 = vadd.f32 %v1319_v48, %v1227_v59 }
 0x2de   : > { %v1832_v6 = vadd.f32 %v3011_v12, %v1807_v31  ;;  %v1505_v58 = vadd.f32 %v1458_v13, %v1366_v46  ;;  %v794_v13 = vadd.f32 %v2919_v62, %v3348_v25  ;;  %v3355_v46 = vld [vmem:[#allocation24_spill] sm:$0xff] }
 0x2e0   : > { %1855 = vst [vmem:[%s3023_s19 + $0x30] sm:$0xff] %v1832_v6  ;;  %v1644_v26 = vadd.f32 %v1597_v23, %v1505_v58  ;;  %v1090_v23 = vadd.f32 %v3349_v29, %v951_v33  ;;  %v1470_v16 = vpop.f32.mrf.mxu3  ;;  %v3356_v58 = vld [vmem:[#allocation48_spill] sm:$0xff] }
 0x2e2   : > { %v1783_v36 = vadd.f32 %v1736_v20, %v1644_v26  ;;  %v3350_v20 = vld [vmem:[#allocation43_spill] sm:$0xff]  ;;  %v1229_v55 = vadd.f32 %v3351_v1, %v1090_v23 }
 0x2e3   : > { %v1322_v39 = vpop.f32.mrf.mxu2  ;;  %v952_v63 = vadd.f32 %v3350_v20, %v794_v13 }
 0x2e4   : > { %v1808_v21 = vmul.f32 %v3002_v37, %v1783_v36  ;;  %v1367_v24 = vadd.f32 %v1322_v39, %v1228_v35  ;;  %v3358_v35 = vld [vmem:[#allocation26_spill] sm:$0xff] }
 0x2e5   : > { %v1091_v2 = vadd.f32 %v3353_v28, %v952_v63  ;;  %v3361_v63 = vld [vmem:[#allocation28_spill] sm:$0xff] }
 0x2e6   : > { %v1833_v56 = vadd.f32 %v3011_v12, %v1808_v21  ;;  %v1506_v32 = vadd.f32 %v1461_v19, %v1367_v24  ;;  %v797_v19 = vadd.f32 %v2927_v49, %v3352_v53  ;;  %v3359_v24 = vld [vmem:[#allocation51_spill] sm:$0xff] }
 0x2e7   : > { %v1230_v59 = vadd.f32 %v2873_v0, %v1091_v2 }
 0x2e8   : > { %1856 = vst [vmem:[%s3023_s19 + $0x38] sm:$0xf] %v1833_v56  ;;  %v1645_v3 = vadd.f32 %v1600_v11, %v1506_v32  ;;  %v1609_v11 = vpop.f32.mrf.mxu0  ;;  %v953_v54 = vadd.f32 %v3354_v27, %v797_v19  ;;  %v1473_v34 = vpop.f32.mrf.mxu3 }
 0x2e9   : > { %1857 = vst [vmem:[%s3023_s19 + $0x36] sm:$0xc0] %v1833_v56  ;;  %v3360_v56 = vld [vmem:[#allocation53_spill] sm:$0xff] }
 0x2ea   : > { %v1784_v15 = vadd.f32 %v1739_v57, %v1645_v3  ;;  %v1748_v57 = vpop.f32.mrf.mxu1 }
 0x2eb   : > { %v1325_v7 = vpop.f32.mrf.mxu2 }
 0x2ec   : > { %v1809_v5 = vmul.f32 %v3002_v37, %v1784_v15  ;;  %v1368_v62 = vadd.f32 %v1325_v7, %v1229_v55  ;;  %v806_v15 = vadd.f32 %v2952_v18, %v3361_v63  ;;  %v3362_v7 = vld [vmem:[#allocation54_spill] sm:$0xff]  ;;  %v3364_v18 = vld [vmem:[#allocation31_spill] sm:$0xff] }
 0x2ee   : > { %v1834_v42 = vadd.f32 %v3011_v12, %v1809_v5  ;;  %v1507_v45 = vadd.f32 %v1464_v10, %v1368_v62  ;;  %v800_v10 = vadd.f32 %v2937_v4, %v3355_v46  ;;  %v3363_v62 = vld [vmem:[#allocation56_spill] sm:$0xff]  ;;  %v3367_v46 = vld [vmem:[#allocation61_spill] sm:$0xff] }
 0x2ef   : > { %v956_v53 = vadd.f32 %v3363_v62, %v806_v15 }
 0x2f0   : > { %1858 = vst [vmem:[%s3023_s19 + $0x3e] sm:$0xff] %v1834_v42  ;;  %v1646_v8 = vadd.f32 %v1603_v14, %v1507_v45  ;;  %v1092_v14 = vadd.f32 %v3356_v58, %v953_v54  ;;  %v1612_v52 = vpop.f32.mrf.mxu0  ;;  %v1476_v25 = vpop.f32.mrf.mxu3  ;;  %v3365_v54 = vld [vmem:[#allocation57_spill] sm:$0xff] }
 0x2f2   : > { %v1785_v22 = vadd.f32 %v1742_v61, %v1646_v8  ;;  %v3357_v61 = vld [vmem:[#allocation50_spill] sm:$0xff]  ;;  %v1231_v60 = vadd.f32 %v2885_v40, %v1092_v14  ;;  %v1751_v33 = vpop.f32.mrf.mxu1  ;;  %v809_v8 = vadd.f32 %v2959_v30, %v3364_v18  ;;  %v3368_v30 = vld [vmem:[#allocation35_spill] sm:$0xff] }
 0x2f3   : > { %v1328_v48 = vpop.f32.mrf.mxu2  ;;  %v954_v0 = vadd.f32 %v3357_v61, %v800_v10  ;;  %v3369_v14 = vld [vmem:[#allocation74_spill] sm:$0xff] }
 0x2f4   : > { %v1810_v31 = vmul.f32 %v3002_v37, %v1785_v22  ;;  %v1369_v49 = vadd.f32 %v1328_v48, %v1230_v59  ;;  %v1095_v22 = vadd.f32 %v3365_v54, %v956_v53  ;;  %v3378_v53 = vld [vmem:[#allocation42_spill] sm:$0xff]  ;;  %v3382_v54 = vld [vmem:[#allocation67_spill] sm:$0xff] }
 0x2f6   : > { %v1835_v9 = vadd.f32 %v3011_v12, %v1810_v31  ;;  %v1508_v6 = vadd.f32 %v1467_v43, %v1369_v49  ;;  %v803_v43 = vadd.f32 %v2945_v47, %v3358_v35  ;;  %v3366_v31 = vld [vmem:[#allocation58_spill] sm:$0xff]  ;;  %v1234_v10 = vadd.f32 %v3367_v46, %v1095_v22  ;;  %v3383_v46 = vld [vmem:[#allocation44_spill] sm:$0xff] }
 0x2f7   : > { %v957_v49 = vadd.f32 %v3366_v31, %v809_v8  ;;  %v3381_v8 = vld [vmem:[#allocation68_spill] sm:$0xff] }
 0x2f8   : > { %1859 = vst [vmem:[%s3023_s19 + $0x46] sm:$0x3] %v1835_v9  ;;  %v1647_v50 = vadd.f32 %v1606_v38, %v1508_v6  ;;  %v1093_v38 = vadd.f32 %v3359_v24, %v954_v0  ;;  %v955_v32 = vadd.f32 %v3360_v56, %v803_v43  ;;  %v1615_v23 = vpop.f32.mrf.mxu0  ;;  %v3370_v0 = vld [vmem:[#allocation59_spill] sm:$0xff]  ;;  %v3372_v43 = vld [vmem:[#allocation62_spill] sm:$0xff] }
 0x2f9   : > { %1860 = vst [vmem:[%s3023_s19 + $0x44] sm:$0xf0] %v1835_v9 }
 0x2fa   : > { %v1786_v26 = vadd.f32 %v1745_v44, %v1647_v50  ;;  %v1232_v29 = vadd.f32 %v2895_v41, %v1093_v38  ;;  %v1754_v47 = vpop.f32.mrf.mxu1  ;;  %v1479_v41 = vpop.f32.mrf.mxu3  ;;  %v812_v50 = vadd.f32 %v3369_v14, %v3368_v30 }
 0x2fb   : > { %v1331_v36 = vpop.f32.mrf.mxu2 }
 0x2fc   : > { %v1811_v4 = vmul.f32 %v3002_v37, %v1786_v26  ;;  %v1370_v17 = vadd.f32 %v1331_v36, %v1231_v60  ;;  %v1096_v26 = vadd.f32 %v3370_v0, %v957_v49 }
 0x2fe   : > { %v1836_v39 = vadd.f32 %v3011_v12, %v1811_v4  ;;  %v1509_v21 = vadd.f32 %v1470_v16, %v1370_v17  ;;  %v1094_v16 = vadd.f32 %v3362_v7, %v955_v32  ;;  %v3371_v4 = vld [vmem:[#allocation63_spill] sm:$0xff] }
 0x2ff   : > { %v958_v17 = vadd.f32 %v3371_v4, %v812_v50  ;;  %v3386_v50 = vld [vmem:[#allocation71_spill] sm:$0xff] }
 0x300   : > { %1861 = vst [vmem:[%s3023_s19 + $0x4c] sm:$0xff] %v1836_v39  ;;  %v1648_v13 = vadd.f32 %v1609_v11, %v1509_v21  ;;  %v1233_v42 = vadd.f32 %v2901_v51, %v1094_v16  ;;  %v1618_v11 = vpop.f32.mrf.mxu0  ;;  %v1235_v39 = vadd.f32 %v3372_v43, %v1096_v26  ;;  %v3387_v26 = vld [vmem:[#allocation70_spill] sm:$0xff] }
 0x302   : > { %v1787_v40 = vadd.f32 %v1748_v57, %v1648_v13  ;;  %v1757_v59 = vpop.f32.mrf.mxu1  ;;  %v1482_v9 = vpop.f32.mrf.mxu3  ;;  %v3374_v13 = vld [vmem:[#allocation75_spill] sm:$0xff] }
 0x303   : > { %v1334_v44 = vpop.f32.mrf.mxu2 }
 0x304   : > { %v1812_v3 = vmul.f32 %v3002_v37, %v1787_v40  ;;  %v1371_v20 = vadd.f32 %v1334_v44, %v1232_v29 }
 0x306   : > { %v1837_v1 = vadd.f32 %v3011_v12, %v1812_v3  ;;  %v1510_v55 = vadd.f32 %v1473_v34, %v1371_v20 }
 0x308   : > { %1862 = vst [vmem:[%s3023_s19 + $0x52] sm:$0xfc] %v1837_v1  ;;  %v1649_v5 = vadd.f32 %v1612_v52, %v1510_v55  ;;  %v1621_v60 = vpop.f32.mrf.mxu0  ;;  %v3377_v1 = vld [vmem:[#allocation64_spill] sm:$0xff] }
 0x30a   : > { %v1788_v19 = vadd.f32 %v1751_v33, %v1649_v5  ;;  %v1760_v36 = vpop.f32.mrf.mxu1  ;;  %v1485_v32 = vpop.f32.mrf.mxu3 }
 0x30b   : > { %v1337_v45 = vpop.f32.mrf.mxu2 }
 0x30c   : > { %v1813_v28 = vmul.f32 %v3002_v37, %v1788_v19  ;;  %v1372_v2 = vadd.f32 %v1337_v45, %v1233_v42 }
 0x30e   : > { %v1838_v57 = vadd.f32 %v3011_v12, %v1813_v28  ;;  %v1511_v27 = vadd.f32 %v1476_v25, %v1372_v2  ;;  %v3373_v25 = vld [vmem:[#allocation39_spill] sm:$0xff]  ;;  %v3380_v28 = vld [vmem:[#allocation66_spill] sm:$0xff] }
 0x30f   : > { %v815_v56 = vadd.f32 %v3374_v13, %v3373_v25  ;;  %v3389_v13 = vld [vmem:[#allocation73_spill] sm:$0xff] }
 0x310   : > { %1863 = vst [vmem:[%s3023_s19 + $0x5a] sm:$0x3f] %v1838_v57  ;;  %v1650_v48 = vadd.f32 %v1615_v23, %v1511_v27  ;;  %v3375_v23 = vld [vmem:[#allocation60_spill] sm:$0xff]  ;;  %v1624_v20 = vpop.f32.mrf.mxu0 }
 0x311   : > { %v1097_v44 = vadd.f32 %v3375_v23, %v958_v17 }
 0x312   : > { %v1789_v51 = vadd.f32 %v1754_v47, %v1650_v48  ;;  %v3376_v47 = vld [vmem:[#allocation65_spill] sm:$0xff]  ;;  %v1763_v7 = vpop.f32.mrf.mxu1 }
 0x313   : > { %v1340_v34 = vpop.f32.mrf.mxu2  ;;  %v959_v63 = vadd.f32 %v3376_v47, %v815_v56  ;;  %v1236_v55 = vadd.f32 %v3377_v1, %v1097_v44 }
 0x314   : > { %v1814_v6 = vmul.f32 %v3002_v37, %v1789_v51  ;;  %v1373_v58 = vadd.f32 %v1340_v34, %v1234_v10  ;;  %v3384_v10 = vld [vmem:[#allocation77_spill] sm:$0xff] }
 0x315   : > { %v1098_v2 = vadd.f32 %v3380_v28, %v959_v63  ;;  %v821_v34 = vadd.f32 %v3384_v10, %v3383_v46 }
 0x316   : > { %v1839_v52 = vadd.f32 %v3011_v12, %v1814_v6  ;;  %v1512_v61 = vadd.f32 %v1479_v41, %v1373_v58  ;;  %v3379_v41 = vld [vmem:[#allocation76_spill] sm:$0xff]  ;;  %v3385_v58 = vld [vmem:[#allocation69_spill] sm:$0xff] }
 0x317   : > { %v818_v19 = vadd.f32 %v3379_v41, %v3378_v53  ;;  %v1237_v22 = vadd.f32 %v3382_v54, %v1098_v2 }
 0x318   : > { %1864 = vst [vmem:[%s3023_s19 + $0x60] sm:$0xff] %v1839_v52  ;;  %v1651_v33 = vadd.f32 %v1618_v11, %v1512_v61  ;;  %v1488_v11 = vpop.f32.mrf.mxu3  ;;  %v961_v52 = vadd.f32 %v3386_v50, %v821_v34 }
 0x319   : > { %v960_v57 = vadd.f32 %v3381_v8, %v818_v19 }
 0x31a   : > { %v1790_v35 = vadd.f32 %v1757_v59, %v1651_v33  ;;  %v1627_v59 = vpop.f32.mrf.mxu0  ;;  %v1766_v51 = vpop.f32.mrf.mxu1 }
 0x31b   : > { %v1343_v21 = vpop.f32.mrf.mxu2  ;;  %v1099_v30 = vadd.f32 %v3385_v58, %v960_v57 }
 0x31c   : > { %v1815_v24 = vmul.f32 %v3002_v37, %v1790_v35  ;;  %v1374_v38 = vadd.f32 %v1343_v21, %v1235_v39  ;;  %v3388_v21 = vld [vmem:[#allocation72_spill] sm:$0xff] }
 0x31e   : > { %v1840_v40 = vadd.f32 %v3011_v12, %v1815_v24  ;;  %v1513_v29 = vadd.f32 %v1482_v9, %v1374_v38  ;;  %v1100_v24 = vadd.f32 %v3388_v21, %v961_v52 }
 0x320   : > { %1865 = vst [vmem:[%s3023_s19 + $0x68] sm:$0xf] %v1840_v40  ;;  %v1652_v3 = vadd.f32 %v1621_v60, %v1513_v29  ;;  %v1491_v61 = vpop.f32.mrf.mxu3  ;;  %v1238_v60 = vadd.f32 %v3387_v26, %v1099_v30  ;;  %v1239_v56 = vadd.f32 %v3389_v13, %v1100_v24 }
 0x321   : > { %1866 = vst [vmem:[%s3023_s19 + $0x66] sm:$0xc0] %v1840_v40 }
 0x322   : > { %v1791_v15 = vadd.f32 %v1760_v36, %v1652_v3  ;;  %v1630_v36 = vpop.f32.mrf.mxu0  ;;  %v1769_v35 = vpop.f32.mrf.mxu1 }
 0x323   : > { %v1346_v16 = vpop.f32.mrf.mxu2 }
 0x324   : > { %v1816_v5 = vmul.f32 %v3002_v37, %v1791_v15  ;;  %v1375_v62 = vadd.f32 %v1346_v16, %v1236_v55 }
 0x326   : > { %v1841_v42 = vadd.f32 %v3011_v12, %v1816_v5  ;;  %v1514_v45 = vadd.f32 %v1485_v32, %v1375_v62 }
 0x328   : > { %1867 = vst [vmem:[%s3023_s19 + $0x6e] sm:$0xff] %v1841_v42  ;;  %v1653_v18 = vadd.f32 %v1624_v20, %v1514_v45  ;;  %v1494_v40 = vpop.f32.mrf.mxu3 }
 0x32a   : > { %v1792_v27 = vadd.f32 %v1763_v7, %v1653_v18  ;;  %v1633_v44 = vpop.f32.mrf.mxu0  ;;  %v1772_v47 = vpop.f32.mrf.mxu1 }
 0x32b   : > { %v1349_v48 = vpop.f32.mrf.mxu2 }
 0x32c   : > { %v1817_v31 = vmul.f32 %v3002_v37, %v1792_v27  ;;  %v1376_v49 = vadd.f32 %v1349_v48, %v1237_v22 }
 0x32e   : > { %v1842_v9 = vadd.f32 %v3011_v12, %v1817_v31  ;;  %v1515_v6 = vadd.f32 %v1488_v11, %v1376_v49 }
 0x330   : > { %1868 = vst [vmem:[%s3023_s19 + $0x76] sm:$0x3] %v1842_v9  ;;  %v1654_v14 = vadd.f32 %v1627_v59, %v1515_v6 }
 0x331   : > { %1869 = vst [vmem:[%s3023_s19 + $0x74] sm:$0xf0] %v1842_v9 }
 0x332   : > { %v1793_v0 = vadd.f32 %v1766_v51, %v1654_v14 }
 0x333   : > { %v1352_v33 = vpop.f32.mrf.mxu2 }
 0x334   : > { %v1818_v4 = vmul.f32 %v3002_v37, %v1793_v0  ;;  %v1377_v17 = vadd.f32 %v1352_v33, %v1238_v60 }
 0x336   : > { %v1843_v43 = vadd.f32 %v3011_v12, %v1818_v4  ;;  %v1516_v39 = vadd.f32 %v1491_v61, %v1377_v17 }
 0x338   : > { %1870 = vst [vmem:[%s3023_s19 + $0x7c] sm:$0xff] %v1843_v43  ;;  %v1655_v38 = vadd.f32 %v1630_v36, %v1516_v39 }
 0x33a   : > { %v1794_v25 = vadd.f32 %v1769_v35, %v1655_v38 }
 0x33b   : > { %v1355_v32 = vpop.f32.mrf.mxu2 }
 0x33c   : > { %v1819_v29 = vmul.f32 %v3002_v37, %v1794_v25  ;;  %v1378_v23 = vadd.f32 %v1355_v32, %v1239_v56 }
 0x33e   : > { %v1844_v3 = vadd.f32 %v3011_v12, %v1819_v29  ;;  %v1517_v20 = vadd.f32 %v1494_v40, %v1378_v23 }
 0x340   : > { %1871 = vst [vmem:[%s3023_s19 + $0x82] sm:$0xfc] %v1844_v3  ;;  %v1656_v63 = vadd.f32 %v1633_v44, %v1517_v20 }
 0x342   : > { %v1795_v15 = vadd.f32 %v1772_v47, %v1656_v63 }
 0x344   : > { %v1820_v1 = vmul.f32 %v3002_v37, %v1795_v15 }
 0x346   : > { %v1845_v55 = vadd.f32 %v3011_v12, %v1820_v1 }
 0x348   : > { %1872 = vst [vmem:[%s3023_s19 + $0x8a] sm:$0x3f] %v1845_v55 }
 0x349   : > { %2279 = shalt.err (!%p2276_p0)
}
 0x34a   : > { %s2345_s14 = smov 128   ;;  %s2346_s17 = smov 8  }
 0x34b   : > { %2079 = dma.vmem_to_hbm [thread:$0]  (%p2472_p7), %s1888_s22, 2304, %s1890_s23, %s1874_s27, %s2345_s14, %s2345_s14, %s2346_s17  }
 0x34c PF: > { %s3391_s19 = sld [smem:[#allocation13_spill]]  ;;  %s1904_s21 = sand.u32 1, %s2318_s24  }
 0x34d   : > { %p2093_p3 = pnand %p2025_p11, %p2436_p6  ;;  %s1905_s30 = scalar_lea.sflag [#allocation5], %s1904_s21 }
 0x34f   : > { %p2094_p5 = pneg %p2093_p3 }
 0x351   : > { %2313 = dma.done.wait (%p2094_p5), %s1905_s30, 2304  }
 0x352   : > { %2315 = vsyncadd (%p2094_p5), %s1905_s30, 4294964992  ;;  %s24_s29 = sadd.s32 1, %s3391_s19   ;;  %s3392_s24 = smov %s2322_s25 }
 0x353   : > { %p21_p9 = scmp.ge.s32.totalorder %s24_s29, 4   ;;  %s3393_s25 = smov %s2326_s26 }
 0x354   : > { %s3394_s26 = smov %s2480_s20  ;;  %s3395_s27 = smov %s2334_s28 }
 0x355   : > { %s3396_s28 = smov %s3398_s13  ;;  %23 = sbr.rel (!%p21_p9) target bundleno = 10 (0xa), region = 116 }
 0x35a   :  { %1911 = vsyncpa [#allocation4], 1 }
 0x35b   :  { %1913 = vsyncpa [#allocation4 + $0x1], 1 }
 0x35c   :  { %1914 = vsyncpa [#allocation7], 1 }
 0x35d   :  { %1915 = vsyncpa [#allocation5], 1 }
 0x35e   :  { %1917 = vsyncpa [#allocation5 + $0x1], 1 }

</bundles_post_ra>
